<compile_context>
chip_gen: v6e
topology: v6e:2x2x1
jax: 0.10.0
libtpu: 0.0.40
codegen_flags: <defaults>
</compile_context>

<pallas_src>
import functools

import jax
import jax.numpy as jnp
from jax.experimental import pallas as pl
from jax.experimental.pallas import tpu as pltpu

# Layer sizes of the autoencoder (encoder then decoder).
DIMS = [28 * 28, 128, 64, 36, 18, 9, 18, 36, 64, 128, 28 * 28]
# Activation after each linear layer: ReLU for hidden layers, none after the
# bottleneck (18->9), sigmoid after the final (128->784).
ACTS = ["relu", "relu", "relu", "relu", None,
        "relu", "relu", "relu", "relu", "sigmoid"]

LANE = 128
SUBLANE = 8


def _round_up(x, m):
    return ((x + m - 1) // m) * m


# Lane-dense padded layer widths: [896, 128, 128, ..., 128, 896].
PADDED_DIMS = [_round_up(d, LANE) for d in DIMS]


def autoencoder_kernel(x_ref, *refs):
    """Whole forward pass for one batch tile, fused into a single kernel.

    refs = (w0, b0, w1, b1, ..., w9, b9, out_ref)
    Weights are (in_pad, out_pad) bf16; biases are (1, out_pad) f32.
    """
    out_ref = refs[-1]
    params = refs[:-1]

    h = x_ref[...].astype(jnp.float32)
    for i, act in enumerate(ACTS):
        w = params[2 * i][...]            # (in_pad, out_pad), bf16
        b = params[2 * i + 1][...]        # (1, out_pad), f32
        # bf16 MXU path with f32 accumulation; elementwise math stays f32.
        h = jnp.dot(h.astype(jnp.bfloat16), w,
                    preferred_element_type=jnp.float32) + b
        if act == "relu":
            h = jnp.maximum(h, 0.0)
        elif act == "sigmoid":
            h = jax.nn.sigmoid(h)
    out_ref[...] = h.astype(out_ref.dtype)


def make_params(key):
    """Xavier-uniform weights (bias = 0), matching nn.init.xavier_uniform_.

    Weights are zero-padded to lane-dense (in_pad, out_pad) shapes and stored
    in bf16; biases are zero-padded (1, out_pad) f32.  The zero padding keeps
    the math identical to the unpadded network (padded rows/cols contribute 0).
    """
    params = []
    for i in range(len(DIMS) - 1):
        fan_in, fan_out = DIMS[i], DIMS[i + 1]
        in_pad, out_pad = PADDED_DIMS[i], PADDED_DIMS[i + 1]
        key, sub = jax.random.split(key)
        bound = (6.0 / (fan_in + fan_out)) ** 0.5
        w = jax.random.uniform(sub, (fan_in, fan_out), jnp.float32, -bound, bound)
        w_pad = jnp.zeros((in_pad, out_pad), jnp.float32).at[:fan_in, :fan_out].set(w)
        params.append(w_pad.astype(jnp.bfloat16))
        params.append(jnp.zeros((1, out_pad), jnp.float32))
    return params


def _choose_tb(batch):
    """Batch-tile choice: up to 256 rows per step, but keep >= 2 grid steps
    when the batch allows it (megacore sharding on v7x, pipelining everywhere)."""
    b = _round_up(batch, SUBLANE)
    if b <= 2 * SUBLANE:
        return b
    return max(SUBLANE, min(256, _round_up(b // 2, SUBLANE)))


@functools.partial(jax.jit, static_argnames=("tb",))
def _autoencoder_pallas(x_pad, params, tb):
    Bp, Dp = x_pad.shape
    assert Dp == PADDED_DIMS[0] and Bp % tb == 0

    x_spec = pl.BlockSpec((tb, Dp), lambda i: (i, 0))
    out_spec = pl.BlockSpec((tb, PADDED_DIMS[-1]), lambda i: (i, 0))
    # All params are 2-D; hard-code the index map (avoids the late-binding bug).
    param_specs = [pl.BlockSpec(p.shape, lambda i: (0, 0)) for p in params]

    return pl.pallas_call(
        autoencoder_kernel,
        out_shape=jax.ShapeDtypeStruct((Bp, PADDED_DIMS[-1]), jnp.float32),
        grid_spec=pltpu.PrefetchScalarGridSpec(
            num_scalar_prefetch=0,
            grid=(Bp // tb,),
            in_specs=[x_spec] + param_specs,
            out_specs=out_spec,
        ),
        compiler_params=pltpu.CompilerParams(
            dimension_semantics=("parallel",),
            vmem_limit_bytes=32 * 1024 * 1024,
        ),
    )(x_pad, *params)


def autoencoder_forward(x, params, tb=None):
    """Pads (batch, 784) -> (batch_pad, 896), runs the fused kernel, slices back."""
    B, D = x.shape
    assert D == DIMS[0]
    if tb is None:
        tb = _choose_tb(B)
    Bp = _round_up(B, tb)
    x_pad = jnp.zeros((Bp, PADDED_DIMS[0]), jnp.float32).at[:B, :D].set(x)
    out_pad = _autoencoder_pallas(x_pad, params, tb)
    return out_pad[:B, :DIMS[-1]]


def reference_forward(x, params):
    """Pure-JAX reference using the same (bf16-rounded, zero-padded) weights but
    computing every matmul in f32 — only the in-kernel bf16 activation rounding
    differs from the Pallas path."""
    B, D = x.shape
    h = jnp.zeros((B, PADDED_DIMS[0]), jnp.float32).at[:, :D].set(x)
    for i, act in enumerate(ACTS):
        w = params[2 * i].astype(jnp.float32)
        b = params[2 * i + 1]
        h = h @ w + b
        if act == "relu":
            h = jnp.maximum(h, 0.0)
        elif act == "sigmoid":
            h = jax.nn.sigmoid(h)
    return h[:, :DIMS[-1]]


if __name__ == "__main__":
    key = jax.random.PRNGKey(0)
    kp, kx = jax.random.split(key)

    params = make_params(kp)
    B = 256                                   # -> tb = 128, grid = 2 steps
    x = jax.random.uniform(kx, (B, 28 * 28), jnp.float32)  # MNIST-like in [0,1)

    out = autoencoder_forward(x, params)
    out = jax.block_until_ready(out)

    ref = reference_forward(x, params)
    assert out.shape == (B, 28 * 28)
    max_err = float(jnp.max(jnp.abs(out - ref)))
    assert max_err < 2e-2, f"mismatch vs reference: max abs err = {max_err}"

    print("KERNEL_OK")
</pallas_src>

<mosaic_0001>
module attributes {stable_mosaic.version = 11 : i64} {
  func.func @autoencoder_kernel(%arg0: i32, %arg1: memref<128x896xf32, #tpu.memory_space<vmem>>, %arg2: memref<896x128xbf16, #tpu.memory_space<vmem>>, %arg3: memref<1x128xf32, #tpu.memory_space<vmem>>, %arg4: memref<128x128xbf16, #tpu.memory_space<vmem>>, %arg5: memref<1x128xf32, #tpu.memory_space<vmem>>, %arg6: memref<128x128xbf16, #tpu.memory_space<vmem>>, %arg7: memref<1x128xf32, #tpu.memory_space<vmem>>, %arg8: memref<128x128xbf16, #tpu.memory_space<vmem>>, %arg9: memref<1x128xf32, #tpu.memory_space<vmem>>, %arg10: memref<128x128xbf16, #tpu.memory_space<vmem>>, %arg11: memref<1x128xf32, #tpu.memory_space<vmem>>, %arg12: memref<128x128xbf16, #tpu.memory_space<vmem>>, %arg13: memref<1x128xf32, #tpu.memory_space<vmem>>, %arg14: memref<128x128xbf16, #tpu.memory_space<vmem>>, %arg15: memref<1x128xf32, #tpu.memory_space<vmem>>, %arg16: memref<128x128xbf16, #tpu.memory_space<vmem>>, %arg17: memref<1x128xf32, #tpu.memory_space<vmem>>, %arg18: memref<128x128xbf16, #tpu.memory_space<vmem>>, %arg19: memref<1x128xf32, #tpu.memory_space<vmem>>, %arg20: memref<128x896xbf16, #tpu.memory_space<vmem>>, %arg21: memref<1x896xf32, #tpu.memory_space<vmem>>, %arg22: memref<128x896xf32, #tpu.memory_space<vmem>>) attributes {dimension_semantics = [#tpu.dimension_semantics<parallel>], iteration_bounds = array<i64: 2>, scalar_prefetch = 0 : i64, scratch_operands = 0 : i64, tpu.core_type = #tpu.core_type<tc>, window_params = [{transform_indices = @transform_0, window_bounds = array<i64: 128, 896>}, {pipeline_mode = #tpu.pipeline_mode<synchronous>, transform_indices = @transform_1, window_bounds = array<i64: 896, 128>}, {pipeline_mode = #tpu.pipeline_mode<synchronous>, transform_indices = @transform_2, window_bounds = array<i64: 1, 128>}, {pipeline_mode = #tpu.pipeline_mode<synchronous>, transform_indices = @transform_3, window_bounds = array<i64: 128, 128>}, {pipeline_mode = #tpu.pipeline_mode<synchronous>, transform_indices = @transform_4, window_bounds = array<i64: 1, 128>}, {pipeline_mode = #tpu.pipeline_mode<synchronous>, transform_indices = @transform_5, window_bounds = array<i64: 128, 128>}, {pipeline_mode = #tpu.pipeline_mode<synchronous>, transform_indices = @transform_6, window_bounds = array<i64: 1, 128>}, {pipeline_mode = #tpu.pipeline_mode<synchronous>, transform_indices = @transform_7, window_bounds = array<i64: 128, 128>}, {pipeline_mode = #tpu.pipeline_mode<synchronous>, transform_indices = @transform_8, window_bounds = array<i64: 1, 128>}, {pipeline_mode = #tpu.pipeline_mode<synchronous>, transform_indices = @transform_9, window_bounds = array<i64: 128, 128>}, {pipeline_mode = #tpu.pipeline_mode<synchronous>, transform_indices = @transform_10, window_bounds = array<i64: 1, 128>}, {pipeline_mode = #tpu.pipeline_mode<synchronous>, transform_indices = @transform_11, window_bounds = array<i64: 128, 128>}, {pipeline_mode = #tpu.pipeline_mode<synchronous>, transform_indices = @transform_12, window_bounds = array<i64: 1, 128>}, {pipeline_mode = #tpu.pipeline_mode<synchronous>, transform_indices = @transform_13, window_bounds = array<i64: 128, 128>}, {pipeline_mode = #tpu.pipeline_mode<synchronous>, transform_indices = @transform_14, window_bounds = array<i64: 1, 128>}, {pipeline_mode = #tpu.pipeline_mode<synchronous>, transform_indices = @transform_15, window_bounds = array<i64: 128, 128>}, {pipeline_mode = #tpu.pipeline_mode<synchronous>, transform_indices = @transform_16, window_bounds = array<i64: 1, 128>}, {pipeline_mode = #tpu.pipeline_mode<synchronous>, transform_indices = @transform_17, window_bounds = array<i64: 128, 128>}, {pipeline_mode = #tpu.pipeline_mode<synchronous>, transform_indices = @transform_18, window_bounds = array<i64: 1, 128>}, {pipeline_mode = #tpu.pipeline_mode<synchronous>, transform_indices = @transform_19, window_bounds = array<i64: 128, 896>}, {pipeline_mode = #tpu.pipeline_mode<synchronous>, transform_indices = @transform_20, window_bounds = array<i64: 1, 896>}, {transform_indices = @transform_21, window_bounds = array<i64: 128, 896>}]} {
    %c0 = arith.constant 0 : index
    %c0_0 = arith.constant 0 : index
    %0 = vector.load %arg1[%c0, %c0_0] : memref<128x896xf32, #tpu.memory_space<vmem>>, vector<128x896xf32>
    %c0_1 = arith.constant 0 : index
    %c0_2 = arith.constant 0 : index
    %1 = vector.load %arg2[%c0_1, %c0_2] : memref<896x128xbf16, #tpu.memory_space<vmem>>, vector<896x128xbf16>
    %c0_3 = arith.constant 0 : index
    %c0_4 = arith.constant 0 : index
    %2 = vector.load %arg3[%c0_3, %c0_4] : memref<1x128xf32, #tpu.memory_space<vmem>>, vector<1x128xf32>
    %3 = arith.truncf %0 : vector<128x896xf32> to vector<128x896xbf16>
    %cst = arith.constant dense<0.000000e+00> : vector<128x128xf32>
    %4 = tpu.matmul %3, %1, %cst {dimension_numbers = #tpu.dot_dimension_numbers<[1], [0], [0], [1], [0, 0, 1, 1], [], []>} : vector<128x896xbf16>, vector<896x128xbf16>, vector<128x128xf32> -> vector<128x128xf32>
    %5 = vector.broadcast %2 : vector<1x128xf32> to vector<128x128xf32>
    %6 = arith.addf %4, %5 : vector<128x128xf32>
    %cst_5 = arith.constant 0.000000e+00 : f32
    %7 = vector.broadcast %cst_5 : f32 to vector<128x128xf32>
    %8 = arith.maximumf %6, %7 : vector<128x128xf32>
    %c0_6 = arith.constant 0 : index
    %c0_7 = arith.constant 0 : index
    %9 = vector.load %arg4[%c0_6, %c0_7] : memref<128x128xbf16, #tpu.memory_space<vmem>>, vector<128x128xbf16>
    %c0_8 = arith.constant 0 : index
    %c0_9 = arith.constant 0 : index
    %10 = vector.load %arg5[%c0_8, %c0_9] : memref<1x128xf32, #tpu.memory_space<vmem>>, vector<1x128xf32>
    %11 = arith.truncf %8 : vector<128x128xf32> to vector<128x128xbf16>
    %cst_10 = arith.constant dense<0.000000e+00> : vector<128x128xf32>
    %12 = tpu.matmul %11, %9, %cst_10 {dimension_numbers = #tpu.dot_dimension_numbers<[1], [0], [0], [1], [0, 0, 1, 1], [], []>} : vector<128x128xbf16>, vector<128x128xbf16>, vector<128x128xf32> -> vector<128x128xf32>
    %13 = vector.broadcast %10 : vector<1x128xf32> to vector<128x128xf32>
    %14 = arith.addf %12, %13 : vector<128x128xf32>
    %cst_11 = arith.constant 0.000000e+00 : f32
    %15 = vector.broadcast %cst_11 : f32 to vector<128x128xf32>
    %16 = arith.maximumf %14, %15 : vector<128x128xf32>
    %c0_12 = arith.constant 0 : index
    %c0_13 = arith.constant 0 : index
    %17 = vector.load %arg6[%c0_12, %c0_13] : memref<128x128xbf16, #tpu.memory_space<vmem>>, vector<128x128xbf16>
    %c0_14 = arith.constant 0 : index
    %c0_15 = arith.constant 0 : index
    %18 = vector.load %arg7[%c0_14, %c0_15] : memref<1x128xf32, #tpu.memory_space<vmem>>, vector<1x128xf32>
    %19 = arith.truncf %16 : vector<128x128xf32> to vector<128x128xbf16>
    %cst_16 = arith.constant dense<0.000000e+00> : vector<128x128xf32>
    %20 = tpu.matmul %19, %17, %cst_16 {dimension_numbers = #tpu.dot_dimension_numbers<[1], [0], [0], [1], [0, 0, 1, 1], [], []>} : vector<128x128xbf16>, vector<128x128xbf16>, vector<128x128xf32> -> vector<128x128xf32>
    %21 = vector.broadcast %18 : vector<1x128xf32> to vector<128x128xf32>
    %22 = arith.addf %20, %21 : vector<128x128xf32>
    %cst_17 = arith.constant 0.000000e+00 : f32
    %23 = vector.broadcast %cst_17 : f32 to vector<128x128xf32>
    %24 = arith.maximumf %22, %23 : vector<128x128xf32>
    %c0_18 = arith.constant 0 : index
    %c0_19 = arith.constant 0 : index
    %25 = vector.load %arg8[%c0_18, %c0_19] : memref<128x128xbf16, #tpu.memory_space<vmem>>, vector<128x128xbf16>
    %c0_20 = arith.constant 0 : index
    %c0_21 = arith.constant 0 : index
    %26 = vector.load %arg9[%c0_20, %c0_21] : memref<1x128xf32, #tpu.memory_space<vmem>>, vector<1x128xf32>
    %27 = arith.truncf %24 : vector<128x128xf32> to vector<128x128xbf16>
    %cst_22 = arith.constant dense<0.000000e+00> : vector<128x128xf32>
    %28 = tpu.matmul %27, %25, %cst_22 {dimension_numbers = #tpu.dot_dimension_numbers<[1], [0], [0], [1], [0, 0, 1, 1], [], []>} : vector<128x128xbf16>, vector<128x128xbf16>, vector<128x128xf32> -> vector<128x128xf32>
    %29 = vector.broadcast %26 : vector<1x128xf32> to vector<128x128xf32>
    %30 = arith.addf %28, %29 : vector<128x128xf32>
    %cst_23 = arith.constant 0.000000e+00 : f32
    %31 = vector.broadcast %cst_23 : f32 to vector<128x128xf32>
    %32 = arith.maximumf %30, %31 : vector<128x128xf32>
    %c0_24 = arith.constant 0 : index
    %c0_25 = arith.constant 0 : index
    %33 = vector.load %arg10[%c0_24, %c0_25] : memref<128x128xbf16, #tpu.memory_space<vmem>>, vector<128x128xbf16>
    %c0_26 = arith.constant 0 : index
    %c0_27 = arith.constant 0 : index
    %34 = vector.load %arg11[%c0_26, %c0_27] : memref<1x128xf32, #tpu.memory_space<vmem>>, vector<1x128xf32>
    %35 = arith.truncf %32 : vector<128x128xf32> to vector<128x128xbf16>
    %cst_28 = arith.constant dense<0.000000e+00> : vector<128x128xf32>
    %36 = tpu.matmul %35, %33, %cst_28 {dimension_numbers = #tpu.dot_dimension_numbers<[1], [0], [0], [1], [0, 0, 1, 1], [], []>} : vector<128x128xbf16>, vector<128x128xbf16>, vector<128x128xf32> -> vector<128x128xf32>
    %37 = vector.broadcast %34 : vector<1x128xf32> to vector<128x128xf32>
    %38 = arith.addf %36, %37 : vector<128x128xf32>
    %c0_29 = arith.constant 0 : index
    %c0_30 = arith.constant 0 : index
    %39 = vector.load %arg12[%c0_29, %c0_30] : memref<128x128xbf16, #tpu.memory_space<vmem>>, vector<128x128xbf16>
    %c0_31 = arith.constant 0 : index
    %c0_32 = arith.constant 0 : index
    %40 = vector.load %arg13[%c0_31, %c0_32] : memref<1x128xf32, #tpu.memory_space<vmem>>, vector<1x128xf32>
    %41 = arith.truncf %38 : vector<128x128xf32> to vector<128x128xbf16>
    %cst_33 = arith.constant dense<0.000000e+00> : vector<128x128xf32>
    %42 = tpu.matmul %41, %39, %cst_33 {dimension_numbers = #tpu.dot_dimension_numbers<[1], [0], [0], [1], [0, 0, 1, 1], [], []>} : vector<128x128xbf16>, vector<128x128xbf16>, vector<128x128xf32> -> vector<128x128xf32>
    %43 = vector.broadcast %40 : vector<1x128xf32> to vector<128x128xf32>
    %44 = arith.addf %42, %43 : vector<128x128xf32>
    %cst_34 = arith.constant 0.000000e+00 : f32
    %45 = vector.broadcast %cst_34 : f32 to vector<128x128xf32>
    %46 = arith.maximumf %44, %45 : vector<128x128xf32>
    %c0_35 = arith.constant 0 : index
    %c0_36 = arith.constant 0 : index
    %47 = vector.load %arg14[%c0_35, %c0_36] : memref<128x128xbf16, #tpu.memory_space<vmem>>, vector<128x128xbf16>
    %c0_37 = arith.constant 0 : index
    %c0_38 = arith.constant 0 : index
    %48 = vector.load %arg15[%c0_37, %c0_38] : memref<1x128xf32, #tpu.memory_space<vmem>>, vector<1x128xf32>
    %49 = arith.truncf %46 : vector<128x128xf32> to vector<128x128xbf16>
    %cst_39 = arith.constant dense<0.000000e+00> : vector<128x128xf32>
    %50 = tpu.matmul %49, %47, %cst_39 {dimension_numbers = #tpu.dot_dimension_numbers<[1], [0], [0], [1], [0, 0, 1, 1], [], []>} : vector<128x128xbf16>, vector<128x128xbf16>, vector<128x128xf32> -> vector<128x128xf32>
    %51 = vector.broadcast %48 : vector<1x128xf32> to vector<128x128xf32>
    %52 = arith.addf %50, %51 : vector<128x128xf32>
    %cst_40 = arith.constant 0.000000e+00 : f32
    %53 = vector.broadcast %cst_40 : f32 to vector<128x128xf32>
    %54 = arith.maximumf %52, %53 : vector<128x128xf32>
    %c0_41 = arith.constant 0 : index
    %c0_42 = arith.constant 0 : index
    %55 = vector.load %arg16[%c0_41, %c0_42] : memref<128x128xbf16, #tpu.memory_space<vmem>>, vector<128x128xbf16>
    %c0_43 = arith.constant 0 : index
    %c0_44 = arith.constant 0 : index
    %56 = vector.load %arg17[%c0_43, %c0_44] : memref<1x128xf32, #tpu.memory_space<vmem>>, vector<1x128xf32>
    %57 = arith.truncf %54 : vector<128x128xf32> to vector<128x128xbf16>
    %cst_45 = arith.constant dense<0.000000e+00> : vector<128x128xf32>
    %58 = tpu.matmul %57, %55, %cst_45 {dimension_numbers = #tpu.dot_dimension_numbers<[1], [0], [0], [1], [0, 0, 1, 1], [], []>} : vector<128x128xbf16>, vector<128x128xbf16>, vector<128x128xf32> -> vector<128x128xf32>
    %59 = vector.broadcast %56 : vector<1x128xf32> to vector<128x128xf32>
    %60 = arith.addf %58, %59 : vector<128x128xf32>
    %cst_46 = arith.constant 0.000000e+00 : f32
    %61 = vector.broadcast %cst_46 : f32 to vector<128x128xf32>
    %62 = arith.maximumf %60, %61 : vector<128x128xf32>
    %c0_47 = arith.constant 0 : index
    %c0_48 = arith.constant 0 : index
    %63 = vector.load %arg18[%c0_47, %c0_48] : memref<128x128xbf16, #tpu.memory_space<vmem>>, vector<128x128xbf16>
    %c0_49 = arith.constant 0 : index
    %c0_50 = arith.constant 0 : index
    %64 = vector.load %arg19[%c0_49, %c0_50] : memref<1x128xf32, #tpu.memory_space<vmem>>, vector<1x128xf32>
    %65 = arith.truncf %62 : vector<128x128xf32> to vector<128x128xbf16>
    %cst_51 = arith.constant dense<0.000000e+00> : vector<128x128xf32>
    %66 = tpu.matmul %65, %63, %cst_51 {dimension_numbers = #tpu.dot_dimension_numbers<[1], [0], [0], [1], [0, 0, 1, 1], [], []>} : vector<128x128xbf16>, vector<128x128xbf16>, vector<128x128xf32> -> vector<128x128xf32>
    %67 = vector.broadcast %64 : vector<1x128xf32> to vector<128x128xf32>
    %68 = arith.addf %66, %67 : vector<128x128xf32>
    %cst_52 = arith.constant 0.000000e+00 : f32
    %69 = vector.broadcast %cst_52 : f32 to vector<128x128xf32>
    %70 = arith.maximumf %68, %69 : vector<128x128xf32>
    %c0_53 = arith.constant 0 : index
    %c0_54 = arith.constant 0 : index
    %71 = vector.load %arg20[%c0_53, %c0_54] : memref<128x896xbf16, #tpu.memory_space<vmem>>, vector<128x896xbf16>
    %c0_55 = arith.constant 0 : index
    %c0_56 = arith.constant 0 : index
    %72 = vector.load %arg21[%c0_55, %c0_56] : memref<1x896xf32, #tpu.memory_space<vmem>>, vector<1x896xf32>
    %73 = arith.truncf %70 : vector<128x128xf32> to vector<128x128xbf16>
    %cst_57 = arith.constant dense<0.000000e+00> : vector<128x896xf32>
    %74 = tpu.matmul %73, %71, %cst_57 {dimension_numbers = #tpu.dot_dimension_numbers<[1], [0], [0], [1], [0, 0, 1, 1], [], []>} : vector<128x128xbf16>, vector<128x896xbf16>, vector<128x896xf32> -> vector<128x896xf32>
    %75 = vector.broadcast %72 : vector<1x896xf32> to vector<128x896xf32>
    %76 = arith.addf %74, %75 : vector<128x896xf32>
    %77 = arith.negf %76 : vector<128x896xf32>
    %78 = math.exp %77 : vector<128x896xf32>
    %cst_58 = arith.constant 1.000000e+00 : f32
    %79 = vector.broadcast %cst_58 : f32 to vector<128x896xf32>
    %80 = arith.addf %79, %78 : vector<128x896xf32>
    %81 = arith.divf %79, %80 : vector<128x896xf32>
    %c0_59 = arith.constant 0 : index
    %c0_60 = arith.constant 0 : index
    %82 = vector.load %arg22[%c0_59, %c0_60] : memref<128x896xf32, #tpu.memory_space<vmem>>, vector<128x896xf32>
    tpu.vector_store %arg22[%c0_59, %c0_60], %81 {strides = array<i32>} : memref<128x896xf32, #tpu.memory_space<vmem>>, vector<128x896xf32>,
    return
  }
  func.func @transform_0(%arg0: i32) -> (i32, i32) {
    %c0_i32 = arith.constant 0 : i32
    %c0_i32_0 = arith.constant 0 : i32
    return %arg0, %c0_i32 : i32, i32
  }
  func.func @transform_1(%arg0: i32) -> (i32, i32) {
    %c0_i32 = arith.constant 0 : i32
    %c0_i32_0 = arith.constant 0 : i32
    %c0_i32_1 = arith.constant 0 : i32
    return %c0_i32, %c0_i32_0 : i32, i32
  }
  func.func @transform_2(%arg0: i32) -> (i32, i32) {
    %c0_i32 = arith.constant 0 : i32
    %c0_i32_0 = arith.constant 0 : i32
    %c0_i32_1 = arith.constant 0 : i32
    return %c0_i32, %c0_i32_0 : i32, i32
  }
  func.func @transform_3(%arg0: i32) -> (i32, i32) {
    %c0_i32 = arith.constant 0 : i32
    %c0_i32_0 = arith.constant 0 : i32
    %c0_i32_1 = arith.constant 0 : i32
    return %c0_i32, %c0_i32_0 : i32, i32
  }
  func.func @transform_4(%arg0: i32) -> (i32, i32) {
    %c0_i32 = arith.constant 0 : i32
    %c0_i32_0 = arith.constant 0 : i32
    %c0_i32_1 = arith.constant 0 : i32
    return %c0_i32, %c0_i32_0 : i32, i32
  }
  func.func @transform_5(%arg0: i32) -> (i32, i32) {
    %c0_i32 = arith.constant 0 : i32
    %c0_i32_0 = arith.constant 0 : i32
    %c0_i32_1 = arith.constant 0 : i32
    return %c0_i32, %c0_i32_0 : i32, i32
  }
  func.func @transform_6(%arg0: i32) -> (i32, i32) {
    %c0_i32 = arith.constant 0 : i32
    %c0_i32_0 = arith.constant 0 : i32
    %c0_i32_1 = arith.constant 0 : i32
    return %c0_i32, %c0_i32_0 : i32, i32
  }
  func.func @transform_7(%arg0: i32) -> (i32, i32) {
    %c0_i32 = arith.constant 0 : i32
    %c0_i32_0 = arith.constant 0 : i32
    %c0_i32_1 = arith.constant 0 : i32
    return %c0_i32, %c0_i32_0 : i32, i32
  }
  func.func @transform_8(%arg0: i32) -> (i32, i32) {
    %c0_i32 = arith.constant 0 : i32
    %c0_i32_0 = arith.constant 0 : i32
    %c0_i32_1 = arith.constant 0 : i32
    return %c0_i32, %c0_i32_0 : i32, i32
  }
  func.func @transform_9(%arg0: i32) -> (i32, i32) {
    %c0_i32 = arith.constant 0 : i32
    %c0_i32_0 = arith.constant 0 : i32
    %c0_i32_1 = arith.constant 0 : i32
    return %c0_i32, %c0_i32_0 : i32, i32
  }
  func.func @transform_10(%arg0: i32) -> (i32, i32) {
    %c0_i32 = arith.constant 0 : i32
    %c0_i32_0 = arith.constant 0 : i32
    %c0_i32_1 = arith.constant 0 : i32
    return %c0_i32, %c0_i32_0 : i32, i32
  }
  func.func @transform_11(%arg0: i32) -> (i32, i32) {
    %c0_i32 = arith.constant 0 : i32
    %c0_i32_0 = arith.constant 0 : i32
    %c0_i32_1 = arith.constant 0 : i32
    return %c0_i32, %c0_i32_0 : i32, i32
  }
  func.func @transform_12(%arg0: i32) -> (i32, i32) {
    %c0_i32 = arith.constant 0 : i32
    %c0_i32_0 = arith.constant 0 : i32
    %c0_i32_1 = arith.constant 0 : i32
    return %c0_i32, %c0_i32_0 : i32, i32
  }
  func.func @transform_13(%arg0: i32) -> (i32, i32) {
    %c0_i32 = arith.constant 0 : i32
    %c0_i32_0 = arith.constant 0 : i32
    %c0_i32_1 = arith.constant 0 : i32
    return %c0_i32, %c0_i32_0 : i32, i32
  }
  func.func @transform_14(%arg0: i32) -> (i32, i32) {
    %c0_i32 = arith.constant 0 : i32
    %c0_i32_0 = arith.constant 0 : i32
    %c0_i32_1 = arith.constant 0 : i32
    return %c0_i32, %c0_i32_0 : i32, i32
  }
  func.func @transform_15(%arg0: i32) -> (i32, i32) {
    %c0_i32 = arith.constant 0 : i32
    %c0_i32_0 = arith.constant 0 : i32
    %c0_i32_1 = arith.constant 0 : i32
    return %c0_i32, %c0_i32_0 : i32, i32
  }
  func.func @transform_16(%arg0: i32) -> (i32, i32) {
    %c0_i32 = arith.constant 0 : i32
    %c0_i32_0 = arith.constant 0 : i32
    %c0_i32_1 = arith.constant 0 : i32
    return %c0_i32, %c0_i32_0 : i32, i32
  }
  func.func @transform_17(%arg0: i32) -> (i32, i32) {
    %c0_i32 = arith.constant 0 : i32
    %c0_i32_0 = arith.constant 0 : i32
    %c0_i32_1 = arith.constant 0 : i32
    return %c0_i32, %c0_i32_0 : i32, i32
  }
  func.func @transform_18(%arg0: i32) -> (i32, i32) {
    %c0_i32 = arith.constant 0 : i32
    %c0_i32_0 = arith.constant 0 : i32
    %c0_i32_1 = arith.constant 0 : i32
    return %c0_i32, %c0_i32_0 : i32, i32
  }
  func.func @transform_19(%arg0: i32) -> (i32, i32) {
    %c0_i32 = arith.constant 0 : i32
    %c0_i32_0 = arith.constant 0 : i32
    %c0_i32_1 = arith.constant 0 : i32
    return %c0_i32, %c0_i32_0 : i32, i32
  }
  func.func @transform_20(%arg0: i32) -> (i32, i32) {
    %c0_i32 = arith.constant 0 : i32
    %c0_i32_0 = arith.constant 0 : i32
    %c0_i32_1 = arith.constant 0 : i32
    return %c0_i32, %c0_i32_0 : i32, i32
  }
  func.func @transform_21(%arg0: i32) -> (i32, i32) {
    %c0_i32 = arith.constant 0 : i32
    %c0_i32_0 = arith.constant 0 : i32
    return %arg0, %c0_i32 : i32, i32
  }
}

</mosaic_0001>

<bundles_post_ra>
// kernel: _autoencoder_pallas.1
= control target key start
LH: loop header
LB: loop body
LE: loop exit
PB: predicated region body
PF: predicated region fallthrough
CT: control target
= control target key end

     0   :  { %s8569_s0 = inlined_call_operand.hbm [shape: f32[256,896], index: 0, kind: input, shape index: {}]   ;;  %s8570_s1 = inlined_call_operand.hbm [shape: bf16[896,128], index: 1, kind: input, shape index: {}]   ;;  %s8571_s2 = inlined_call_operand.vmem [shape: f32[1,128], index: 2, kind: input, shape index: {}]   ;;  %s8572_s3 = inlined_call_operand.hbm [shape: bf16[128,128], index: 3, kind: input, shape index: {}]   ;;  %s8573_s4 = inlined_call_operand.vmem [shape: f32[1,128], index: 4, kind: input, shape index: {}]   ;;  %s8574_s5 = inlined_call_operand.hbm [shape: bf16[128,128], index: 5, kind: input, shape index: {}]   ;;  %s8575_s6 = inlined_call_operand.vmem [shape: f32[1,128], index: 6, kind: input, shape index: {}]   ;;  %s8576_s7 = inlined_call_operand.hbm [shape: bf16[128,128], index: 7, kind: input, shape index: {}]   ;;  %s8577_s8 = inlined_call_operand.vmem [shape: f32[1,128], index: 8, kind: input, shape index: {}]   ;;  %s8578_s9 = inlined_call_operand.hbm [shape: bf16[128,128], index: 9, kind: input, shape index: {}]   ;;  %s8579_s10 = inlined_call_operand.vmem [shape: f32[1,128], index: 10, kind: input, shape index: {}]   ;;  %s8580_s11 = inlined_call_operand.hbm [shape: bf16[128,128], index: 11, kind: input, shape index: {}]   ;;  %s8581_s12 = inlined_call_operand.vmem [shape: f32[1,128], index: 12, kind: input, shape index: {}]   ;;  %s8582_s13 = inlined_call_operand.hbm [shape: bf16[128,128], index: 13, kind: input, shape index: {}]   ;;  %s8583_s14 = inlined_call_operand.vmem [shape: f32[1,128], index: 14, kind: input, shape index: {}]   ;;  %s8584_s15 = inlined_call_operand.hbm [shape: bf16[128,128], index: 15, kind: input, shape index: {}]   ;;  %s8585_s16 = inlined_call_operand.vmem [shape: f32[1,128], index: 16, kind: input, shape index: {}]   ;;  %s8586_s17 = inlined_call_operand.hbm [shape: bf16[128,128], index: 17, kind: input, shape index: {}]   ;;  %s8587_s18 = inlined_call_operand.vmem [shape: f32[1,128], index: 18, kind: input, shape index: {}]   ;;  %s8588_s19 = inlined_call_operand.hbm [shape: bf16[128,896], index: 19, kind: input, shape index: {}]   ;;  %s8589_s20 = inlined_call_operand.vmem [shape: f32[1,896], index: 20, kind: input, shape index: {}]   ;;  %s8590_s21 = inlined_call_operand.hbm [shape: f32[256,896], index: 21, kind: output, shape index: {}]  }
   0x1   :  { %8598 = sst [smem:[#allocation28_spill]] %s8569_s0 }
   0x2   :  { %8599 = sst [smem:[#allocation29_spill]] %s8570_s1 }
   0x3   :  { %8600 = sst [smem:[#allocation30_spill]] %s8571_s2 }
   0x4   :  { %8601 = sst [smem:[#allocation31_spill]] %s8572_s3 }
   0x5   :  { %8602 = sst [smem:[#allocation32_spill]] %s8573_s4 }
   0x6   :  { %8603 = sst [smem:[#allocation33_spill]] %s8574_s5 }
   0x7   :  { %8604 = sst [smem:[#allocation34_spill]] %s8576_s7 }
   0x8   :  { %8605 = sst [smem:[#allocation35_spill]] %s8578_s9 }
   0x9   :  { %8606 = sst [smem:[#allocation36_spill]] %s8580_s11 }
   0xa   :  { %8607 = sst [smem:[#allocation37_spill]] %s8582_s13 }
   0xb   :  { %8608 = sst [smem:[#allocation38_spill]] %s8584_s15 }
   0xc   :  { %8609 = sst [smem:[#allocation39_spill]] %s8586_s17 }
   0xd   :  { %8610 = sst [smem:[#allocation40_spill]] %s8587_s18 }
   0xe   :  { %8611 = sst [smem:[#allocation41_spill]] %s8588_s19 }
   0xf   :  { %8612 = sst [smem:[#allocation42_spill]] %s8589_s20 }
  0x10   :  { %8613 = sst [smem:[#allocation43_spill]] %s8590_s21 }
  0x11   :  { %26 = vsyncpa [#allocation3], 0 }
  0x12   :  { %28 = vsyncpa [#allocation3 + $0x1], 0 }
  0x13   :  { %29 = vsyncpa [#allocation6], 0 }
  0x14   :  { %30 = vsyncpa [#allocation9], 0 }
  0x15   :  { %31 = vsyncpa [#allocation12], 0 }
  0x16   :  { %32 = vsyncpa [#allocation15], 0 }
  0x17   :  { %33 = vsyncpa [#allocation18], 0 }
  0x18   :  { %34 = vsyncpa [#allocation4], 0 }
  0x19   :  { %36 = vsyncpa [#allocation4 + $0x1], 0  ;;  %s7486_s2 = smov 0   ;;  %s7488_s25 = smov 0  }
  0x1a   :  { %s7490_s26 = smov 0   ;;  %s7492_s27 = smov 0  }
  0x1b LB: > { %s7355_s3 = smov [#allocation5]   ;;  %s7507_s29 = sadd.s32 4294967295, %s7353_s27   ;;  %s7353_s27 = sphi %s7492_s27, %s8655_s27   ;;  %s7349_s26 = sphi %s7490_s26, %s8654_s26   ;;  %s7345_s25 = sphi %s7488_s25, %s8653_s25   ;;  %s7341_s2 = sphi %s7486_s2, %s8652_s2  }
  0x1c   : > { %s531_s28 = sshll.u32 %s7355_s3, 4  ;;  %p5172_p0 = scmp.ge.s32.totalorder %s7353_s27, 1  ;;  %s532_s28 = int_to_ptr.vmem [resolvable:$true] %s531_s28 }
  0x1d   : > { %p8594_p1 = scmp.eq.s32.totalorder %s7507_s29, 0  ;;  %p519_p2 = scmp.lt.s32.totalorder %s7353_s27, 3 }
  0x1e   : > { %s7356_s4 = smov [#allocation8]   ;;  %s7357_s22 = smov [#allocation11]  }
  0x1f   : > { %p7512_p3 = pnand %p5172_p0, %p519_p2  ;;  %s563_s30 = sshll.u32 %s7356_s4, 4  ;;  %s7525_s30 = int_to_ptr.vmem [resolvable:$true] %s563_s30 }
  0x20   : > { %s595_s23 = sshll.u32 %s7357_s22, 4  ;;  %s6992_s24 = scalar_lea.vmem %s532_s28, 7168  ;;  %s7527_s23 = int_to_ptr.vmem [resolvable:$true] %s595_s23 }
  0x21   : > { %s8614_s0 = scalar_select %p7512_p3, 1, 0 }
  0x22   : > { %p6220_p5 = pneg %p7512_p3  ;;  %p6993_p8 = scmp.ne.s32.totalorder %s532_s28, %s6992_s24 }
  0x23   : > { %p7000_p11 = scmp.lt.s32.totalorder %s532_s28, %s532_s28  ;;  %p7001_p12 = scmp.lt.s32.totalorder %s6992_s24, %s6992_s24 }
  0x24   : > { %p7521_p6 = pnand %p6220_p5, %p8594_p1 }
  0x25   : > { %p7002_p13 = por %p7001_p12, %p7000_p11 }
  0x26   : > { %p7531_p7 = pneg %p7521_p6 }
  0x28   : > { %p6995_p9 = pnand %p6993_p8, %p7531_p7 }
  0x2a   : > { %p6996_p10 = pneg %p6995_p9 }
  0x2c   : > { %p7003_p0 = pnand %p7002_p13, %p6996_p10 }
  0x2e   : > { %7006 = shalt.err (!%p7003_p0)
}
  0x2f   : > { %s7358_s3 = smov 64   ;;  %s7359_s4 = smov 4  }
  0x30   : > { %s8617_s20 = sld [smem:[#allocation29_spill]]  ;;  %s7018_s18 = scalar_lea.vmem %s7525_s30, 1024 }
  0x31   : > { %p7019_p2 = scmp.ne.s32.totalorder %s7525_s30, %s7018_s18  ;;  %p7026_p9 = scmp.lt.s32.totalorder %s7525_s30, %s7525_s30 }
  0x32   : > { %p7027_p10 = scmp.lt.s32.totalorder %s7018_s18, %s7018_s18 }
  0x33   : > { %p7021_p5 = pnand %p7019_p2, %p7531_p7 }
  0x34   : > { %p7028_p11 = por %p7027_p10, %p7026_p9 }
  0x35   : > { %p7022_p8 = pneg %p7021_p5 }
  0x36   : > { %6223 = dma.hbm_to_vmem [thread:$0]  (!%p7521_p6), %s8617_s20, 7168, %s532_s28, [#allocation6], %s7358_s3, %s7358_s3, %s7359_s4  }
  0x37   : > { %p7029_p12 = pnand %p7028_p11, %p7022_p8 }
  0x39   : > { %7032 = shalt.err (!%p7029_p12)
}
  0x3a   : > { %s8618_s20 = sld [smem:[#allocation33_spill]]  ;;  %s7044_s28 = scalar_lea.vmem %s7527_s23, 1024 }
  0x3b   : > { %p7045_p13 = scmp.ne.s32.totalorder %s7527_s23, %s7044_s28  ;;  %p7052_p5 = scmp.lt.s32.totalorder %s7527_s23, %s7527_s23 }
  0x3c   : > { %p7053_p8 = scmp.lt.s32.totalorder %s7044_s28, %s7044_s28 }
  0x3d   : > { %p7047_p0 = pnand %p7045_p13, %p7531_p7 }
  0x3e   : > { %p7054_p9 = por %p7053_p8, %p7052_p5 }
  0x3f   : > { %p7048_p2 = pneg %p7047_p0 }
  0x40   : > { %6229 = dma.hbm_to_vmem [thread:$0]  (!%p7521_p6), %s8618_s20, 1024, %s7525_s30, [#allocation9], %s7358_s3, %s7358_s3, %s7359_s4  }
  0x41   : > { %p7055_p10 = pnand %p7054_p9, %p7048_p2 }
  0x43   : > { %7058 = shalt.err (!%p7055_p10)
}
  0x44   : > { %s8619_s9 = sld [smem:[#allocation35_spill]]  ;;  %s7360_s30 = smov [#allocation14]  }
  0x45   : > { %s627_s24 = sshll.u32 %s7360_s30, 4  ;;  %s7361_s21 = smov [#allocation17]   ;;  %s628_s24 = int_to_ptr.vmem [resolvable:$true] %s627_s24 }
  0x46   : > { %s659_s20 = sshll.u32 %s7361_s21, 4  ;;  %s7070_s28 = scalar_lea.vmem %s628_s24, 1024  ;;  %s660_s20 = int_to_ptr.vmem [resolvable:$true] %s659_s20 }
  0x47   : > { %p7071_p11 = scmp.ne.s32.totalorder %s628_s24, %s7070_s28  ;;  %p7078_p0 = scmp.lt.s32.totalorder %s628_s24, %s628_s24 }
  0x48   : > { %p7079_p2 = scmp.lt.s32.totalorder %s7070_s28, %s7070_s28 }
  0x49   : > { %p7073_p12 = pnand %p7071_p11, %p7531_p7 }
  0x4a   : > { %6235 = dma.hbm_to_vmem [thread:$0]  (!%p7521_p6), %s8619_s9, 1024, %s7527_s23, [#allocation12], %s7358_s3, %s7358_s3, %s7359_s4  }
  0x4b   : > { %p7074_p13 = pneg %p7073_p12  ;;  %p7080_p5 = por %p7079_p2, %p7078_p0 }
  0x4d   : > { %p7081_p8 = pnand %p7080_p5, %p7074_p13 }
  0x4f   : > { %7084 = shalt.err (!%p7081_p8)
}
  0x50   : > { %s8620_s13 = sld [smem:[#allocation37_spill]]  ;;  %s7096_s22 = scalar_lea.vmem %s660_s20, 1024 }
  0x51   : > { %p7097_p9 = scmp.ne.s32.totalorder %s660_s20, %s7096_s22  ;;  %p7104_p12 = scmp.lt.s32.totalorder %s660_s20, %s660_s20 }
  0x52   : > { %p7105_p0 = scmp.lt.s32.totalorder %s7096_s22, %s7096_s22 }
  0x53   : > { %p7099_p10 = pnand %p7097_p9, %p7531_p7 }
  0x54   : > { %p7106_p13 = por %p7105_p0, %p7104_p12 }
  0x55   : > { %p7100_p11 = pneg %p7099_p10 }
  0x56   : > { %6241 = dma.hbm_to_vmem [thread:$0]  (!%p7521_p6), %s8620_s13, 1024, %s628_s24, [#allocation15], %s7358_s3, %s7358_s3, %s7359_s4  }
  0x57   : > { %p7107_p2 = pnand %p7106_p13, %p7100_p11 }
  0x59   : > { %7110 = shalt.err (!%p7107_p2)
}
  0x5a   : > { %s8621_s17 = sld [smem:[#allocation39_spill]]  ;;  %s7362_s24 = smov [#allocation7]  }
  0x5b   : > { %s547_s28 = sshll.u32 %s7362_s24, 4  ;;  %s7363_s23 = smov [#allocation10]   ;;  %s548_s28 = int_to_ptr.vmem [resolvable:$true] %s547_s28 }
  0x5c   : > { %s579_s18 = sshll.u32 %s7363_s23, 4  ;;  %s7122_s9 = scalar_lea.vmem %s548_s28, 1024  ;;  %s580_s18 = int_to_ptr.vmem [resolvable:$true] %s579_s18 }
  0x5d   : > { %p7123_p5 = scmp.ne.s32.totalorder %s548_s28, %s7122_s9  ;;  %p7130_p10 = scmp.lt.s32.totalorder %s548_s28, %s548_s28 }
  0x5e   : > { %p7131_p11 = scmp.lt.s32.totalorder %s7122_s9, %s7122_s9 }
  0x5f   : > { %p7125_p8 = pnand %p7123_p5, %p7531_p7 }
  0x60   : > { %6247 = dma.hbm_to_vmem [thread:$0]  (!%p7521_p6), %s8621_s17, 1024, %s660_s20, [#allocation18], %s7358_s3, %s7358_s3, %s7359_s4  }
  0x61   : > { %p7126_p9 = pneg %p7125_p8  ;;  %p7132_p12 = por %p7131_p11, %p7130_p10 }
  0x63   : > { %p7133_p0 = pnand %p7132_p12, %p7126_p9 }
  0x65   : > { %7136 = shalt.err (!%p7133_p0)
}
  0x66   : > { %s8622_s30 = sld [smem:[#allocation31_spill]]  ;;  %s7148_s21 = scalar_lea.vmem %s580_s18, 1024 }
  0x67   : > { %p7149_p13 = scmp.ne.s32.totalorder %s580_s18, %s7148_s21  ;;  %p7156_p8 = scmp.lt.s32.totalorder %s580_s18, %s580_s18 }
  0x68   : > { %p7157_p10 = scmp.lt.s32.totalorder %s7148_s21, %s7148_s21 }
  0x69   : > { %p7151_p2 = pnand %p7149_p13, %p7531_p7 }
  0x6a   : > { %p7158_p9 = por %p7157_p10, %p7156_p8 }
  0x6b   : > { %p7152_p5 = pneg %p7151_p2 }
  0x6c   : > { %6226 = dma.hbm_to_vmem [thread:$0]  (!%p7521_p6), %s8622_s30, 1024, %s548_s28, [#allocation6], %s7358_s3, %s7358_s3, %s7359_s4  }
  0x6d   : > { %p7159_p11 = pnand %p7158_p9, %p7152_p5 }
  0x6f   : > { %7162 = shalt.err (!%p7159_p11)
}
  0x70   : > { %s8623_s7 = sld [smem:[#allocation34_spill]]  ;;  %s7364_s28 = smov [#allocation13]  }
  0x71   : > { %s611_s23 = sshll.u32 %s7364_s28, 4  ;;  %s7365_s20 = smov [#allocation16]   ;;  %s612_s23 = int_to_ptr.vmem [resolvable:$true] %s611_s23 }
  0x72   : > { %s643_s22 = sshll.u32 %s7365_s20, 4  ;;  %s7174_s30 = scalar_lea.vmem %s612_s23, 1024  ;;  %s644_s22 = int_to_ptr.vmem [resolvable:$true] %s643_s22 }
  0x73   : > { %p7175_p12 = scmp.ne.s32.totalorder %s612_s23, %s7174_s30  ;;  %p7182_p2 = scmp.lt.s32.totalorder %s612_s23, %s612_s23 }
  0x74   : > { %p7183_p5 = scmp.lt.s32.totalorder %s7174_s30, %s7174_s30 }
  0x75   : > { %p7177_p0 = pnand %p7175_p12, %p7531_p7 }
  0x76   : > { %6232 = dma.hbm_to_vmem [thread:$0]  (!%p7521_p6), %s8623_s7, 1024, %s580_s18, [#allocation9], %s7358_s3, %s7358_s3, %s7359_s4  }
  0x77   : > { %p7178_p13 = pneg %p7177_p0  ;;  %p7184_p8 = por %p7183_p5, %p7182_p2 }
  0x79   : > { %p7185_p10 = pnand %p7184_p8, %p7178_p13 }
  0x7b   : > { %7188 = shalt.err (!%p7185_p10)
}
  0x7c   : > { %s8624_s11 = sld [smem:[#allocation36_spill]]  ;;  %s7200_s9 = scalar_lea.vmem %s644_s22, 1024 }
  0x7d   : > { %p7201_p9 = scmp.ne.s32.totalorder %s644_s22, %s7200_s9  ;;  %p7208_p0 = scmp.lt.s32.totalorder %s644_s22, %s644_s22 }
  0x7e   : > { %p7209_p2 = scmp.lt.s32.totalorder %s7200_s9, %s7200_s9 }
  0x7f   : > { %p7203_p11 = pnand %p7201_p9, %p7531_p7 }
  0x80   : > { %p7210_p13 = por %p7209_p2, %p7208_p0 }
  0x81   : > { %p7204_p12 = pneg %p7203_p11 }
  0x82   : > { %6238 = dma.hbm_to_vmem [thread:$0]  (!%p7521_p6), %s8624_s11, 1024, %s612_s23, [#allocation12], %s7358_s3, %s7358_s3, %s7359_s4  }
  0x83   : > { %p7211_p5 = pnand %p7210_p13, %p7204_p12 }
  0x85   : > { %7214 = shalt.err (!%p7211_p5)
}
  0x86   : > { %s8625_s15 = sld [smem:[#allocation38_spill]]  ;;  %s7366_s23 = smov [#allocation19]  }
  0x87   : > { %s675_s20 = sshll.u32 %s7366_s23, 4  ;;  %s676_s20 = int_to_ptr.vmem [resolvable:$true] %s675_s20 }
  0x88   : > { %s7226_s30 = scalar_lea.vmem %s676_s20, 7168  ;;  %p7234_p11 = scmp.lt.s32.totalorder %s676_s20, %s676_s20 }
  0x89   : > { %p7227_p8 = scmp.ne.s32.totalorder %s676_s20, %s7226_s30  ;;  %p7235_p12 = scmp.lt.s32.totalorder %s7226_s30, %s7226_s30 }
  0x8b   : > { %p7229_p10 = pnand %p7227_p8, %p7531_p7  ;;  %p7236_p0 = por %p7235_p12, %p7234_p11 }
  0x8c   : > { %6244 = dma.hbm_to_vmem [thread:$0]  (!%p7521_p6), %s8625_s15, 1024, %s644_s22, [#allocation15], %s7358_s3, %s7358_s3, %s7359_s4  }
  0x8d   : > { %p7230_p9 = pneg %p7229_p10 }
  0x8f   : > { %p7237_p2 = pnand %p7236_p0, %p7230_p9 }
  0x91   : > { %7240 = shalt.err (!%p7237_p2)
}
  0x92   : > { %s7367_s18 = smov 448   ;;  %s7368_s1 = smov 28  }
  0x93   : > { %s8626_s19 = sld [smem:[#allocation41_spill]]  ;;  %s5171_s22 = sadd.s32 4294967294, %s7353_s27  }
  0x94   : > { %s7644_s21 = sadd.s32 1, %s7353_s27   ;;  %s49_s24 = sadd.s32 1, %s7349_s26 }
  0x95   : > { %s46_s9 = ssub.s32 %s7353_s27, %s7644_s21  ;;  %p56_p13 = scmp.ne.s32.totalorder %s7349_s26, %s7345_s25 }
  0x96   : > { %p47_p7 = scmp.eq.s32.totalorder %s46_s9, 0  ;;  %p57_p5 = scmp.eq.s32.totalorder %s7353_s27, 0 }
  0x97   : > { %p62_p8 = scmp.ne.s32.totalorder %s7345_s25, %s7341_s2  ;;  %p512_p11 = scmp.eq.s32.totalorder %s5171_s22, 1 }
  0x98   : > { %s7655_s28 = scalar_select %p47_p7, %s7349_s26, %s49_s24  }
  0x99   : > { %6250 = dma.hbm_to_vmem [thread:$0]  (!%p7521_p6), %s8626_s19, 7168, %s676_s20, [#allocation18], %s7367_s18, %s7367_s18, %s7368_s1  }
  0x9a   : > { %p58_p10 = por %p57_p5, %p56_p13  ;;  %p7659_p9 = por %p8594_p1, %p62_p8 }
  0x9b   : > { %p506_p6 = scmp.eq.s32.totalorder %s7507_s29, 1  ;;  %p6269_p12 = scmp.lt.s32.totalorder %s7353_s27, 2 }
  0x9c   : > { %s8627_s5 = scalar_select %p7659_p9, 1, 0 }
  0x9d   : > { %s692_s23 = sand.u32 1, %s7349_s26   ;;  %p7666_p0 = por %p506_p6, %p56_p13 }
  0x9e   : > { %p7670_p2 = por %p512_p11, %p62_p8  ;;  %s6172_s18 = smul.u32 896, %s692_s23 }
  0x9f   : > { %s8628_s20 = scalar_select %p7666_p0, 1, 0 }
  0xa0   : > { %s8629_s30 = scalar_select %p7670_p2, 1, 0 }
  0xa1   : > { %s6173_s1 = smul.u32 14336, %s7353_s27  ;;  %p7675_p7 = pnand %p6269_p12, %p58_p10 }
  0xa2   : > { %s8631_s24 = sld [smem:[#allocation28_spill]]  ;;  %s696_s7 = scalar_lea.vmem [#allocation2], %s6172_s18 }
  0xa3   : > { %s704_s11 = sshll.u32 %s696_s7, 4  ;;  %s7686_s13 = scalar_lea.sflag [#allocation3], %s692_s23  ;;  %s7684_s11 = int_to_ptr.vmem [resolvable:$true] %s704_s11 }
  0xa4   : > { %p7243_p5 = pneg %p7675_p7 }
  0xa8   : > { %s7682_s22 = scalar_lea.hbm %s8631_s24, %s6173_s1  ;;  %s7246_s1 = scalar_lea.hbm %s8631_s24, 28672 }
  0xa9   : > { %s7241_s15 = scalar_lea.hbm %s7682_s22, 14336  ;;  %p7247_p6 = scmp.lt.s32.totalorder %s7682_s22, %s8631_s24 }
  0xaa   : > { %p7242_p13 = scmp.ne.s32.totalorder %s7682_s22, %s7241_s15  ;;  %p7248_p11 = scmp.lt.s32.totalorder %s7246_s1, %s7241_s15 }
  0xac   : > { %p7244_p8 = pnand %p7243_p5, %p7242_p13  ;;  %p7249_p12 = por %p7248_p11, %p7247_p6 }
  0xae   : > { %p7245_p10 = pneg %p7244_p8 }
  0xb0   : > { %p7250_p4 = pnand %p7249_p12, %p7245_p10 }
  0xb2   : > { %7253 = shalt.err (!%p7250_p4)
}
  0xb3   : > { %s7254_s7 = scalar_lea.vmem %s7684_s11, 14336  ;;  %s7369_s23 = smov [#allocation2]  }
  0xb4   : > { %p7255_p1 = scmp.ne.s32.totalorder %s7684_s11, %s7254_s7  ;;  %s7259_s18 = sshll.u32 %s7369_s23, 4  ;;  %s7260_s18 = int_to_ptr.vmem [resolvable:$false] %s7259_s18 }
  0xb5   : > { %s7261_s17 = scalar_lea.vmem %s7260_s18, 28672  ;;  %p7262_p8 = scmp.lt.s32.totalorder %s7684_s11, %s7260_s18 }
  0xb6   : > { %p7257_p2 = pnand %p7255_p1, %p7243_p5  ;;  %p7263_p0 = scmp.lt.s32.totalorder %s7261_s17, %s7254_s7 }
  0xb8   : > { %p7258_p13 = pneg %p7257_p2  ;;  %p7264_p9 = por %p7263_p0, %p7262_p8 }
  0xba   : > { %p7265_p3 = pnand %p7264_p9, %p7258_p13 }
  0xbc   : > { %7268 = shalt.err (!%p7265_p3)
}
  0xbd   : > { %s7370_s15 = smov 896   ;;  %s7371_s19 = smov 56  }
  0xbe   : > { %6254 = dma.hbm_to_vmem [thread:$0]  (!%p7675_p7), %s7682_s22, 14336, %s7684_s11, %s7686_s13, %s7370_s15, %s7370_s15, %s7371_s19  }
  0xbf   : > { %p8632_p1 = scmp.ne.s32.totalorder %s8614_s0, 0 }
  0xc0   : > { %s7710_s4 = sand.u32 (!%p8632_p1), 1, %s7345_s25   ;;  %p8633_p3 = scmp.ne.s32.totalorder (!%p8632_p1), %s8627_s5, 0 }
  0xc1   : > { %716 = sbr.rel (%p8632_p1) target bundleno = 2621 (0xa3d), region = 104  ;;  %s719_s9 = scalar_lea.sflag (!%p8632_p1), [#allocation3], %s7710_s4 }
  0xc2   : > { %s6174_s1 = smul.u32 (!%p8632_p1), 896, %s7710_s4 }
  0xc4   : > { %s7716_s7 = scalar_lea.vmem (!%p8632_p1), [#allocation2], %s6174_s1 }
  0xc6   : > { %7312 = dma.done.wait (%p8633_p3), %s719_s9, 14336  }
  0xc7   : > { %7314 = vsyncadd (%p8633_p3), %s719_s9, 4294952960  ;;  %p8634_p4 = scmp.eq.s32.totalorder %s7507_s29, 0 }
  0xc9   : > { %7316 = dma.done.wait (%p8634_p4), [#allocation6], 8192   ;;  %p8635_p9 = pmov %p8634_p4 }
  0xca   : > { %p8636_p0 = pmov %p8634_p4 }
  0xcb   : > { %7318 = vsyncadd (%p8635_p9), [#allocation6], 4294959104 }
  0xcc   : > { %7320 = dma.done.wait (%p8636_p0), [#allocation9], 2048   ;;  %p8637_p2 = pmov %p8636_p0 }
  0xcd   : > { %p8638_p7 = pmov %p8636_p0 }
  0xce   : > { %7322 = vsyncadd (%p8637_p2), [#allocation9], 4294965248 }
  0xcf   : > { %7324 = dma.done.wait (%p8638_p7), [#allocation12], 2048   ;;  %p8639_p5 = pmov %p8636_p0 }
  0xd0   : > { %p8640_p10 = pmov %p8636_p0 }
  0xd1   : > { %7326 = vsyncadd (%p8639_p5), [#allocation12], 4294965248 }
  0xd2   : > { %7328 = dma.done.wait (%p8640_p10), [#allocation15], 2048   ;;  %p8641_p6 = pmov %p8636_p0 }
  0xd3   : > { %p8642_p11 = pmov %p8636_p0 }
  0xd4   : > { %7330 = vsyncadd (%p8641_p6), [#allocation15], 4294965248 }
  0xd5   : > { %7332 = dma.done.wait (%p8642_p11), [#allocation18], 8192   ;;  %p8643_p12 = pmov %p8636_p0 }
  0xd6   : > { %v6332_v0 = vld [vmem:[#allocation5 + $0x78] sm:$0xff]   ;;  %v6336_v4 = vld [vmem:[#allocation5 + $0x70] sm:$0xff]   ;;  %v6340_v8 = vld [vmem:[#allocation5 + $0x68] sm:$0xff]   ;;  %s8644_s0 = sld [smem:[#allocation30_spill]]  ;;  %s8156_s9 = scalar_lea.vmem [#allocation20], %s6174_s1 }
  0xd7   : > { %7334 = vsyncadd (%p8643_p12), [#allocation18], 4294959104  ;;  %v6333_v1 = vld [vmem:[#allocation5 + $0x38] sm:$0xff]   ;;  %5500 = vmatprep.subr.bf16.mxu0 %v6332_v0  ;;  %v6337_v5 = vld [vmem:[#allocation5 + $0x30] sm:$0xff]   ;;  %s8645_s22 = sld [smem:[#allocation32_spill]]  ;;  %s6175_s11 = smul.u32 14336, %s7507_s29 }
  0xd8   : > { %v6334_v2 = vld [vmem:[#allocation5 + $0xf8] sm:$0xff]   ;;  %5501 = vmatpush3.bf16.msra.mxu0 %v6333_v1  ;;  %v6338_v6 = vld [vmem:[#allocation5 + $0xf0] sm:$0xff]   ;;  %v6341_v9 = vld [vmem:[#allocation5 + $0x28] sm:$0xff]   ;;  %s8646_s18 = sld [smem:[#allocation40_spill]]  ;;  %s5003_s13 = sshll.u32 %s8156_s9, 4  ;;  %s8524_s13 = int_to_ptr.vmem [resolvable:$true] %s5003_s13 }
  0xd9   : > { %v6335_v3 = vld [vmem:[#allocation5 + $0xb8] sm:$0xff]   ;;  %5564 = vmatprep.subr.bf16.mxu1 %v6334_v2  ;;  %5502 = vmatprep.subr.bf16.mxu0 %v6336_v4  ;;  %v6339_v7 = vld [vmem:[#allocation5 + $0xb0] sm:$0xff]   ;;  %v6342_v10 = vld [vmem:[#allocation5 + $0xe8] sm:$0xff]   ;;  %s8647_s19 = sld [smem:[#allocation42_spill]]  ;;  %s4989_s29 = scalar_lea.sflag [#allocation4], %s7710_s4 }
  0xda   : > { %5565 = vmatpush3.bf16.msra.mxu1 %v6335_v3  ;;  %v6343_v11 = vld [vmem:[#allocation5 + $0xa8] sm:$0xff]   ;;  %v6344_v12 = vld [vmem:[#allocation5 + $0x60] sm:$0xff]   ;;  %v6348_v16 = vld [vmem:[#allocation5 + $0x58] sm:$0xff]   ;;  %s8648_s3 = sld [smem:[#allocation43_spill]]  ;;  %s7269_s23 = scalar_lea.vmem %s8524_s13, 14336 }
  0xdb   : > { %5566 = vmatprep.subr.bf16.mxu1 %v6338_v6  ;;  %v6345_v13 = vld [vmem:[#allocation5 + $0x20] sm:$0xff]   ;;  %v6349_v17 = vld [vmem:[#allocation5 + $0x18] sm:$0xff]   ;;  %v6352_v20 = vld [vmem:[#allocation5 + $0x50] sm:$0xff]   ;;  %p7270_p13 = scmp.ne.s32.totalorder %s8524_s13, %s7269_s23  ;;  %p8649_p8 = scmp.ne.s32.totalorder %s8628_s20, 0 }
  0xdc   : > { %5503 = vmatpush3.bf16.msra.mxu0 %v6337_v5  ;;  %v6346_v14 = vld [vmem:[#allocation5 + $0xe0] sm:$0xff]   ;;  %v6350_v18 = vld [vmem:[#allocation5 + $0xd8] sm:$0xff]   ;;  %v6353_v21 = vld [vmem:[#allocation5 + $0x10] sm:$0xff]  }
  0xdd   : > { %5504 = vmatprep.subr.bf16.mxu0 %v6340_v8  ;;  %v6347_v15 = vld [vmem:[#allocation5 + $0xa0] sm:$0xff]   ;;  %v6351_v19 = vld [vmem:[#allocation5 + $0x98] sm:$0xff]   ;;  %v6354_v22 = vld [vmem:[#allocation5 + $0xd0] sm:$0xff]   ;;  %p7271_p1 = pnand %p7270_p13, %p8649_p8 }
  0xde   : > { %5567 = vmatpush3.bf16.msra.mxu1 %v6339_v7  ;;  %v6355_v23 = vld [vmem:[#allocation5 + $0x90] sm:$0xff]   ;;  %v6356_v24 = vld [vmem:[#allocation5 + $0x48] sm:$0xff]   ;;  %v6360_v28 = vld [vmem:[#allocation5 + $0x40] sm:$0xff]  }
  0xdf   : > { %5568 = vmatprep.subr.bf16.mxu1 %v6342_v10  ;;  %v6357_v25 = vld [vmem:[#allocation5 + $0x8] sm:$0xff]   ;;  %v6361_v29 = vld [vmem:[#allocation5] sm:$0xff]   ;;  %v831_v36 = vld [vmem:[%s7716_s7 + $0x38] sm:$0xff]  ;;  %p7272_p3 = pneg %p7271_p1 }
  0xe0   : > { %5505 = vmatpush3.bf16.msra.mxu0 %v6341_v9  ;;  %v6358_v26 = vld [vmem:[#allocation5 + $0xc8] sm:$0xff]   ;;  %v6362_v30 = vld [vmem:[#allocation5 + $0xc0] sm:$0xff]   ;;  %v6364_v38 = vld [vmem:[#allocation5 + $0x178] sm:$0xff]  }
  0xe1   : > { %5506 = vmatprep.subr.bf16.mxu0 %v6344_v12  ;;  %v6359_v27 = vld [vmem:[#allocation5 + $0x88] sm:$0xff]   ;;  %v832_v32 = vld [vmem:[%s7716_s7 + $0x40] sm:$0xff]  ;;  %v827_v39 = vld [vmem:[%s7716_s7 + $0x18] sm:$0xff] }
  0xe2   : > { %5569 = vmatpush3.bf16.msra.mxu1 %v6343_v11  ;;  %v825_v31 = vld [vmem:[%s7716_s7 + $0x8] sm:$0xff]  ;;  %v6363_v34 = vld [vmem:[#allocation5 + $0x80] sm:$0xff]   ;;  %v834_v40 = vld [vmem:[%s7716_s7 + $0x50] sm:$0xff] }
  0xe3   : > { %5570 = vmatprep.subr.bf16.mxu1 %v6346_v14  ;;  %v1050_v33 = vpack.c.bf16 %v832_v32, %v825_v31  ;;  %v824_v35 = vld [vmem:[%s7716_s7] sm:$0xff]  ;;  %v1052_v41 = vpack.c.bf16 %v834_v40, %v827_v39  ;;  %v6365_v42 = vld [vmem:[#allocation5 + $0x138] sm:$0xff]   ;;  %v826_v43 = vld [vmem:[%s7716_s7 + $0x10] sm:$0xff] }
  0xe4   : > { %5507 = vmatpush3.bf16.msra.mxu0 %v6345_v13  ;;  %v1049_v37 = vpack.c.bf16 %v831_v36, %v824_v35  ;;  %v833_v44 = vld [vmem:[%s7716_s7 + $0x48] sm:$0xff]  ;;  %v839_v45 = vld [vmem:[%s7716_s7 + $0x78] sm:$0xff]  ;;  %v846_v47 = vld [vmem:[%s7716_s7 + $0xb0] sm:$0xff] }
  0xe5   : > { %5508 = vmatprep.subr.bf16.mxu0 %v6348_v16  ;;  %1479 = vmatprep.mubr.bf16.mxu0 %v1050_v33  ;;  %v1051_v46 = vpack.c.bf16 %v833_v44, %v826_v43  ;;  %v838_v48 = vld [vmem:[%s7716_s7 + $0x70] sm:$0xff]  ;;  %v845_v49 = vld [vmem:[%s7716_s7 + $0xa8] sm:$0xff]  ;;  %v1057_v50 = vpack.c.bf16 %v846_v47, %v839_v45  ;;  %v848_v53 = vld [vmem:[%s7716_s7 + $0xc0] sm:$0xff] }
  0xe6   : > { %5571 = vmatpush3.bf16.msra.mxu1 %v6347_v15  ;;  %1576 = vmatprep.mubr.bf16.mxu1 %v1052_v41  ;;  %v6366_v51 = vld [vmem:[#allocation5 + $0x170] sm:$0xff]   ;;  %v841_v52 = vld [vmem:[%s7716_s7 + $0x88] sm:$0xff]  ;;  %v1056_v54 = vpack.c.bf16 %v845_v49, %v838_v48  ;;  %v840_v57 = vld [vmem:[%s7716_s7 + $0x80] sm:$0xff] }
  0xe7   : > { %5572 = vmatprep.subr.bf16.mxu1 %v6350_v18  ;;  %v1059_v55 = vpack.c.bf16 %v848_v53, %v841_v52  ;;  %v6367_v56 = vld [vmem:[#allocation5 + $0x130] sm:$0xff]   ;;  %v847_v58 = vld [vmem:[%s7716_s7 + $0xb8] sm:$0xff]  ;;  %v853_v60 = vld [vmem:[%s7716_s7 + $0xe8] sm:$0xff] }
  0xe8   : > { %5509 = vmatpush3.bf16.msra.mxu0 %v6349_v17  ;;  %v6368_v59 = vld [vmem:[#allocation5 + $0x1b8] sm:$0xff]   ;;  %v860_v61 = vld [vmem:[%s7716_s7 + $0x120] sm:$0xff]  ;;  %v1058_v62 = vpack.c.bf16 %v847_v58, %v840_v57  ;;  %v6369_v2 = vld [vmem:[#allocation5 + $0x168] sm:$0xff]  }
  0xe9   : > { %5510 = vmatprep.subr.bf16.mxu0 %v6352_v20  ;;  %v1064_v63 = vpack.c.bf16 %v860_v61, %v853_v60  ;;  %v852_v0 = vld [vmem:[%s7716_s7 + $0xe0] sm:$0xff]  ;;  %v859_v1 = vld [vmem:[%s7716_s7 + $0x118] sm:$0xff]  ;;  %v862_v4 = vld [vmem:[%s7716_s7 + $0x130] sm:$0xff] }
  0xea   : > { %5573 = vmatpush3.bf16.msra.mxu1 %v6351_v19  ;;  %v855_v3 = vld [vmem:[%s7716_s7 + $0xf8] sm:$0xff]  ;;  %v6370_v6 = vld [vmem:[#allocation5 + $0x128] sm:$0xff]   ;;  %v854_v7 = vld [vmem:[%s7716_s7 + $0xf0] sm:$0xff]  ;;  %v1063_v9 = vpack.c.bf16 %v859_v1, %v852_v0 }
  0xeb   : > { %5574 = vmatprep.subr.bf16.mxu1 %v6354_v22  ;;  %v1066_v5 = vpack.c.bf16 %v862_v4, %v855_v3  ;;  %v6371_v8 = vld [vmem:[#allocation5 + $0x1b0] sm:$0xff]   ;;  %v861_v10 = vld [vmem:[%s7716_s7 + $0x128] sm:$0xff]  ;;  %v867_v11 = vld [vmem:[%s7716_s7 + $0x158] sm:$0xff] }
  0xec   : > { %5511 = vmatpush3.bf16.msra.mxu0 %v6353_v21  ;;  %v874_v12 = vld [vmem:[%s7716_s7 + $0x190] sm:$0xff]  ;;  %v6372_v14 = vld [vmem:[#allocation5 + $0x160] sm:$0xff]   ;;  %v869_v15 = vld [vmem:[%s7716_s7 + $0x168] sm:$0xff]  ;;  %v1065_v17 = vpack.c.bf16 %v861_v10, %v854_v7 }
  0xed   : > { %5512 = vmatprep.subr.bf16.mxu0 %v6356_v24  ;;  %v1071_v13 = vpack.c.bf16 %v874_v12, %v867_v11  ;;  %v876_v16 = vld [vmem:[%s7716_s7 + $0x1a0] sm:$0xff]  ;;  %v866_v19 = vld [vmem:[%s7716_s7 + $0x150] sm:$0xff]  ;;  %v873_v21 = vld [vmem:[%s7716_s7 + $0x188] sm:$0xff] }
  0xee   : > { %5575 = vmatpush3.bf16.msra.mxu1 %v6355_v23  ;;  %v6373_v18 = vld [vmem:[#allocation5 + $0x120] sm:$0xff]   ;;  %v1073_v20 = vpack.c.bf16 %v876_v16, %v869_v15  ;;  %v6374_v22 = vld [vmem:[#allocation5 + $0x1a8] sm:$0xff]   ;;  %v890_v31 = vld [vmem:[%s7716_s7 + $0x210] sm:$0xff] }
  0xef   : > { %5576 = vmatprep.subr.bf16.mxu1 %v6358_v26  ;;  %v868_v23 = vld [vmem:[%s7716_s7 + $0x160] sm:$0xff]  ;;  %v881_v24 = vld [vmem:[%s7716_s7 + $0x1c8] sm:$0xff]  ;;  %v6375_v26 = vld [vmem:[#allocation5 + $0x158] sm:$0xff]  }
  0xf0   : > { %5513 = vmatpush3.bf16.msra.mxu0 %v6357_v25  ;;  %v888_v25 = vld [vmem:[%s7716_s7 + $0x200] sm:$0xff]  ;;  %v6376_v32 = vld [vmem:[#allocation5 + $0x118] sm:$0xff]   ;;  %v6378_v39 = vld [vmem:[#allocation5 + $0x150] sm:$0xff]  }
  0xf1   : > { %5514 = vmatprep.subr.bf16.mxu0 %v6360_v28  ;;  %v875_v28 = vld [vmem:[%s7716_s7 + $0x198] sm:$0xff]  ;;  %v880_v35 = vld [vmem:[%s7716_s7 + $0x1c0] sm:$0xff]  ;;  %v902_v40 = vld [vmem:[%s7716_s7 + $0x270] sm:$0xff] }
  0xf2   : > { %5577 = vmatpush3.bf16.msra.mxu1 %v6359_v27  ;;  %v1070_v27 = vpack.c.bf16 %v873_v21, %v866_v19  ;;  %v1072_v33 = vpack.c.bf16 %v875_v28, %v868_v23  ;;  %v887_v36 = vld [vmem:[%s7716_s7 + $0x1f8] sm:$0xff]  ;;  %v882_v41 = vld [vmem:[%s7716_s7 + $0x1d0] sm:$0xff]  ;;  %v897_v47 = vld [vmem:[%s7716_s7 + $0x248] sm:$0xff] }
  0xf3   : > { %5578 = vmatprep.subr.bf16.mxu1 %v6362_v30  ;;  %v1078_v30 = vpack.c.bf16 %v888_v25, %v881_v24  ;;  %v6379_v43 = vld [vmem:[#allocation5 + $0x110] sm:$0xff]   ;;  %v1077_v44 = vpack.c.bf16 %v887_v36, %v880_v35  ;;  %v6380_v45 = vld [vmem:[#allocation5 + $0x198] sm:$0xff]   ;;  %v904_v48 = vld [vmem:[%s7716_s7 + $0x280] sm:$0xff] }
  0xf4   : > { %5515 = vmatpush3.bf16.msra.mxu0 %v6361_v29  ;;  %v883_v29 = vld [vmem:[%s7716_s7 + $0x1d8] sm:$0xff]  ;;  %v1087_v52 = vpack.c.bf16 %v904_v48, %v897_v47  ;;  %v6382_v53 = vld [vmem:[#allocation5 + $0x108] sm:$0xff]   ;;  %v6383_v57 = vld [vmem:[#allocation5 + $0x190] sm:$0xff]  }
  0xf5   : > { %5628 = vmatprep.subr.bf16.mxu0 %v6364_v38  ;;  %v895_v38 = vld [vmem:[%s7716_s7 + $0x238] sm:$0xff]  ;;  %v896_v58 = vld [vmem:[%s7716_s7 + $0x240] sm:$0xff]  ;;  %v918_v0 = vld [vmem:[%s7716_s7 + $0x2f0] sm:$0xff] }
  0xf6   : > { %5579 = vmatpush3.bf16.msra.mxu1 %v6363_v34  ;;  %v6377_v34 = vld [vmem:[#allocation5 + $0x1a0] sm:$0xff]   ;;  %v923_v7 = vld [vmem:[%s7716_s7 + $0x318] sm:$0xff]  ;;  %v910_v11 = vld [vmem:[%s7716_s7 + $0x2b0] sm:$0xff] }
  0xf7   : > { %1480 = vmatmul.mubr.bf16.vlgmr.msra.gmra.mxu0 %v1049_v37  ;;  %5852 = vmatprep.subr.bf16.mxu1 %v6368_v59  ;;  %v1080_v37 = vpack.c.bf16 %v890_v31, %v883_v29  ;;  %v6384_v61 = vld [vmem:[#allocation5 + $0x140] sm:$0xff]   ;;  %v917_v12 = vld [vmem:[%s7716_s7 + $0x2e8] sm:$0xff]  ;;  %v931_v24 = vld [vmem:[%s7716_s7 + $0x358] sm:$0xff] }
  0xf8   : > { %5629 = vmatpush3.bf16.msra.mxu0 %v6365_v42  ;;  %1487 = vmatprep.mubr.bf16.mxu0 %v1057_v50  ;;  %v889_v42 = vld [vmem:[%s7716_s7 + $0x208] sm:$0xff]  ;;  %v894_v50 = vld [vmem:[%s7716_s7 + $0x230] sm:$0xff]  ;;  %v6385_v1 = vld [vmem:[#allocation5 + $0x100] sm:$0xff]   ;;  %v1093_v16 = vpack.c.bf16 %v917_v12, %v910_v11 }
  0xf9   : > { %1577 = vmatmul.mubr.bf16.vlgmr.msra.gmra.mxu1 %v1051_v46  ;;  %5630 = vmatprep.subr.bf16.mxu0 %v6366_v51  ;;  %v1085_v46 = vpack.c.bf16 %v902_v40, %v895_v38  ;;  %v1079_v49 = vpack.c.bf16 %v889_v42, %v882_v41  ;;  %v6381_v51 = vld [vmem:[#allocation5 + $0x148] sm:$0xff]   ;;  %v908_v3 = vld [vmem:[%s7716_s7 + $0x2a0] sm:$0xff]  ;;  %v851_v35 = vld [vmem:[%s7716_s7 + $0xd8] sm:$0xff] }
  0xfa   : > { %1584 = vmatprep.mubr.bf16.mxu1 %v1059_v55  ;;  %5853 = vmatpush3.bf16.msra.mxu1 %v6368_v59  ;;  %v909_v55 = vld [vmem:[%s7716_s7 + $0x2a8] sm:$0xff]  ;;  %v903_v59 = vld [vmem:[%s7716_s7 + $0x278] sm:$0xff]  ;;  %v932_v15 = vld [vmem:[%s7716_s7 + $0x360] sm:$0xff] }
  0xfb   : > { %5854 = vmatprep.subr.bf16.mxu1 %v6371_v8  ;;  %v929_v19 = vld [vmem:[%s7716_s7 + $0x348] sm:$0xff]  ;;  %v836_v21 = vld [vmem:[%s7716_s7 + $0x60] sm:$0xff]  ;;  %v858_v36 = vld [vmem:[%s7716_s7 + $0x110] sm:$0xff] }
  0xfc   : > { %5631 = vmatpush3.bf16.msra.mxu0 %v6367_v56  ;;  %v916_v56 = vld [vmem:[%s7716_s7 + $0x2e0] sm:$0xff]  ;;  %v842_v41 = vld [vmem:[%s7716_s7 + $0x90] sm:$0xff]  ;;  %v849_v42 = vld [vmem:[%s7716_s7 + $0xc8] sm:$0xff] }
  0xfd   : > { %5632 = vmatprep.subr.bf16.mxu0 %v6369_v2  ;;  %v1086_v2 = vpack.c.bf16 %v903_v59, %v896_v58  ;;  %v924_v23 = vld [vmem:[%s7716_s7 + $0x320] sm:$0xff]  ;;  %v879_v47 = vld [vmem:[%s7716_s7 + $0x1b8] sm:$0xff]  ;;  %v886_v48 = vld [vmem:[%s7716_s7 + $0x1f0] sm:$0xff] }
  0xfe   : > { %5855 = vmatpush3.bf16.msra.mxu1 %v6371_v8  ;;  %v930_v8 = vld [vmem:[%s7716_s7 + $0x350] sm:$0xff]  ;;  %v1100_v28 = vpack.c.bf16 %v931_v24, %v924_v23  ;;  %v828_v29 = vld [vmem:[%s7716_s7 + $0x20] sm:$0xff]  ;;  %v907_v59 = vld [vmem:[%s7716_s7 + $0x298] sm:$0xff] }
  0xff   : > { %1488 = vmatmul.mubr.bf16.gmra.mxu0 %v1056_v54  ;;  %5856 = vmatprep.subr.bf16.mxu1 %v6374_v22  ;;  %v901_v54 = vld [vmem:[%s7716_s7 + $0x268] sm:$0xff]  ;;  %v900_v58 = vld [vmem:[%s7716_s7 + $0x260] sm:$0xff]  ;;  %v891_v11 = vld [vmem:[%s7716_s7 + $0x218] sm:$0xff] }
 0x100   : > { %1495 = vmatprep.mubr.bf16.mxu0 %v1064_v63  ;;  %5633 = vmatpush3.bf16.msra.mxu0 %v6370_v6  ;;  %v1084_v60 = vpack.c.bf16 %v901_v54, %v894_v50  ;;  %v911_v63 = vld [vmem:[%s7716_s7 + $0x2b8] sm:$0xff]  ;;  %v1060_v50 = vpack.c.bf16 %v849_v42, %v842_v41  ;;  %v912_v23 = vld [vmem:[%s7716_s7 + $0x2c0] sm:$0xff] }
 0x101   : > { %1585 = vmatmul.mubr.bf16.gmra.mxu1 %v1058_v62  ;;  %5634 = vmatprep.subr.bf16.mxu0 %v6372_v14  ;;  %v1092_v62 = vpack.c.bf16 %v916_v56, %v909_v55  ;;  %v1094_v4 = vpack.c.bf16 %v918_v0, %v911_v63  ;;  %v915_v6 = vld [vmem:[%s7716_s7 + $0x2d8] sm:$0xff]  ;;  %v925_v14 = vld [vmem:[%s7716_s7 + $0x328] sm:$0xff]  ;;  %v878_v56 = vld [vmem:[%s7716_s7 + $0x1b0] sm:$0xff] }
 0x102   : > { %1592 = vmatprep.mubr.bf16.mxu1 %v1066_v5  ;;  %5857 = vmatpush3.bf16.msra.mxu1 %v6374_v22  ;;  %v6386_v5 = vld [vmem:[#allocation5 + $0x188] sm:$0xff]   ;;  %v1091_v10 = vpack.c.bf16 %v915_v6, %v908_v3  ;;  %v871_v55 = vld [vmem:[%s7716_s7 + $0x178] sm:$0xff]  ;;  %v870_v0 = vld [vmem:[%s7716_s7 + $0x170] sm:$0xff] }
 0x103   : > { %5858 = vmatprep.subr.bf16.mxu1 %v6377_v34  ;;  %v1075_v63 = vpack.c.bf16 %v878_v56, %v871_v55  ;;  %v885_v3 = vld [vmem:[%s7716_s7 + $0x1e8] sm:$0xff]  ;;  %v928_v6 = vld [vmem:[%s7716_s7 + $0x340] sm:$0xff]  ;;  %v919_v24 = vld [vmem:[%s7716_s7 + $0x2f8] sm:$0xff] }
 0x104   : > { %5635 = vmatpush3.bf16.msra.mxu0 %v6373_v18  ;;  %v922_v18 = vld [vmem:[%s7716_s7 + $0x310] sm:$0xff]  ;;  %v7857_v41 = vld [vmem:[%s8644_s0] ss:$0 sm:$0xff] }
 0x105   : > { %5636 = vmatprep.subr.bf16.mxu0 %v6375_v26  ;;  %v1098_v22 = vpack.c.bf16 %v929_v19, %v922_v18  ;;  %v830_v26 = vld [vmem:[%s7716_s7 + $0x30] sm:$0xff]  ;;  %v905_v18 = vld [vmem:[%s7716_s7 + $0x288] sm:$0xff] }
 0x106   : > { %5859 = vmatpush3.bf16.msra.mxu1 %v6377_v34  ;;  %v844_v34 = vld [vmem:[%s7716_s7 + $0xa0] sm:$0xff]  ;;  %v913_v19 = vld [vmem:[%s7716_s7 + $0x2c8] sm:$0xff]  ;;  %v6397_v55 = vld [vmem:[#allocation8 + $0x30] sm:$0xff]  }
 0x107   : > { %1496 = vmatmul.mubr.bf16.gmra.mxu0 %v1063_v9  ;;  %5860 = vmatprep.subr.bf16.mxu1 %v6380_v45  ;;  %v6387_v9 = vld [vmem:[#allocation5 + $0x180] sm:$0xff]   ;;  %v1062_v40 = vpack.c.bf16 %v851_v35, %v844_v34  ;;  %v6390_v34 = vld [vmem:[#allocation7 + $0x28] sm:$0xff]  }
 0x108   : > { %1503 = vmatprep.mubr.bf16.mxu0 %v1071_v13  ;;  %5637 = vmatpush3.bf16.msra.mxu0 %v6376_v32  ;;  %v1099_v13 = vpack.c.bf16 %v930_v8, %v923_v7  ;;  %v843_v32 = vld [vmem:[%s7716_s7 + $0x98] sm:$0xff]  ;;  %v6391_v35 = vld [vmem:[#allocation7 + $0x20] sm:$0xff]  }
 0x109   : > { %1593 = vmatmul.mubr.bf16.gmra.mxu1 %v1065_v17  ;;  %5638 = vmatprep.subr.bf16.mxu0 %v6378_v39  ;;  %v1101_v17 = vpack.c.bf16 %v932_v15, %v925_v14  ;;  %v935_v7 = vld [vmem:[%s7716_s7 + $0x378] sm:$0xff]  ;;  %v906_v14 = vld [vmem:[%s7716_s7 + $0x290] sm:$0xff] }
 0x10a   : > { %1600 = vmatprep.mubr.bf16.mxu1 %v1073_v20  ;;  %5861 = vmatpush3.bf16.msra.mxu1 %v6380_v45  ;;  %v829_v20 = vld [vmem:[%s7716_s7 + $0x28] sm:$0xff]  ;;  %v1104_v12 = vpack.c.bf16 %v935_v7, %v928_v6 }
 0x10b   : > { %5862 = vmatprep.subr.bf16.mxu1 %v6383_v57  ;;  %v1054_v25 = vpack.c.bf16 %v836_v21, %v829_v20  ;;  %v920_v20 = vld [vmem:[%s7716_s7 + $0x300] sm:$0xff] }
 0x10c   : > { %5639 = vmatpush3.bf16.msra.mxu0 %v6379_v43  ;;  %v857_v43 = vld [vmem:[%s7716_s7 + $0x108] sm:$0xff] }
 0x10d   : > { %5640 = vmatprep.subr.bf16.mxu0 %v6381_v51 }
 0x10e   : > { %5863 = vmatpush3.bf16.msra.mxu1 %v6383_v57 }
 0x10f   : > { %1504 = vmatmul.mubr.bf16.gmra.mxu0 %v1070_v27  ;;  %5864 = vmatprep.subr.bf16.mxu1 %v6386_v5  ;;  %v837_v27 = vld [vmem:[%s7716_s7 + $0x68] sm:$0xff] }
 0x110   : > { %1511 = vmatprep.mubr.bf16.mxu0 %v1078_v30  ;;  %5641 = vmatpush3.bf16.msra.mxu0 %v6382_v53  ;;  %v835_v30 = vld [vmem:[%s7716_s7 + $0x58] sm:$0xff]  ;;  %v1055_v31 = vpack.c.bf16 %v837_v27, %v830_v26  ;;  %v934_v26 = vld [vmem:[%s7716_s7 + $0x370] sm:$0xff]  ;;  %v1095_v27 = vpack.c.bf16 %v919_v24, %v912_v23 }
 0x111   : > { %1601 = vmatmul.mubr.bf16.gmra.mxu1 %v1072_v33  ;;  %5642 = vmatprep.subr.bf16.mxu0 %v6384_v61  ;;  %v850_v33 = vld [vmem:[%s7716_s7 + $0xd0] sm:$0xff]  ;;  %v1053_v38 = vpack.c.bf16 %v835_v30, %v828_v29  ;;  %v863_v53 = vld [vmem:[%s7716_s7 + $0x138] sm:$0xff]  ;;  %v921_v61 = vld [vmem:[%s7716_s7 + $0x308] sm:$0xff] }
 0x112   : > { %1608 = vmatprep.mubr.bf16.mxu1 %v1080_v37  ;;  %5865 = vmatpush3.bf16.msra.mxu1 %v6386_v5  ;;  %v865_v37 = vld [vmem:[%s7716_s7 + $0x148] sm:$0xff]  ;;  %v1061_v39 = vpack.c.bf16 %v850_v33, %v843_v32  ;;  %v926_v29 = vld [vmem:[%s7716_s7 + $0x330] sm:$0xff]  ;;  %v6388_v32 = vld [vmem:[#allocation7 + $0x38] sm:$0xff]  }
 0x113   : > { %5866 = vmatprep.subr.bf16.mxu1 %v6387_v9  ;;  %v1069_v45 = vpack.c.bf16 %v865_v37, %v858_v36  ;;  %v933_v30 = vld [vmem:[%s7716_s7 + $0x368] sm:$0xff]  ;;  %v6389_v33 = vld [vmem:[#allocation7 + $0x30] sm:$0xff]   ;;  %v6392_v36 = vld [vmem:[#allocation7 + $0x18] sm:$0xff]  }
 0x114   : > { %5643 = vmatpush3.bf16.msra.mxu0 %v6385_v1  ;;  %v877_v1 = vld [vmem:[%s7716_s7 + $0x1a8] sm:$0xff]  ;;  %v6393_v37 = vld [vmem:[#allocation7 + $0x10] sm:$0xff]  }
 0x115   : > { %v1074_v8 = vpack.c.bf16 %v877_v1, %v870_v0 }
 0x116   : > { %5867 = vmatpush3.bf16.msra.mxu1 %v6387_v9 }
 0x117   : > { %1512 = vmatmul.mubr.bf16.gmra.mxu0 %v1077_v44  ;;  %v864_v44 = vld [vmem:[%s7716_s7 + $0x140] sm:$0xff]  ;;  %5884 = vmatprep.subr.bf16.mxu1 %v6388_v32 }
 0x118   : > { %1519 = vmatprep.mubr.bf16.mxu0 %v1085_v46  ;;  %v872_v46 = vld [vmem:[%s7716_s7 + $0x180] sm:$0xff]  ;;  %v1068_v51 = vpack.c.bf16 %v864_v44, %v857_v43 }
 0x119   : > { %1609 = vmatmul.mubr.bf16.gmra.mxu1 %v1079_v49  ;;  %v893_v49 = vld [vmem:[%s7716_s7 + $0x228] sm:$0xff]  ;;  %v1076_v54 = vpack.c.bf16 %v879_v47, %v872_v46 }
 0x11a   : > { %1616 = vmatprep.mubr.bf16.mxu1 %v1087_v52  ;;  %v856_v52 = vld [vmem:[%s7716_s7 + $0x100] sm:$0xff]  ;;  %v1083_v57 = vpack.c.bf16 %v893_v49, %v886_v48 }
 0x11f   : > { %1520 = vmatmul.mubr.bf16.gmra.mxu0 %v1084_v60  ;;  %v914_v60 = vld [vmem:[%s7716_s7 + $0x2d0] sm:$0xff] }
 0x120   : > { %1527 = vmatprep.mubr.bf16.mxu0 %v1092_v62  ;;  %v1067_v62 = vpack.c.bf16 %v863_v53, %v856_v52  ;;  %v1097_v5 = vpack.c.bf16 %v921_v61, %v914_v60 }
 0x121   : > { %1617 = vmatmul.mubr.bf16.gmra.mxu1 %v1086_v2  ;;  %v1090_v2 = vpack.c.bf16 %v907_v59, %v900_v58 }
 0x122   : > { %1624 = vmatprep.mubr.bf16.mxu1 %v1094_v4  ;;  %v892_v4 = vld [vmem:[%s7716_s7 + $0x220] sm:$0xff] }
 0x123   : > { %v1082_v9 = vpack.c.bf16 %v892_v4, %v885_v3 }
 0x127   : > { %1528 = vmatmul.mubr.bf16.gmra.mxu0 %v1091_v10  ;;  %v884_v10 = vld [vmem:[%s7716_s7 + $0x1e0] sm:$0xff] }
 0x128   : > { %1535 = vmatprep.mubr.bf16.mxu0 %v1099_v13  ;;  %v899_v13 = vld [vmem:[%s7716_s7 + $0x258] sm:$0xff]  ;;  %v1081_v15 = vpack.c.bf16 %v891_v11, %v884_v10 }
 0x129   : > { %1625 = vmatmul.mubr.bf16.gmra.mxu1 %v1093_v16  ;;  %v1089_v16 = vpack.c.bf16 %v906_v14, %v899_v13 }
 0x12a   : > { %1632 = vmatprep.mubr.bf16.mxu1 %v1101_v17  ;;  %v898_v17 = vld [vmem:[%s7716_s7 + $0x250] sm:$0xff] }
 0x12b   : > { %v1088_v21 = vpack.c.bf16 %v905_v18, %v898_v17 }
 0x12f   : > { %1536 = vmatmul.mubr.bf16.gmra.mxu0 %v1098_v22  ;;  %v1096_v22 = vpack.c.bf16 %v920_v20, %v913_v19  ;;  %v6401_v19 = vld [vmem:[#allocation8 + $0x10] sm:$0xff]  }
 0x130   : > { %1673 = vmatprep.mubr.bf16.mxu0 %v1054_v25  ;;  %v927_v25 = vld [vmem:[%s7716_s7 + $0x338] sm:$0xff] }
 0x131   : > { %1633 = vmatmul.mubr.bf16.gmra.mxu1 %v1100_v28  ;;  %v1103_v28 = vpack.c.bf16 %v934_v26, %v927_v25  ;;  %v6402_v26 = vld [vmem:[#allocation8 + $0x8] sm:$0xff]  }
 0x132   : > { %5868 = vmatprep.mubr.bf16.mxu1 %v1055_v31  ;;  %v1102_v31 = vpack.c.bf16 %v933_v30, %v926_v29 }
 0x137   : > { %1674 = vmatmul.mubr.bf16.vlgmr.msra.gmra.mxu0 %v1053_v38  ;;  %v6394_v38 = vld [vmem:[#allocation7 + $0x8] sm:$0xff]  }
 0x138   : > { %1681 = vmatprep.mubr.bf16.mxu0 %v1061_v39  ;;  %v6395_v39 = vld [vmem:[#allocation7] sm:$0xff]  }
 0x139   : > { %5869 = vmatmul.mubr.bf16.vlgmr.msra.gmra.mxu1 %v1062_v40 }
 0x13a   : > { %5872 = vmatprep.mubr.bf16.mxu1 %v1069_v45  ;;  %5885 = vmatpush3.bf16.msra.mxu1 %v6388_v32 }
 0x13b   : > { %5886 = vmatprep.subr.bf16.mxu1 %v6389_v33 }
 0x13e   : > { %5887 = vmatpush3.bf16.msra.mxu1 %v6389_v33 }
 0x13f   : > { %1682 = vmatmul.mubr.bf16.gmra.mxu0 %v1060_v50  ;;  %5888 = vmatprep.subr.bf16.mxu1 %v6390_v34 }
 0x140   : > { %1689 = vmatprep.mubr.bf16.mxu0 %v1068_v51 }
 0x141   : > { %5873 = vmatmul.mubr.bf16.gmra.mxu1 %v1076_v54  ;;  %v6396_v54 = vld [vmem:[#allocation8 + $0x38] sm:$0xff]  }
 0x142   : > { %5876 = vmatprep.mubr.bf16.mxu1 %v1083_v57  ;;  %5889 = vmatpush3.bf16.msra.mxu1 %v6390_v34 }
 0x143   : > { %5890 = vmatprep.subr.bf16.mxu1 %v6391_v35  ;;  %5916 = vmatprep.subr.bf16.mxu0 %v6396_v54 }
 0x144   : > { %5917 = vmatpush3.bf16.msra.mxu0 %v6396_v54 }
 0x145   : > { %5918 = vmatprep.subr.bf16.mxu0 %v6397_v55 }
 0x146   : > { %5891 = vmatpush3.bf16.msra.mxu1 %v6391_v35 }
 0x147   : > { %1690 = vmatmul.mubr.bf16.gmra.mxu0 %v1067_v62  ;;  %5892 = vmatprep.subr.bf16.mxu1 %v6392_v36  ;;  %v6398_v62 = vld [vmem:[#allocation8 + $0x28] sm:$0xff]  }
 0x148   : > { %1697 = vmatprep.mubr.bf16.mxu0 %v1075_v63  ;;  %5919 = vmatpush3.bf16.msra.mxu0 %v6397_v55 }
 0x149   : > { %5877 = vmatmul.mubr.bf16.gmra.mxu1 %v1090_v2  ;;  %5920 = vmatprep.subr.bf16.mxu0 %v6398_v62 }
 0x14a   : > { %5880 = vmatprep.mubr.bf16.mxu1 %v1097_v5  ;;  %5893 = vmatpush3.bf16.msra.mxu1 %v6392_v36  ;;  %v6399_v5 = vld [vmem:[#allocation8 + $0x20] sm:$0xff]  }
 0x14b   : > { %5894 = vmatprep.subr.bf16.mxu1 %v6393_v37 }
 0x14c   : > { %5921 = vmatpush3.bf16.msra.mxu0 %v6398_v62 }
 0x14d   : > { %5922 = vmatprep.subr.bf16.mxu0 %v6399_v5 }
 0x14e   : > { %5895 = vmatpush3.bf16.msra.mxu1 %v6393_v37 }
 0x14f   : > { %1698 = vmatmul.mubr.bf16.gmra.mxu0 %v1074_v8  ;;  %5896 = vmatprep.subr.bf16.mxu1 %v6394_v38 }
 0x150   : > { %1705 = vmatprep.mubr.bf16.mxu0 %v1082_v9  ;;  %5923 = vmatpush3.bf16.msra.mxu0 %v6399_v5 }
 0x151   : > { %5881 = vmatmul.mubr.bf16.gmra.mxu1 %v1104_v12  ;;  %v6400_v12 = vld [vmem:[#allocation8 + $0x18] sm:$0xff]  }
 0x152   : > { %5897 = vmatpush3.bf16.msra.mxu1 %v6394_v38  ;;  %5924 = vmatprep.subr.bf16.mxu0 %v6400_v12 }
 0x153   : > { %5898 = vmatprep.subr.bf16.mxu1 %v6395_v39 }
 0x154   : > { %5925 = vmatpush3.bf16.msra.mxu0 %v6400_v12 }
 0x155   : > { %5926 = vmatprep.subr.bf16.mxu0 %v6401_v19 }
 0x156   : > { %5899 = vmatpush3.bf16.msra.mxu1 %v6395_v39 }
 0x157   : > { %1706 = vmatmul.mubr.bf16.gmra.mxu0 %v1081_v15 }
 0x158   : > { %1713 = vmatprep.mubr.bf16.mxu0 %v1089_v16  ;;  %5927 = vmatpush3.bf16.msra.mxu0 %v6401_v19 }
 0x159   : > { %5928 = vmatprep.subr.bf16.mxu0 %v6402_v26 }
 0x15c   : > { %5929 = vmatpush3.bf16.msra.mxu0 %v6402_v26 }
 0x15f   : > { %1714 = vmatmul.mubr.bf16.gmra.mxu0 %v1088_v21 }
 0x160   : > { %1721 = vmatprep.mubr.bf16.mxu0 %v1096_v22 }
 0x167   : > { %1722 = vmatmul.mubr.bf16.gmra.mxu0 %v1095_v27 }
 0x168   : > { %1729 = vmatprep.mubr.bf16.mxu0 %v1103_v28 }
 0x16f   : > { %1730 = vmatmul.mubr.bf16.gmra.mxu0 %v1102_v31 }
 0x1b7   : > { %v5516_v40 = vpop.f32.mrf.mxu0 }
 0x1b9   : > { %v5517_v42 = vpop.f32.mrf.mxu0  ;;  %v5580_v44 = vpop.f32.mrf.mxu1 }
 0x1ba   : > { %v5518_v43 = vadd.f32 %v5517_v42, %v5516_v40 }
 0x1bb   : > { %v7859_v45 = vpop.f32.mrf.mxu0  ;;  %v5581_v47 = vpop.f32.mrf.mxu1 }
 0x1bc   : > { %v1482_v46 = vadd.f32 %v5518_v43, %v7857_v41  ;;  %v5582_v48 = vadd.f32 %v5581_v47, %v5580_v44 }
 0x1bd   : > { %v7862_v49 = vpop.f32.mrf.mxu0  ;;  %v7864_v50 = vpop.f32.mrf.mxu1 }
 0x1be   : > { %v7866_v51 = vadd.f32 %v5582_v48, %v1482_v46 }
 0x1bf   : > { %v5522_v52 = vpop.f32.mrf.mxu0  ;;  %v7868_v53 = vpop.f32.mrf.mxu1 }
 0x1c1   : > { %v5523_v56 = vpop.f32.mrf.mxu0  ;;  %v5586_v58 = vpop.f32.mrf.mxu1 }
 0x1c2   : > { %v5524_v57 = vadd.f32 %v5523_v56, %v5522_v52 }
 0x1c3   : > { %v7870_v59 = vpop.f32.mrf.mxu0  ;;  %v5587_v61 = vpop.f32.mrf.mxu1 }
 0x1c4   : > { %v1490_v60 = vadd.f32 %v5524_v57, %v7857_v41  ;;  %v5588_v63 = vadd.f32 %v5587_v61, %v5586_v58 }
 0x1c5   : > { %v7873_v0 = vpop.f32.mrf.mxu0  ;;  %v7875_v1 = vpop.f32.mrf.mxu1 }
 0x1c6   : > { %v7877_v2 = vadd.f32 %v5588_v63, %v1490_v60 }
 0x1c7   : > { %v5528_v3 = vpop.f32.mrf.mxu0  ;;  %v7879_v4 = vpop.f32.mrf.mxu1 }
 0x1c9   : > { %v5529_v6 = vpop.f32.mrf.mxu0  ;;  %v5592_v8 = vpop.f32.mrf.mxu1 }
 0x1ca   : > { %v5530_v7 = vadd.f32 %v5529_v6, %v5528_v3 }
 0x1cb   : > { %v7881_v9 = vpop.f32.mrf.mxu0  ;;  %v5593_v11 = vpop.f32.mrf.mxu1 }
 0x1cc   : > { %v1498_v10 = vadd.f32 %v5530_v7, %v7857_v41  ;;  %v5594_v13 = vadd.f32 %v5593_v11, %v5592_v8 }
 0x1cd   : > { %v7884_v14 = vpop.f32.mrf.mxu0  ;;  %v7886_v15 = vpop.f32.mrf.mxu1 }
 0x1ce   : > { %v7888_v16 = vadd.f32 %v5594_v13, %v1498_v10 }
 0x1cf   : > { %v5534_v17 = vpop.f32.mrf.mxu0  ;;  %v7890_v18 = vpop.f32.mrf.mxu1 }
 0x1d1   : > { %v5535_v20 = vpop.f32.mrf.mxu0  ;;  %v5598_v22 = vpop.f32.mrf.mxu1 }
 0x1d2   : > { %v5536_v21 = vadd.f32 %v5535_v20, %v5534_v17 }
 0x1d3   : > { %v7892_v23 = vpop.f32.mrf.mxu0  ;;  %v5599_v25 = vpop.f32.mrf.mxu1 }
 0x1d4   : > { %v1506_v24 = vadd.f32 %v5536_v21, %v7857_v41  ;;  %v5600_v27 = vadd.f32 %v5599_v25, %v5598_v22 }
 0x1d5   : > { %v7895_v28 = vpop.f32.mrf.mxu0  ;;  %v7897_v29 = vpop.f32.mrf.mxu1 }
 0x1d6   : > { %v7899_v30 = vadd.f32 %v5600_v27, %v1506_v24 }
 0x1d7   : > { %v5540_v31 = vpop.f32.mrf.mxu0  ;;  %v7901_v32 = vpop.f32.mrf.mxu1 }
 0x1d9   : > { %v5541_v33 = vpop.f32.mrf.mxu0  ;;  %v5604_v35 = vpop.f32.mrf.mxu1 }
 0x1da   : > { %v5542_v34 = vadd.f32 %v5541_v33, %v5540_v31 }
 0x1db   : > { %v7903_v36 = vpop.f32.mrf.mxu0  ;;  %v5605_v38 = vpop.f32.mrf.mxu1 }
 0x1dc   : > { %v1514_v37 = vadd.f32 %v5542_v34, %v7857_v41  ;;  %v5606_v39 = vadd.f32 %v5605_v38, %v5604_v35  ;;  %v5521_v34 = vadd.f32 %v7862_v49, %v7859_v45 }
 0x1dd   : > { %v7906_v40 = vpop.f32.mrf.mxu0  ;;  %v7908_v42 = vpop.f32.mrf.mxu1 }
 0x1de   : > { %v7910_v43 = vadd.f32 %v5606_v39, %v1514_v37 }
 0x1df   : > { %v5546_v44 = vpop.f32.mrf.mxu0  ;;  %v7912_v46 = vpop.f32.mrf.mxu1 }
 0x1e1   : > { %v5547_v47 = vpop.f32.mrf.mxu0  ;;  %v5610_v52 = vpop.f32.mrf.mxu1 }
 0x1e2   : > { %v5548_v48 = vadd.f32 %v5547_v47, %v5546_v44  ;;  %v1485_v47 = vadd.f32 %v5521_v34, %v7857_v41 }
 0x1e3   : > { %v7914_v54 = vpop.f32.mrf.mxu0  ;;  %v5611_v56 = vpop.f32.mrf.mxu1 }
 0x1e4   : > { %v1522_v55 = vadd.f32 %v5548_v48, %v7857_v41  ;;  %v5612_v57 = vadd.f32 %v5611_v56, %v5610_v52  ;;  %v5585_v48 = vadd.f32 %v7868_v53, %v7864_v50  ;;  %v5591_v53 = vadd.f32 %v7879_v4, %v7875_v1 }
 0x1e5   : > { %v7917_v58 = vpop.f32.mrf.mxu0  ;;  %v7919_v60 = vpop.f32.mrf.mxu1 }
 0x1e6   : > { %v7921_v61 = vadd.f32 %v5612_v57, %v1522_v55  ;;  %v1582_v49 = vadd.f32 %v5585_v48, %v1485_v47 }
 0x1e7   : > { %v5552_v62 = vpop.f32.mrf.mxu0  ;;  %v7923_v63 = vpop.f32.mrf.mxu1 }
 0x1e9   : > { %v5553_v3 = vpop.f32.mrf.mxu0  ;;  %v5616_v6 = vpop.f32.mrf.mxu1 }
 0x1ea   : > { %v5554_v5 = vadd.f32 %v5553_v3, %v5552_v62  ;;  %v5527_v3 = vadd.f32 %v7873_v0, %v7870_v59 }
 0x1eb   : > { %v7925_v7 = vpop.f32.mrf.mxu0  ;;  %v5617_v10 = vpop.f32.mrf.mxu1 }
 0x1ec   : > { %v1530_v8 = vadd.f32 %v5554_v5, %v7857_v41  ;;  %v5618_v11 = vadd.f32 %v5617_v10, %v5616_v6  ;;  %v1493_v50 = vadd.f32 %v5527_v3, %v7857_v41 }
 0x1ed   : > { %v7928_v12 = vpop.f32.mrf.mxu0  ;;  %v7930_v13 = vpop.f32.mrf.mxu1 }
 0x1ee   : > { %v7932_v17 = vadd.f32 %v5618_v11, %v1530_v8  ;;  %v1590_v34 = vadd.f32 %v5591_v53, %v1493_v50 }
 0x1ef   : > { %v5558_v19 = vpop.f32.mrf.mxu0  ;;  %v7934_v20 = vpop.f32.mrf.mxu1 }
 0x1f1   : > { %v5559_v21 = vpop.f32.mrf.mxu0  ;;  %v5622_v24 = vpop.f32.mrf.mxu1 }
 0x1f2   : > { %v5560_v22 = vadd.f32 %v5559_v21, %v5558_v19 }
 0x1f3   : > { %v7936_v25 = vpop.f32.mrf.mxu0  ;;  %v5623_v27 = vpop.f32.mrf.mxu1 }
 0x1f4   : > { %v1538_v26 = vadd.f32 %v5560_v22, %v7857_v41  ;;  %v5624_v31 = vadd.f32 %v5623_v27, %v5622_v24 }
 0x1f5   : > { %v7939_v33 = vpop.f32.mrf.mxu0  ;;  %v7943_v35 = vpop.f32.mrf.mxu1 }
 0x1f6   : > { %v7945_v37 = vadd.f32 %v5624_v31, %v1538_v26 }
 0x1f7   : > { %v5644_v38 = vpop.f32.mrf.mxu0  ;;  %v7947_v39 = vpop.f32.mrf.mxu1 }
 0x1f9   : > { %v5645_v44 = vpop.f32.mrf.mxu0  ;;  %v5870_v55 = vpop.f32.mrf.mxu1 }
 0x1fa   : > { %v5646_v52 = vadd.f32 %v5645_v44, %v5644_v38  ;;  %v5533_v38 = vadd.f32 %v7884_v14, %v7881_v9 }
 0x1fb   : > { %v5647_v56 = vpop.f32.mrf.mxu0  ;;  %v1772_v62 = vpop.f32.mrf.mxu1 }
 0x1fc   : > { %v1676_v57 = vadd.f32 %v5646_v52, %v7866_v51  ;;  %v1501_v4 = vadd.f32 %v5533_v38, %v7857_v41 }
 0x1fd   : > { %v5648_v45 = vpop.f32.mrf.mxu0  ;;  %v5871_v6 = vpop.f32.mrf.mxu1 }
 0x1fe   : > { %v5649_v5 = vadd.f32 %v5648_v45, %v5647_v56  ;;  %v1773_v10 = vadd.f32 %v1772_v62, %v1676_v57  ;;  %v5597_v62 = vadd.f32 %v7890_v18, %v7886_v15 }
 0x1ff   : > { %v5650_v8 = vpop.f32.mrf.mxu0  ;;  %v1775_v19 = vpop.f32.mrf.mxu1 }
 0x200   : > { %v1679_v11 = vadd.f32 %v5649_v5, %v1582_v49  ;;  %v1835_v27 = vmax.f32 %v1773_v10, 0.0  ;;  %v1598_v10 = vadd.f32 %v5597_v62, %v1501_v4 }
 0x201   : > { %v5651_v21 = vpop.f32.mrf.mxu0  ;;  %v5874_v26 = vpop.f32.mrf.mxu1 }
 0x202   : > { %v5652_v22 = vadd.f32 %v5651_v21, %v5650_v8  ;;  %v1776_v51 = vadd.f32 %v1775_v19, %v1679_v11 }
 0x203   : > { %v5653_v24 = vpop.f32.mrf.mxu0  ;;  %v1788_v52 = vpop.f32.mrf.mxu1 }
 0x204   : > { %v1684_v31 = vadd.f32 %v5652_v22, %v7877_v2  ;;  %v1836_v59 = vmax.f32 %v1776_v51, 0.0  ;;  %v5603_v22 = vadd.f32 %v7901_v32, %v7897_v29 }
 0x205   : > { %v5654_v0 = vpop.f32.mrf.mxu0  ;;  %v5875_v3 = vpop.f32.mrf.mxu1 }
 0x206   : > { %v5655_v44 = vadd.f32 %v5654_v0, %v5653_v24  ;;  %v1868_v47 = vpack.c.bf16 %v1836_v59, %v1835_v27  ;;  %v1781_v56 = vadd.f32 %v5870_v55, %v1684_v31  ;;  %v5539_v55 = vadd.f32 %v7895_v28, %v7892_v23 }
 0x207   : > { %v5656_v48 = vpop.f32.mrf.mxu0  ;;  %v1791_v50 = vpop.f32.mrf.mxu1 }
 0x208   : > { %v1687_v57 = vadd.f32 %v5655_v44, %v1590_v34  ;;  %5900 = vmatprep.mubr.bf16.mxu1 %v1868_v47  ;;  %v1837_v5 = vmax.f32 %v1781_v56, 0.0  ;;  %v5545_v34 = vadd.f32 %v7906_v40, %v7903_v36 }
 0x209   : > { %v5657_v1 = vpop.f32.mrf.mxu0  ;;  %v5878_v27 = vpop.f32.mrf.mxu1 }
 0x20a   : > { %v1784_v2 = vadd.f32 %v5871_v6, %v1687_v57  ;;  %v5658_v45 = vadd.f32 %v5657_v1, %v5656_v48  ;;  %v1509_v6 = vadd.f32 %v5539_v55, %v7857_v41  ;;  %v1517_v32 = vadd.f32 %v5545_v34, %v7857_v41 }
 0x20b   : > { %v5659_v49 = vpop.f32.mrf.mxu0  ;;  %v1804_v48 = vpop.f32.mrf.mxu1  ;;  %v5609_v57 = vadd.f32 %v7912_v46, %v7908_v42  ;;  %v5615_v55 = vadd.f32 %v7923_v63, %v7919_v60 }
 0x20c   : > { %v1838_v8 = vmax.f32 %v1784_v2, 0.0  ;;  %v1692_v9 = vadd.f32 %v5658_v45, %v7888_v16  ;;  %v1606_v0 = vadd.f32 %v5603_v22, %v1509_v6 }
 0x20d   : > { %v5660_v14 = vpop.f32.mrf.mxu0  ;;  %v5879_v62 = vpop.f32.mrf.mxu1 }
 0x20e   : > { %v1869_v11 = vpack.c.bf16 %v1838_v8, %v1837_v5  ;;  %v5661_v19 = vadd.f32 %v5660_v14, %v5659_v49  ;;  %v1789_v53 = vadd.f32 %v1788_v52, %v1692_v9  ;;  %v1614_v49 = vadd.f32 %v5609_v57, %v1517_v32 }
 0x20f   : > { %v5662_v21 = vpop.f32.mrf.mxu0  ;;  %v1807_v14 = vpop.f32.mrf.mxu1  ;;  %v5627_v57 = vadd.f32 %v7947_v39, %v7943_v35  ;;  %v6403_v35 = vld [vmem:[#allocation8] sm:$0xff]   ;;  %v6404_v39 = vld [vmem:[#allocation10 + $0x38] sm:$0xff]  }
 0x210   : > { %5901 = vmatmul.mubr.bf16.vlgmr.msra.gmra.mxu1 %v1869_v11  ;;  %v1695_v15 = vadd.f32 %v5661_v19, %v1598_v10  ;;  %v1839_v31 = vmax.f32 %v1789_v53, 0.0  ;;  %5930 = vmatprep.subr.bf16.mxu0 %v6403_v35 }
 0x211   : > { %v5663_v18 = vpop.f32.mrf.mxu0  ;;  %5931 = vmatpush3.bf16.msra.mxu0 %v6403_v35  ;;  %5948 = vmatprep.subr.bf16.mxu1 %v6404_v39  ;;  %v6410_v35 = vld [vmem:[#allocation10 + $0x8] sm:$0xff]  }
 0x212   : > { %v5664_v51 = vadd.f32 %v5663_v18, %v5662_v21  ;;  %v1792_v16 = vadd.f32 %v1791_v50, %v1695_v15  ;;  %v5882_v21 = vpop.f32.mrf.mxu1  ;;  %v5557_v18 = vadd.f32 %v7928_v12, %v7925_v7  ;;  %5949 = vmatpush3.bf16.msra.mxu1 %v6404_v39  ;;  %v6411_v39 = vld [vmem:[#allocation10] sm:$0xff]  }
 0x213   : > { %v5665_v24 = vpop.f32.mrf.mxu0 }
 0x214   : > { %v1700_v23 = vadd.f32 %v5664_v51, %v7899_v30  ;;  %v1840_v28 = vmax.f32 %v1792_v16, 0.0  ;;  %v1820_v16 = vpop.f32.mrf.mxu1  ;;  %v1533_v63 = vadd.f32 %v5557_v18, %v7857_v41 }
 0x215   : > { %v5666_v59 = vpop.f32.mrf.mxu0 }
 0x216   : > { %v5667_v38 = vadd.f32 %v5666_v59, %v5665_v24  ;;  %v1870_v44 = vpack.c.bf16 %v1840_v28, %v1839_v31  ;;  %v1797_v52 = vadd.f32 %v5874_v26, %v1700_v23  ;;  %v5551_v26 = vadd.f32 %v7917_v58, %v7914_v54 }
 0x217   : > { %v5668_v47 = vpop.f32.mrf.mxu0  ;;  %v5621_v23 = vadd.f32 %v7934_v20, %v7930_v13 }
 0x218   : > { %v1703_v56 = vadd.f32 %v5667_v38, %v1606_v0  ;;  %5904 = vmatprep.mubr.bf16.mxu1 %v1870_v44  ;;  %v1841_v2 = vmax.f32 %v1797_v52, 0.0  ;;  %v5883_v0 = vpop.f32.mrf.mxu1 }
 0x219   : > { %v5669_v29 = vpop.f32.mrf.mxu0  ;;  %v1630_v44 = vadd.f32 %v5621_v23, %v1533_v63 }
 0x21a   : > { %v1800_v30 = vadd.f32 %v5875_v3, %v1703_v56  ;;  %v5670_v1 = vadd.f32 %v5669_v29, %v5668_v47  ;;  %v1525_v3 = vadd.f32 %v5551_v26, %v7857_v41  ;;  %v1823_v56 = vpop.f32.mrf.mxu1 }
 0x21b   : > { %v5671_v4 = vpop.f32.mrf.mxu0 }
 0x21c   : > { %v1708_v36 = vadd.f32 %v5670_v1, %v7910_v43  ;;  %v1842_v40 = vmax.f32 %v1800_v30, 0.0  ;;  %v1622_v15 = vadd.f32 %v5615_v55, %v1525_v3  ;;  %v5255_v3 = vld [vmem:[%s8645_s22] ss:$0 sm:$0xff]  ;;  %s8521_s22 = scalar_lea.hbm %s8648_s3, %s6175_s11 }
 0x21d   : > { %v5672_v45 = vpop.f32.mrf.mxu0 }
 0x21e   : > { %v5673_v5 = vadd.f32 %v5672_v45, %v5671_v4  ;;  %v1871_v8 = vpack.c.bf16 %v1842_v40, %v1841_v2  ;;  %v1805_v10 = vadd.f32 %v1804_v48, %v1708_v36 }
 0x21f   : > { %v5674_v9 = vpop.f32.mrf.mxu0 }
 0x220   : > { %5905 = vmatmul.mubr.bf16.gmra.mxu1 %v1871_v8  ;;  %v1711_v42 = vadd.f32 %v5673_v5, %v1614_v49  ;;  %v1843_v50 = vmax.f32 %v1805_v10, 0.0  ;;  %v6408_v10 = vld [vmem:[#allocation10 + $0x18] sm:$0xff]  }
 0x221   : > { %v5675_v46 = vpop.f32.mrf.mxu0 }
 0x222   : > { %v5676_v43 = vadd.f32 %v5675_v46, %v5674_v9  ;;  %v1808_v11 = vadd.f32 %v1807_v14, %v1711_v42  ;;  %v6405_v9 = vld [vmem:[#allocation10 + $0x30] sm:$0xff]   ;;  %v6407_v14 = vld [vmem:[#allocation10 + $0x20] sm:$0xff]  }
 0x223   : > { %v5677_v19 = vpop.f32.mrf.mxu0  ;;  %5950 = vmatprep.subr.bf16.mxu1 %v6405_v9 }
 0x224   : > { %v1716_v54 = vadd.f32 %v5676_v43, %v7921_v61  ;;  %v1844_v58 = vmax.f32 %v1808_v11, 0.0  ;;  %5951 = vmatpush3.bf16.msra.mxu1 %v6405_v9  ;;  %v6412_v9 = vld [vmem:[#allocation11 + $0x38] sm:$0xff]  }
 0x225   : > { %v5678_v53 = vpop.f32.mrf.mxu0  ;;  %5980 = vmatprep.subr.bf16.mxu0 %v6412_v9 }
 0x226   : > { %v5679_v6 = vadd.f32 %v5678_v53, %v5677_v19  ;;  %v1872_v22 = vpack.c.bf16 %v1844_v58, %v1843_v50  ;;  %v1813_v24 = vadd.f32 %v5878_v27, %v1716_v54  ;;  %v5563_v27 = vadd.f32 %v7939_v33, %v7936_v25 }
 0x227   : > { %v5680_v51 = vpop.f32.mrf.mxu0 }
 0x228   : > { %v1719_v31 = vadd.f32 %v5679_v6, %v1622_v15  ;;  %5908 = vmatprep.mubr.bf16.mxu1 %v1872_v22  ;;  %v1845_v34 = vmax.f32 %v1813_v24, 0.0  ;;  %v1541_v32 = vadd.f32 %v5563_v27, %v7857_v41 }
 0x229   : > { %v5681_v60 = vpop.f32.mrf.mxu0 }
 0x22a   : > { %v1816_v61 = vadd.f32 %v5879_v62, %v1719_v31  ;;  %v5682_v28 = vadd.f32 %v5681_v60, %v5680_v51  ;;  %v1638_v2 = vadd.f32 %v5627_v57, %v1541_v32 }
 0x22b   : > { %v5683_v59 = vpop.f32.mrf.mxu0 }
 0x22c   : > { %v1724_v7 = vadd.f32 %v5682_v28, %v7932_v17  ;;  %v1846_v12 = vmax.f32 %v1816_v61, 0.0 }
 0x22d   : > { %v5684_v38 = vpop.f32.mrf.mxu0 }
 0x22e   : > { %v5685_v47 = vadd.f32 %v5684_v38, %v5683_v59  ;;  %v1873_v48 = vpack.c.bf16 %v1846_v12, %v1845_v34  ;;  %v1821_v29 = vadd.f32 %v1820_v16, %v1724_v7 }
 0x22f   : > { %v5686_v52 = vpop.f32.mrf.mxu0 }
 0x230   : > { %5909 = vmatmul.mubr.bf16.gmra.mxu1 %v1873_v48  ;;  %v1727_v13 = vadd.f32 %v5685_v47, %v1630_v44  ;;  %v1847_v4 = vmax.f32 %v1821_v29, 0.0 }
 0x231   : > { %v5687_v20 = vpop.f32.mrf.mxu0 }
 0x232   : > { %v5688_v17 = vadd.f32 %v5687_v20, %v5686_v52  ;;  %v1824_v30 = vadd.f32 %v1823_v56, %v1727_v13 }
 0x233   : > { %v5689_v1 = vpop.f32.mrf.mxu0 }
 0x234   : > { %v1732_v62 = vadd.f32 %v5688_v17, %v7945_v37  ;;  %v1848_v25 = vmax.f32 %v1824_v30, 0.0  ;;  %v6406_v37 = vld [vmem:[#allocation10 + $0x28] sm:$0xff]  }
 0x235   : > { %v5690_v33 = vpop.f32.mrf.mxu0  ;;  %5952 = vmatprep.subr.bf16.mxu1 %v6406_v37 }
 0x236   : > { %v5691_v36 = vadd.f32 %v5690_v33, %v5689_v1  ;;  %v1874_v40 = vpack.c.bf16 %v1848_v25, %v1847_v4  ;;  %v1829_v45 = vadd.f32 %v5882_v21, %v1732_v62  ;;  %5953 = vmatpush3.bf16.msra.mxu1 %v6406_v37  ;;  %v6413_v37 = vld [vmem:[#allocation11 + $0x30] sm:$0xff]  }
 0x237   : > { %5954 = vmatprep.subr.bf16.mxu1 %v6407_v14 }
 0x238   : > { %v1735_v49 = vadd.f32 %v5691_v36, %v1638_v2  ;;  %5912 = vmatprep.mubr.bf16.mxu1 %v1874_v40  ;;  %v1849_v5 = vmax.f32 %v1829_v45, 0.0 }
 0x23a   : > { %v1832_v26 = vadd.f32 %v5883_v0, %v1735_v49  ;;  %5955 = vmatpush3.bf16.msra.mxu1 %v6407_v14  ;;  %v6414_v14 = vld [vmem:[#allocation11 + $0x28] sm:$0xff]  }
 0x23b   : > { %5956 = vmatprep.subr.bf16.mxu1 %v6408_v10 }
 0x23c   : > { %v1850_v41 = vmax.f32 %v1832_v26, 0.0 }
 0x23e   : > { %v1875_v8 = vpack.c.bf16 %v1850_v41, %v1849_v5  ;;  %5957 = vmatpush3.bf16.msra.mxu1 %v6408_v10  ;;  %v6415_v10 = vld [vmem:[#allocation11 + $0x20] sm:$0xff]  }
 0x240   : > { %5913 = vmatmul.mubr.bf16.gmra.mxu1 %v1875_v8  ;;  %v6409_v8 = vld [vmem:[#allocation10 + $0x10] sm:$0xff]  }
 0x241   : > { %5958 = vmatprep.subr.bf16.mxu1 %v6409_v8 }
 0x242   : > { %5959 = vmatpush3.bf16.msra.mxu1 %v6409_v8 }
 0x243   : > { %5960 = vmatprep.subr.bf16.mxu1 %v6410_v35 }
 0x246   : > { %5961 = vmatpush3.bf16.msra.mxu1 %v6410_v35  ;;  %v6417_v35 = vld [vmem:[#allocation11 + $0x10] sm:$0xff]  }
 0x247   : > { %5962 = vmatprep.subr.bf16.mxu1 %v6411_v39 }
 0x24a   : > { %5963 = vmatpush3.bf16.msra.mxu1 %v6411_v39  ;;  %v6418_v39 = vld [vmem:[#allocation11 + $0x8] sm:$0xff]  }
 0x2d0   : > { %v5902_v42 = vpop.f32.mrf.mxu1 }
 0x2d1   : > { %v1973_v19 = vadd.f32 %v5902_v42, %v5255_v3  ;;  %v6416_v42 = vld [vmem:[#allocation11 + $0x18] sm:$0xff]  }
 0x2d2   : > { %v1964_v46 = vpop.f32.mrf.mxu1 }
 0x2d3   : > { %v1965_v43 = vadd.f32 %v5255_v3, %v1964_v46  ;;  %v2029_v15 = vmax.f32 %v1973_v19, 0.0 }
 0x2d4   : > { %v5903_v55 = vpop.f32.mrf.mxu1 }
 0x2d5   : > { %v1976_v11 = vadd.f32 %v5903_v55, %v5255_v3  ;;  %v2027_v58 = vmax.f32 %v1965_v43, 0.0  ;;  %v5264_v55 = vld [vmem:[%s8575_s6] ss:$0 sm:$0xff] }
 0x2d6   : > { %v1967_v21 = vpop.f32.mrf.mxu1 }
 0x2d7   : > { %v1968_v50 = vadd.f32 %v5255_v3, %v1967_v21  ;;  %v2030_v54 = vmax.f32 %v1976_v11, 0.0 }
 0x2d9   : > { %v2028_v53 = vmax.f32 %v1968_v50, 0.0  ;;  %v2061_v6 = vpack.c.bf16 %v2030_v54, %v2029_v15 }
 0x2db   : > { %v2060_v18 = vpack.c.bf16 %v2028_v53, %v2027_v58 }
 0x2dd   : > { %5932 = vmatprep.mubr.bf16.mxu0 %v2060_v18 }
 0x2de   : > { %5933 = vmatmul.mubr.bf16.vlgmr.msra.gmra.mxu0 %v2061_v6 }
 0x2df   : > { %5981 = vmatpush3.bf16.msra.mxu0 %v6412_v9  ;;  %v6419_v9 = vld [vmem:[#allocation11] sm:$0xff]  }
 0x2e0   : > { %v5906_v22 = vpop.f32.mrf.mxu1  ;;  %5982 = vmatprep.subr.bf16.mxu0 %v6413_v37 }
 0x2e1   : > { %v1989_v60 = vadd.f32 %v5906_v22, %v5255_v3 }
 0x2e2   : > { %v1980_v51 = vpop.f32.mrf.mxu1 }
 0x2e3   : > { %v1981_v24 = vadd.f32 %v5255_v3, %v1980_v51  ;;  %v2033_v0 = vmax.f32 %v1989_v60, 0.0  ;;  %5983 = vmatpush3.bf16.msra.mxu0 %v6413_v37  ;;  %v6420_v37 = vld [vmem:[#allocation13 + $0x38] sm:$0xff]  }
 0x2e4   : > { %v5907_v16 = vpop.f32.mrf.mxu1  ;;  %5984 = vmatprep.subr.bf16.mxu0 %v6414_v14  ;;  %6012 = vmatprep.subr.bf16.mxu1 %v6420_v37 }
 0x2e5   : > { %v1992_v31 = vadd.f32 %v5907_v16, %v5255_v3  ;;  %v2031_v28 = vmax.f32 %v1981_v24, 0.0 }
 0x2e6   : > { %v1983_v63 = vpop.f32.mrf.mxu1 }
 0x2e7   : > { %v1984_v23 = vadd.f32 %v5255_v3, %v1983_v63  ;;  %v2034_v61 = vmax.f32 %v1992_v31, 0.0  ;;  %5985 = vmatpush3.bf16.msra.mxu0 %v6414_v14  ;;  %v6421_v14 = vld [vmem:[#allocation13 + $0x30] sm:$0xff]  }
 0x2e8   : > { %5986 = vmatprep.subr.bf16.mxu0 %v6415_v10 }
 0x2e9   : > { %v2032_v59 = vmax.f32 %v1984_v23, 0.0  ;;  %v2063_v7 = vpack.c.bf16 %v2034_v61, %v2033_v0 }
 0x2eb   : > { %v2062_v34 = vpack.c.bf16 %v2032_v59, %v2031_v28  ;;  %5987 = vmatpush3.bf16.msra.mxu0 %v6415_v10  ;;  %v6422_v10 = vld [vmem:[#allocation13 + $0x28] sm:$0xff]  }
 0x2ec   : > { %5988 = vmatprep.subr.bf16.mxu0 %v6416_v42 }
 0x2ed   : > { %5936 = vmatprep.mubr.bf16.mxu0 %v2062_v34 }
 0x2ee   : > { %5937 = vmatmul.mubr.bf16.gmra.mxu0 %v2063_v7 }
 0x2ef   : > { %5989 = vmatpush3.bf16.msra.mxu0 %v6416_v42  ;;  %v6423_v42 = vld [vmem:[#allocation13 + $0x20] sm:$0xff]  }
 0x2f0   : > { %v5910_v12 = vpop.f32.mrf.mxu1  ;;  %5990 = vmatprep.subr.bf16.mxu0 %v6417_v35 }
 0x2f1   : > { %v2005_v48 = vadd.f32 %v5910_v12, %v5255_v3 }
 0x2f2   : > { %v1996_v38 = vpop.f32.mrf.mxu1 }
 0x2f3   : > { %v1997_v27 = vadd.f32 %v5255_v3, %v1996_v38  ;;  %v2037_v32 = vmax.f32 %v2005_v48, 0.0  ;;  %5991 = vmatpush3.bf16.msra.mxu0 %v6417_v35 }
 0x2f4   : > { %v5911_v44 = vpop.f32.mrf.mxu1  ;;  %5992 = vmatprep.subr.bf16.mxu0 %v6418_v39 }
 0x2f5   : > { %v2008_v47 = vadd.f32 %v5911_v44, %v5255_v3  ;;  %v2035_v13 = vmax.f32 %v1997_v27, 0.0 }
 0x2f6   : > { %v1999_v52 = vpop.f32.mrf.mxu1 }
 0x2f7   : > { %v2000_v56 = vadd.f32 %v5255_v3, %v1999_v52  ;;  %v2038_v29 = vmax.f32 %v2008_v47, 0.0  ;;  %5993 = vmatpush3.bf16.msra.mxu0 %v6418_v39  ;;  %v6425_v39 = vld [vmem:[#allocation13 + $0x10] sm:$0xff]  }
 0x2f8   : > { %5994 = vmatprep.subr.bf16.mxu0 %v6419_v9 }
 0x2f9   : > { %v2036_v20 = vmax.f32 %v2000_v56, 0.0  ;;  %v2065_v17 = vpack.c.bf16 %v2038_v29, %v2037_v32 }
 0x2fb   : > { %v2064_v57 = vpack.c.bf16 %v2036_v20, %v2035_v13  ;;  %5995 = vmatpush3.bf16.msra.mxu0 %v6419_v9  ;;  %v6426_v9 = vld [vmem:[#allocation13 + $0x8] sm:$0xff]  }
 0x2fd   : > { %5940 = vmatprep.mubr.bf16.mxu0 %v2064_v57 }
 0x2fe   : > { %5941 = vmatmul.mubr.bf16.gmra.mxu0 %v2065_v17 }
 0x300   : > { %v5914_v30 = vpop.f32.mrf.mxu1 }
 0x301   : > { %v2021_v33 = vadd.f32 %v5914_v30, %v5255_v3 }
 0x302   : > { %v2012_v1 = vpop.f32.mrf.mxu1 }
 0x303   : > { %v2013_v62 = vadd.f32 %v5255_v3, %v2012_v1  ;;  %v2041_v26 = vmax.f32 %v2021_v33, 0.0 }
 0x304   : > { %v5915_v4 = vpop.f32.mrf.mxu1 }
 0x305   : > { %v2024_v25 = vadd.f32 %v5915_v4, %v5255_v3  ;;  %v2039_v45 = vmax.f32 %v2013_v62, 0.0 }
 0x306   : > { %v2015_v2 = vpop.f32.mrf.mxu1 }
 0x307   : > { %v2016_v36 = vadd.f32 %v5255_v3, %v2015_v2  ;;  %v2042_v40 = vmax.f32 %v2024_v25, 0.0 }
 0x309   : > { %v2040_v49 = vmax.f32 %v2016_v36, 0.0  ;;  %v2067_v41 = vpack.c.bf16 %v2042_v40, %v2041_v26 }
 0x30b   : > { %v2066_v5 = vpack.c.bf16 %v2040_v49, %v2039_v45 }
 0x30d   : > { %5944 = vmatprep.mubr.bf16.mxu0 %v2066_v5 }
 0x30e   : > { %5945 = vmatmul.mubr.bf16.gmra.mxu0 %v2067_v41 }
 0x39e   : > { %v5934_v46 = vpop.f32.mrf.mxu0 }
 0x39f   : > { %v2165_v21 = vadd.f32 %v5934_v46, %v5264_v55  ;;  %v6424_v46 = vld [vmem:[#allocation13 + $0x18] sm:$0xff]  }
 0x3a0   : > { %v2156_v3 = vpop.f32.mrf.mxu0 }
 0x3a1   : > { %v2157_v11 = vadd.f32 %v5264_v55, %v2156_v3  ;;  %v2221_v18 = vmax.f32 %v2165_v21, 0.0 }
 0x3a2   : > { %v5935_v43 = vpop.f32.mrf.mxu0 }
 0x3a3   : > { %v2168_v19 = vadd.f32 %v5935_v43, %v5264_v55  ;;  %v2219_v53 = vmax.f32 %v2157_v11, 0.0  ;;  %v5273_v43 = vld [vmem:[%s8577_s8] ss:$0 sm:$0xff] }
 0x3a4   : > { %v2159_v50 = vpop.f32.mrf.mxu0 }
 0x3a5   : > { %v2160_v54 = vadd.f32 %v5264_v55, %v2159_v50  ;;  %v2222_v58 = vmax.f32 %v2168_v19, 0.0 }
 0x3a7   : > { %v2220_v15 = vmax.f32 %v2160_v54, 0.0  ;;  %v2253_v22 = vpack.c.bf16 %v2222_v58, %v2221_v18 }
 0x3a9   : > { %v2252_v6 = vpack.c.bf16 %v2220_v15, %v2219_v53 }
 0x3ab   : > { %5964 = vmatprep.mubr.bf16.mxu1 %v2252_v6 }
 0x3ac   : > { %5965 = vmatmul.mubr.bf16.vlgmr.msra.gmra.mxu1 %v2253_v22 }
 0x3ad   : > { %6013 = vmatpush3.bf16.msra.mxu1 %v6420_v37  ;;  %v6427_v37 = vld [vmem:[#allocation13] sm:$0xff]  }
 0x3ae   : > { %v5938_v51 = vpop.f32.mrf.mxu0  ;;  %6014 = vmatprep.subr.bf16.mxu1 %v6421_v14 }
 0x3af   : > { %v2181_v63 = vadd.f32 %v5938_v51, %v5264_v55 }
 0x3b0   : > { %v2172_v16 = vpop.f32.mrf.mxu0 }
 0x3b1   : > { %v2173_v31 = vadd.f32 %v5264_v55, %v2172_v16  ;;  %v2225_v34 = vmax.f32 %v2181_v63, 0.0  ;;  %6015 = vmatpush3.bf16.msra.mxu1 %v6421_v14  ;;  %v6428_v14 = vld [vmem:[#allocation14 + $0x38] sm:$0xff]  }
 0x3b2   : > { %v5939_v24 = vpop.f32.mrf.mxu0  ;;  %6016 = vmatprep.subr.bf16.mxu1 %v6422_v10  ;;  %6044 = vmatprep.subr.bf16.mxu0 %v6428_v14 }
 0x3b3   : > { %v2184_v60 = vadd.f32 %v5939_v24, %v5264_v55  ;;  %v2223_v59 = vmax.f32 %v2173_v31, 0.0 }
 0x3b4   : > { %v2175_v23 = vpop.f32.mrf.mxu0 }
 0x3b5   : > { %v2176_v61 = vadd.f32 %v5264_v55, %v2175_v23  ;;  %v2226_v28 = vmax.f32 %v2184_v60, 0.0  ;;  %6017 = vmatpush3.bf16.msra.mxu1 %v6422_v10  ;;  %v6429_v10 = vld [vmem:[#allocation14 + $0x30] sm:$0xff]  }
 0x3b6   : > { %6018 = vmatprep.subr.bf16.mxu1 %v6423_v42 }
 0x3b7   : > { %v2224_v0 = vmax.f32 %v2176_v61, 0.0  ;;  %v2255_v12 = vpack.c.bf16 %v2226_v28, %v2225_v34 }
 0x3b9   : > { %v2254_v7 = vpack.c.bf16 %v2224_v0, %v2223_v59  ;;  %6019 = vmatpush3.bf16.msra.mxu1 %v6423_v42  ;;  %v6430_v42 = vld [vmem:[#allocation14 + $0x28] sm:$0xff]  }
 0x3ba   : > { %6020 = vmatprep.subr.bf16.mxu1 %v6424_v46 }
 0x3bb   : > { %5968 = vmatprep.mubr.bf16.mxu1 %v2254_v7 }
 0x3bc   : > { %5969 = vmatmul.mubr.bf16.gmra.mxu1 %v2255_v12 }
 0x3bd   : > { %6021 = vmatpush3.bf16.msra.mxu1 %v6424_v46  ;;  %v6431_v46 = vld [vmem:[#allocation14 + $0x20] sm:$0xff]  }
 0x3be   : > { %v5942_v38 = vpop.f32.mrf.mxu0  ;;  %6022 = vmatprep.subr.bf16.mxu1 %v6425_v39 }
 0x3bf   : > { %v2197_v52 = vadd.f32 %v5942_v38, %v5264_v55 }
 0x3c0   : > { %v2188_v44 = vpop.f32.mrf.mxu0 }
 0x3c1   : > { %v2189_v47 = vadd.f32 %v5264_v55, %v2188_v44  ;;  %v2229_v57 = vmax.f32 %v2197_v52, 0.0  ;;  %6023 = vmatpush3.bf16.msra.mxu1 %v6425_v39 }
 0x3c2   : > { %v5943_v27 = vpop.f32.mrf.mxu0  ;;  %6024 = vmatprep.subr.bf16.mxu1 %v6426_v9 }
 0x3c3   : > { %v2200_v48 = vadd.f32 %v5943_v27, %v5264_v55  ;;  %v2227_v20 = vmax.f32 %v2189_v47, 0.0 }
 0x3c4   : > { %v2191_v56 = vpop.f32.mrf.mxu0 }
 0x3c5   : > { %v2192_v29 = vadd.f32 %v5264_v55, %v2191_v56  ;;  %v2230_v13 = vmax.f32 %v2200_v48, 0.0  ;;  %6025 = vmatpush3.bf16.msra.mxu1 %v6426_v9 }
 0x3c6   : > { %6026 = vmatprep.subr.bf16.mxu1 %v6427_v37 }
 0x3c7   : > { %v2228_v32 = vmax.f32 %v2192_v29, 0.0  ;;  %v2257_v30 = vpack.c.bf16 %v2230_v13, %v2229_v57 }
 0x3c9   : > { %v2256_v17 = vpack.c.bf16 %v2228_v32, %v2227_v20  ;;  %6027 = vmatpush3.bf16.msra.mxu1 %v6427_v37 }
 0x3cb   : > { %5972 = vmatprep.mubr.bf16.mxu1 %v2256_v17 }
 0x3cc   : > { %5973 = vmatmul.mubr.bf16.gmra.mxu1 %v2257_v30 }
 0x3ce   : > { %v5946_v1 = vpop.f32.mrf.mxu0 }
 0x3cf   : > { %v2213_v2 = vadd.f32 %v5946_v1, %v5264_v55 }
 0x3d0   : > { %v2204_v4 = vpop.f32.mrf.mxu0 }
 0x3d1   : > { %v2205_v25 = vadd.f32 %v5264_v55, %v2204_v4  ;;  %v2233_v5 = vmax.f32 %v2213_v2, 0.0 }
 0x3d2   : > { %v5947_v62 = vpop.f32.mrf.mxu0 }
 0x3d3   : > { %v2216_v33 = vadd.f32 %v5947_v62, %v5264_v55  ;;  %v2231_v49 = vmax.f32 %v2205_v25, 0.0 }
 0x3d4   : > { %v2207_v36 = vpop.f32.mrf.mxu0 }
 0x3d5   : > { %v2208_v40 = vadd.f32 %v5264_v55, %v2207_v36  ;;  %v2234_v45 = vmax.f32 %v2216_v33, 0.0 }
 0x3d7   : > { %v2232_v26 = vmax.f32 %v2208_v40, 0.0  ;;  %v2259_v8 = vpack.c.bf16 %v2234_v45, %v2233_v5 }
 0x3d9   : > { %v2258_v41 = vpack.c.bf16 %v2232_v26, %v2231_v49 }
 0x3db   : > { %5976 = vmatprep.mubr.bf16.mxu1 %v2258_v41 }
 0x3dc   : > { %5977 = vmatmul.mubr.bf16.gmra.mxu1 %v2259_v8 }
 0x46c   : > { %v5966_v3 = vpop.f32.mrf.mxu1 }
 0x46d   : > { %v2357_v50 = vadd.f32 %v5966_v3, %v5273_v43  ;;  %v6432_v3 = vld [vmem:[#allocation14 + $0x18] sm:$0xff]  }
 0x46e   : > { %v2348_v55 = vpop.f32.mrf.mxu1 }
 0x46f   : > { %v2349_v19 = vadd.f32 %v5273_v43, %v2348_v55  ;;  %v2413_v6 = vmax.f32 %v2357_v50, 0.0 }
 0x470   : > { %v5967_v11 = vpop.f32.mrf.mxu1 }
 0x471   : > { %v2360_v21 = vadd.f32 %v5967_v11, %v5273_v43  ;;  %v2411_v15 = vmax.f32 %v2349_v19, 0.0  ;;  %v5282_v19 = vld [vmem:[%s8579_s10] ss:$0 sm:$0xff] }
 0x472   : > { %v2351_v54 = vpop.f32.mrf.mxu1 }
 0x473   : > { %v2352_v58 = vadd.f32 %v5273_v43, %v2351_v54  ;;  %v2414_v53 = vmax.f32 %v2360_v21, 0.0 }
 0x475   : > { %v2412_v18 = vmax.f32 %v2352_v58, 0.0  ;;  %v2445_v51 = vpack.c.bf16 %v2414_v53, %v2413_v6 }
 0x477   : > { %v2444_v22 = vpack.c.bf16 %v2412_v18, %v2411_v15 }
 0x479   : > { %5996 = vmatprep.mubr.bf16.mxu0 %v2444_v22 }
 0x47a   : > { %5997 = vmatmul.mubr.bf16.vlgmr.msra.gmra.mxu0 %v2445_v51 }
 0x47b   : > { %6045 = vmatpush3.bf16.msra.mxu0 %v6428_v14 }
 0x47c   : > { %v5970_v16 = vpop.f32.mrf.mxu1  ;;  %6046 = vmatprep.subr.bf16.mxu0 %v6429_v10 }
 0x47d   : > { %v2373_v23 = vadd.f32 %v5970_v16, %v5273_v43 }
 0x47e   : > { %v2364_v24 = vpop.f32.mrf.mxu1 }
 0x47f   : > { %v2365_v60 = vadd.f32 %v5273_v43, %v2364_v24  ;;  %v2417_v7 = vmax.f32 %v2373_v23, 0.0  ;;  %6047 = vmatpush3.bf16.msra.mxu0 %v6429_v10 }
 0x480   : > { %v5971_v31 = vpop.f32.mrf.mxu1  ;;  %6048 = vmatprep.subr.bf16.mxu0 %v6430_v42 }
 0x481   : > { %v2376_v63 = vadd.f32 %v5971_v31, %v5273_v43  ;;  %v2415_v0 = vmax.f32 %v2365_v60, 0.0 }
 0x482   : > { %v2367_v61 = vpop.f32.mrf.mxu1 }
 0x483   : > { %v2368_v28 = vadd.f32 %v5273_v43, %v2367_v61  ;;  %v2418_v59 = vmax.f32 %v2376_v63, 0.0  ;;  %6049 = vmatpush3.bf16.msra.mxu0 %v6430_v42 }
 0x484   : > { %6050 = vmatprep.subr.bf16.mxu0 %v6431_v46 }
 0x485   : > { %v2416_v34 = vmax.f32 %v2368_v28, 0.0  ;;  %v2447_v38 = vpack.c.bf16 %v2418_v59, %v2417_v7 }
 0x487   : > { %v2446_v12 = vpack.c.bf16 %v2416_v34, %v2415_v0  ;;  %6051 = vmatpush3.bf16.msra.mxu0 %v6431_v46 }
 0x488   : > { %6052 = vmatprep.subr.bf16.mxu0 %v6432_v3 }
 0x489   : > { %6000 = vmatprep.mubr.bf16.mxu0 %v2446_v12 }
 0x48a   : > { %6001 = vmatmul.mubr.bf16.gmra.mxu0 %v2447_v38 }
 0x48b   : > { %6053 = vmatpush3.bf16.msra.mxu0 %v6432_v3 }
 0x48c   : > { %v5974_v44 = vpop.f32.mrf.mxu1 }
 0x48d   : > { %v2389_v56 = vadd.f32 %v5974_v44, %v5273_v43 }
 0x48e   : > { %v2380_v27 = vpop.f32.mrf.mxu1 }
 0x48f   : > { %v2381_v48 = vadd.f32 %v5273_v43, %v2380_v27  ;;  %v2421_v17 = vmax.f32 %v2389_v56, 0.0 }
 0x490   : > { %v5975_v47 = vpop.f32.mrf.mxu1 }
 0x491   : > { %v2392_v52 = vadd.f32 %v5975_v47, %v5273_v43  ;;  %v2419_v32 = vmax.f32 %v2381_v48, 0.0 }
 0x492   : > { %v2383_v29 = vpop.f32.mrf.mxu1 }
 0x493   : > { %v2384_v13 = vadd.f32 %v5273_v43, %v2383_v29  ;;  %v2422_v20 = vmax.f32 %v2392_v52, 0.0 }
 0x495   : > { %v2420_v57 = vmax.f32 %v2384_v13, 0.0  ;;  %v2449_v1 = vpack.c.bf16 %v2422_v20, %v2421_v17 }
 0x497   : > { %v2448_v30 = vpack.c.bf16 %v2420_v57, %v2419_v32 }
 0x499   : > { %6004 = vmatprep.mubr.bf16.mxu0 %v2448_v30 }
 0x49a   : > { %6005 = vmatmul.mubr.bf16.gmra.mxu0 %v2449_v1  ;;  %v6433_v1 = vld [vmem:[#allocation14 + $0x10] sm:$0xff]  }
 0x49b   : > { %6054 = vmatprep.subr.bf16.mxu0 %v6433_v1 }
 0x49c   : > { %v5978_v4 = vpop.f32.mrf.mxu1  ;;  %6055 = vmatpush3.bf16.msra.mxu0 %v6433_v1 }
 0x49d   : > { %v2405_v36 = vadd.f32 %v5978_v4, %v5273_v43  ;;  %v6434_v4 = vld [vmem:[#allocation14 + $0x8] sm:$0xff]  }
 0x49e   : > { %v2396_v62 = vpop.f32.mrf.mxu1  ;;  %6056 = vmatprep.subr.bf16.mxu0 %v6434_v4 }
 0x49f   : > { %v2397_v33 = vadd.f32 %v5273_v43, %v2396_v62  ;;  %v2425_v41 = vmax.f32 %v2405_v36, 0.0  ;;  %v6435_v62 = vld [vmem:[#allocation14] sm:$0xff]  }
 0x4a0   : > { %v5979_v25 = vpop.f32.mrf.mxu1  ;;  %6057 = vmatpush3.bf16.msra.mxu0 %v6434_v4  ;;  %v6439_v36 = vld [vmem:[#allocation16 + $0x20] sm:$0xff]   ;;  %v6441_v4 = vld [vmem:[#allocation16 + $0x10] sm:$0xff]  }
 0x4a1   : > { %v2408_v2 = vadd.f32 %v5979_v25, %v5273_v43  ;;  %v2423_v26 = vmax.f32 %v2397_v33, 0.0  ;;  %6058 = vmatprep.subr.bf16.mxu0 %v6435_v62  ;;  %v6436_v25 = vld [vmem:[#allocation16 + $0x38] sm:$0xff]   ;;  %v6437_v33 = vld [vmem:[#allocation16 + $0x30] sm:$0xff]  }
 0x4a2   : > { %v2399_v40 = vpop.f32.mrf.mxu1  ;;  %6076 = vmatprep.subr.bf16.mxu1 %v6436_v25 }
 0x4a3   : > { %v2400_v45 = vadd.f32 %v5273_v43, %v2399_v40  ;;  %v2426_v49 = vmax.f32 %v2408_v2, 0.0  ;;  %v6438_v2 = vld [vmem:[#allocation16 + $0x28] sm:$0xff]   ;;  %v6440_v40 = vld [vmem:[#allocation16 + $0x18] sm:$0xff]  }
 0x4a4   : > { %6059 = vmatpush3.bf16.msra.mxu0 %v6435_v62  ;;  %v6442_v62 = vld [vmem:[#allocation16 + $0x8] sm:$0xff]  }
 0x4a5   : > { %v2424_v5 = vmax.f32 %v2400_v45, 0.0  ;;  %v2451_v35 = vpack.c.bf16 %v2426_v49, %v2425_v41 }
 0x4a7   : > { %v2450_v8 = vpack.c.bf16 %v2424_v5, %v2423_v26  ;;  %v5291_v26 = vld [vmem:[%s8581_s12] ss:$0 sm:$0xff] }
 0x4a9   : > { %6008 = vmatprep.mubr.bf16.mxu0 %v2450_v8 }
 0x4aa   : > { %6009 = vmatmul.mubr.bf16.gmra.mxu0 %v2451_v35 }
 0x53a   : > { %v5998_v55 = vpop.f32.mrf.mxu0 }
 0x53b   : > { %v2549_v53 = vadd.f32 %v5998_v55, %v5282_v19 }
 0x53c   : > { %v2540_v43 = vpop.f32.mrf.mxu0 }
 0x53d   : > { %v2541_v54 = vadd.f32 %v5282_v19, %v2540_v43 }
 0x53e   : > { %v5999_v11 = vpop.f32.mrf.mxu0 }
 0x53f   : > { %v2552_v21 = vadd.f32 %v5999_v11, %v5282_v19 }
 0x540   : > { %v2543_v50 = vpop.f32.mrf.mxu0 }
 0x541   : > { %v2544_v58 = vadd.f32 %v5282_v19, %v2543_v50  ;;  %v2621_v18 = vpack.c.bf16 %v2552_v21, %v2549_v53 }
 0x543   : > { %v2620_v15 = vpack.c.bf16 %v2544_v58, %v2541_v54 }
 0x545   : > { %6028 = vmatprep.mubr.bf16.mxu1 %v2620_v15 }
 0x546   : > { %6029 = vmatmul.mubr.bf16.vlgmr.msra.gmra.mxu1 %v2621_v18 }
 0x547   : > { %6077 = vmatpush3.bf16.msra.mxu1 %v6436_v25  ;;  %v6443_v25 = vld [vmem:[#allocation16] sm:$0xff]  }
 0x548   : > { %6078 = vmatprep.subr.bf16.mxu1 %v6437_v33 }
 0x54a   : > { %v6002_v6 = vpop.f32.mrf.mxu0 }
 0x54b   : > { %v2565_v63 = vadd.f32 %v6002_v6, %v5282_v19  ;;  %6079 = vmatpush3.bf16.msra.mxu1 %v6437_v33  ;;  %v6444_v33 = vld [vmem:[#allocation17 + $0x38] sm:$0xff]  }
 0x54c   : > { %v2556_v22 = vpop.f32.mrf.mxu0  ;;  %6080 = vmatprep.subr.bf16.mxu1 %v6438_v2  ;;  %6108 = vmatprep.subr.bf16.mxu0 %v6444_v33 }
 0x54d   : > { %v2557_v31 = vadd.f32 %v5282_v19, %v2556_v22 }
 0x54e   : > { %v6003_v51 = vpop.f32.mrf.mxu0 }
 0x54f   : > { %v2568_v16 = vadd.f32 %v6003_v51, %v5282_v19  ;;  %6081 = vmatpush3.bf16.msra.mxu1 %v6438_v2  ;;  %v6445_v2 = vld [vmem:[#allocation17 + $0x30] sm:$0xff]  }
 0x550   : > { %v2559_v24 = vpop.f32.mrf.mxu0  ;;  %6082 = vmatprep.subr.bf16.mxu1 %v6439_v36 }
 0x551   : > { %v2560_v60 = vadd.f32 %v5282_v19, %v2559_v24  ;;  %v2623_v61 = vpack.c.bf16 %v2568_v16, %v2565_v63 }
 0x553   : > { %v2622_v23 = vpack.c.bf16 %v2560_v60, %v2557_v31  ;;  %6083 = vmatpush3.bf16.msra.mxu1 %v6439_v36  ;;  %v6446_v36 = vld [vmem:[#allocation17 + $0x28] sm:$0xff]  }
 0x554   : > { %6084 = vmatprep.subr.bf16.mxu1 %v6440_v40 }
 0x555   : > { %6032 = vmatprep.mubr.bf16.mxu1 %v2622_v23 }
 0x556   : > { %6033 = vmatmul.mubr.bf16.gmra.mxu1 %v2623_v61 }
 0x557   : > { %6085 = vmatpush3.bf16.msra.mxu1 %v6440_v40  ;;  %v6447_v40 = vld [vmem:[#allocation17 + $0x20] sm:$0xff]  }
 0x558   : > { %6086 = vmatprep.subr.bf16.mxu1 %v6441_v4 }
 0x55a   : > { %v6006_v28 = vpop.f32.mrf.mxu0 }
 0x55b   : > { %v2581_v44 = vadd.f32 %v6006_v28, %v5282_v19  ;;  %6087 = vmatpush3.bf16.msra.mxu1 %v6441_v4 }
 0x55c   : > { %v2572_v59 = vpop.f32.mrf.mxu0  ;;  %6088 = vmatprep.subr.bf16.mxu1 %v6442_v62 }
 0x55d   : > { %v2573_v12 = vadd.f32 %v5282_v19, %v2572_v59 }
 0x55e   : > { %v6007_v0 = vpop.f32.mrf.mxu0 }
 0x55f   : > { %v2584_v34 = vadd.f32 %v6007_v0, %v5282_v19  ;;  %6089 = vmatpush3.bf16.msra.mxu1 %v6442_v62  ;;  %v6449_v62 = vld [vmem:[#allocation17 + $0x10] sm:$0xff]  }
 0x560   : > { %v2575_v7 = vpop.f32.mrf.mxu0  ;;  %6090 = vmatprep.subr.bf16.mxu1 %v6443_v25 }
 0x561   : > { %v2576_v38 = vadd.f32 %v5282_v19, %v2575_v7  ;;  %v2625_v47 = vpack.c.bf16 %v2584_v34, %v2581_v44 }
 0x563   : > { %v2624_v27 = vpack.c.bf16 %v2576_v38, %v2573_v12  ;;  %6091 = vmatpush3.bf16.msra.mxu1 %v6443_v25  ;;  %v6450_v25 = vld [vmem:[#allocation17 + $0x8] sm:$0xff]  }
 0x565   : > { %6036 = vmatprep.mubr.bf16.mxu1 %v2624_v27 }
 0x566   : > { %6037 = vmatmul.mubr.bf16.gmra.mxu1 %v2625_v47 }
 0x56a   : > { %v6010_v48 = vpop.f32.mrf.mxu0 }
 0x56b   : > { %v2597_v57 = vadd.f32 %v6010_v48, %v5282_v19 }
 0x56c   : > { %v2588_v52 = vpop.f32.mrf.mxu0 }
 0x56d   : > { %v2589_v20 = vadd.f32 %v5282_v19, %v2588_v52 }
 0x56e   : > { %v6011_v56 = vpop.f32.mrf.mxu0 }
 0x56f   : > { %v2600_v29 = vadd.f32 %v6011_v56, %v5282_v19 }
 0x570   : > { %v2591_v13 = vpop.f32.mrf.mxu0 }
 0x571   : > { %v2592_v32 = vadd.f32 %v5282_v19, %v2591_v13  ;;  %v2627_v30 = vpack.c.bf16 %v2600_v29, %v2597_v57 }
 0x573   : > { %v2626_v17 = vpack.c.bf16 %v2592_v32, %v2589_v20 }
 0x575   : > { %6040 = vmatprep.mubr.bf16.mxu1 %v2626_v17 }
 0x576   : > { %6041 = vmatmul.mubr.bf16.gmra.mxu1 %v2627_v30 }
 0x606   : > { %v6030_v45 = vpop.f32.mrf.mxu1 }
 0x607   : > { %v2725_v35 = vadd.f32 %v6030_v45, %v5291_v26  ;;  %v6448_v45 = vld [vmem:[#allocation17 + $0x18] sm:$0xff]  }
 0x608   : > { %v2716_v49 = vpop.f32.mrf.mxu1 }
 0x609   : > { %v2717_v41 = vadd.f32 %v5291_v26, %v2716_v49  ;;  %v2781_v42 = vmax.f32 %v2725_v35, 0.0 }
 0x60a   : > { %v6031_v5 = vpop.f32.mrf.mxu1 }
 0x60b   : > { %v2728_v8 = vadd.f32 %v6031_v5, %v5291_v26  ;;  %v2779_v14 = vmax.f32 %v2717_v41, 0.0  ;;  %v5300_v5 = vld [vmem:[%s8583_s14] ss:$0 sm:$0xff] }
 0x60c   : > { %v2719_v39 = vpop.f32.mrf.mxu1 }
 0x60d   : > { %v2720_v9 = vadd.f32 %v5291_v26, %v2719_v39  ;;  %v2782_v37 = vmax.f32 %v2728_v8, 0.0 }
 0x60f   : > { %v2780_v10 = vmax.f32 %v2720_v9, 0.0  ;;  %v2813_v3 = vpack.c.bf16 %v2782_v37, %v2781_v42 }
 0x611   : > { %v2812_v46 = vpack.c.bf16 %v2780_v10, %v2779_v14 }
 0x613   : > { %6060 = vmatprep.mubr.bf16.mxu0 %v2812_v46 }
 0x614   : > { %6061 = vmatmul.mubr.bf16.vlgmr.msra.gmra.mxu0 %v2813_v3 }
 0x615   : > { %6109 = vmatpush3.bf16.msra.mxu0 %v6444_v33  ;;  %v6451_v33 = vld [vmem:[#allocation17] sm:$0xff]  }
 0x616   : > { %v6034_v55 = vpop.f32.mrf.mxu1  ;;  %6110 = vmatprep.subr.bf16.mxu0 %v6445_v2 }
 0x617   : > { %v2741_v50 = vadd.f32 %v6034_v55, %v5291_v26 }
 0x618   : > { %v2732_v43 = vpop.f32.mrf.mxu1 }
 0x619   : > { %v2733_v19 = vadd.f32 %v5291_v26, %v2732_v43  ;;  %v2785_v6 = vmax.f32 %v2741_v50, 0.0  ;;  %6111 = vmatpush3.bf16.msra.mxu0 %v6445_v2  ;;  %v6452_v2 = vld [vmem:[#allocation19 + $0x188] ss:$28 sps:$4 sm:$0xff]  }
 0x61a   : > { %v6035_v11 = vpop.f32.mrf.mxu1  ;;  %6112 = vmatprep.subr.bf16.mxu0 %v6446_v36 }
 0x61b   : > { %v2744_v21 = vadd.f32 %v6035_v11, %v5291_v26  ;;  %v2783_v15 = vmax.f32 %v2733_v19, 0.0 }
 0x61c   : > { %v2735_v54 = vpop.f32.mrf.mxu1 }
 0x61d   : > { %v2736_v58 = vadd.f32 %v5291_v26, %v2735_v54  ;;  %v2786_v53 = vmax.f32 %v2744_v21, 0.0  ;;  %6113 = vmatpush3.bf16.msra.mxu0 %v6446_v36  ;;  %v6454_v36 = vld [vmem:[#allocation19 + $0x18c] ss:$28 sps:$4 sm:$0xff]  }
 0x61e   : > { %6114 = vmatprep.subr.bf16.mxu0 %v6447_v40  ;;  %3768 = vmatprep.subr.bf16.mxu1 %v6454_v36 }
 0x61f   : > { %v2784_v18 = vmax.f32 %v2736_v58, 0.0  ;;  %v2815_v51 = vpack.c.bf16 %v2786_v53, %v2785_v6 }
 0x621   : > { %v2814_v22 = vpack.c.bf16 %v2784_v18, %v2783_v15  ;;  %6115 = vmatpush3.bf16.msra.mxu0 %v6447_v40  ;;  %v6457_v40 = vld [vmem:[#allocation19 + $0x194] ss:$28 sps:$4 sm:$0xff]  }
 0x622   : > { %6116 = vmatprep.subr.bf16.mxu0 %v6448_v45 }
 0x623   : > { %6064 = vmatprep.mubr.bf16.mxu0 %v2814_v22 }
 0x624   : > { %6065 = vmatmul.mubr.bf16.gmra.mxu0 %v2815_v51 }
 0x625   : > { %6117 = vmatpush3.bf16.msra.mxu0 %v6448_v45  ;;  %v6460_v45 = vld [vmem:[#allocation19 + $0x154] ss:$28 sps:$4 sm:$0xff]  }
 0x626   : > { %v6038_v16 = vpop.f32.mrf.mxu1  ;;  %6118 = vmatprep.subr.bf16.mxu0 %v6449_v62 }
 0x627   : > { %v2757_v23 = vadd.f32 %v6038_v16, %v5291_v26 }
 0x628   : > { %v2748_v24 = vpop.f32.mrf.mxu1 }
 0x629   : > { %v2749_v60 = vadd.f32 %v5291_v26, %v2748_v24  ;;  %v2789_v7 = vmax.f32 %v2757_v23, 0.0  ;;  %6119 = vmatpush3.bf16.msra.mxu0 %v6449_v62 }
 0x62a   : > { %v6039_v31 = vpop.f32.mrf.mxu1  ;;  %6120 = vmatprep.subr.bf16.mxu0 %v6450_v25 }
 0x62b   : > { %v2760_v63 = vadd.f32 %v6039_v31, %v5291_v26  ;;  %v2787_v0 = vmax.f32 %v2749_v60, 0.0 }
 0x62c   : > { %v2751_v61 = vpop.f32.mrf.mxu1 }
 0x62d   : > { %v2752_v28 = vadd.f32 %v5291_v26, %v2751_v61  ;;  %v2790_v59 = vmax.f32 %v2760_v63, 0.0  ;;  %6121 = vmatpush3.bf16.msra.mxu0 %v6450_v25 }
 0x62e   : > { %6122 = vmatprep.subr.bf16.mxu0 %v6451_v33 }
 0x62f   : > { %v2788_v34 = vmax.f32 %v2752_v28, 0.0  ;;  %v2817_v38 = vpack.c.bf16 %v2790_v59, %v2789_v7 }
 0x631   : > { %v2816_v12 = vpack.c.bf16 %v2788_v34, %v2787_v0  ;;  %6123 = vmatpush3.bf16.msra.mxu0 %v6451_v33 }
 0x632   : > { %3881 = vmatprep.subr.bf16.mxu0 %v6457_v40 }
 0x633   : > { %6068 = vmatprep.mubr.bf16.mxu0 %v2816_v12 }
 0x634   : > { %6069 = vmatmul.mubr.bf16.gmra.mxu0 %v2817_v38 }
 0x636   : > { %v6042_v44 = vpop.f32.mrf.mxu1 }
 0x637   : > { %v2773_v56 = vadd.f32 %v6042_v44, %v5291_v26 }
 0x638   : > { %v2764_v27 = vpop.f32.mrf.mxu1 }
 0x639   : > { %v2765_v48 = vadd.f32 %v5291_v26, %v2764_v27  ;;  %v2793_v17 = vmax.f32 %v2773_v56, 0.0 }
 0x63a   : > { %v6043_v47 = vpop.f32.mrf.mxu1 }
 0x63b   : > { %v2776_v52 = vadd.f32 %v6043_v47, %v5291_v26  ;;  %v2791_v32 = vmax.f32 %v2765_v48, 0.0 }
 0x63c   : > { %v2767_v29 = vpop.f32.mrf.mxu1 }
 0x63d   : > { %v2768_v13 = vadd.f32 %v5291_v26, %v2767_v29  ;;  %v2794_v20 = vmax.f32 %v2776_v52, 0.0 }
 0x63f   : > { %v2792_v57 = vmax.f32 %v2768_v13, 0.0  ;;  %v2819_v1 = vpack.c.bf16 %v2794_v20, %v2793_v17 }
 0x641   : > { %v2818_v30 = vpack.c.bf16 %v2792_v57, %v2791_v32 }
 0x643   : > { %6072 = vmatprep.mubr.bf16.mxu0 %v2818_v30 }
 0x644   : > { %6073 = vmatmul.mubr.bf16.gmra.mxu0 %v2819_v1 }
 0x6d4   : > { %v6062_v49 = vpop.f32.mrf.mxu0 }
 0x6d5   : > { %v2917_v39 = vadd.f32 %v6062_v49, %v5300_v5  ;;  %v6458_v49 = vld [vmem:[#allocation19 + $0x150] ss:$28 sps:$4 sm:$0xff]  }
 0x6d6   : > { %v2908_v26 = vpop.f32.mrf.mxu0 }
 0x6d7   : > { %v2909_v8 = vadd.f32 %v5300_v5, %v2908_v26  ;;  %v2973_v46 = vmax.f32 %v2917_v39, 0.0  ;;  %v6466_v26 = vld [vmem:[#allocation19 + $0x11c] ss:$28 sps:$4 sm:$0xff]   ;;  %v6476_v39 = vld [vmem:[#allocation19 + $0xa8] ss:$28 sps:$4 sm:$0xff]  }
 0x6d8   : > { %v6063_v41 = vpop.f32.mrf.mxu0 }
 0x6d9   : > { %v2920_v35 = vadd.f32 %v6063_v41, %v5300_v5  ;;  %v2971_v10 = vmax.f32 %v2909_v8, 0.0  ;;  %v6472_v41 = vld [vmem:[#allocation19 + $0xe4] ss:$28 sps:$4 sm:$0xff]  }
 0x6da   : > { %v2911_v9 = vpop.f32.mrf.mxu0  ;;  %v6470_v8 = vld [vmem:[#allocation19 + $0xe0] ss:$28 sps:$4 sm:$0xff]  }
 0x6db   : > { %v2912_v37 = vadd.f32 %v5300_v5, %v2911_v9  ;;  %v2974_v14 = vmax.f32 %v2920_v35, 0.0  ;;  %v6478_v35 = vld [vmem:[#allocation19 + $0xac] ss:$28 sps:$4 sm:$0xff]  }
 0x6dd   : > { %v2972_v42 = vmax.f32 %v2912_v37, 0.0  ;;  %v3005_v55 = vpack.c.bf16 %v2974_v14, %v2973_v46  ;;  %v8016_v14 = vld [vmem:[%s8585_s16] ss:$0 sm:$0xff] }
 0x6df   : > { %v3004_v3 = vpack.c.bf16 %v2972_v42, %v2971_v10 }
 0x6e1   : > { %6092 = vmatprep.mubr.bf16.mxu1 %v3004_v3 }
 0x6e2   : > { %6093 = vmatmul.mubr.bf16.vlgmr.msra.gmra.mxu1 %v3005_v55 }
 0x6e3   : > { %3769 = vmatpush1.bf16.msra.mxu1 %v6452_v2 }
 0x6e4   : > { %v6066_v43 = vpop.f32.mrf.mxu0  ;;  %3770 = vmatprep.subr.bf16.mxu1 %v6460_v45 }
 0x6e5   : > { %v2933_v54 = vadd.f32 %v6066_v43, %v5300_v5 }
 0x6e6   : > { %v2924_v11 = vpop.f32.mrf.mxu0 }
 0x6e7   : > { %v2925_v21 = vadd.f32 %v5300_v5, %v2924_v11  ;;  %v2977_v22 = vmax.f32 %v2933_v54, 0.0  ;;  %3771 = vmatpush1.bf16.msra.mxu1 %v6458_v49 }
 0x6e8   : > { %v6067_v19 = vpop.f32.mrf.mxu0  ;;  %3772 = vmatprep.subr.bf16.mxu1 %v6466_v26 }
 0x6e9   : > { %v2936_v50 = vadd.f32 %v6067_v19, %v5300_v5  ;;  %v2975_v18 = vmax.f32 %v2925_v21, 0.0 }
 0x6ea   : > { %v2927_v58 = vpop.f32.mrf.mxu0 }
 0x6eb   : > { %v2928_v53 = vadd.f32 %v5300_v5, %v2927_v58  ;;  %v2978_v15 = vmax.f32 %v2936_v50, 0.0  ;;  %v6455_v58 = vld [vmem:[#allocation19 + $0x190] ss:$28 sps:$4 sm:$0xff]  }
 0x6ed   : > { %v2976_v6 = vmax.f32 %v2928_v53, 0.0  ;;  %v3007_v16 = vpack.c.bf16 %v2978_v15, %v2977_v22  ;;  %v6463_v15 = vld [vmem:[#allocation19 + $0x15c] ss:$28 sps:$4 sm:$0xff]   ;;  %v6469_v22 = vld [vmem:[#allocation19 + $0x124] ss:$28 sps:$4 sm:$0xff]  }
 0x6ef   : > { %v3006_v51 = vpack.c.bf16 %v2976_v6, %v2975_v18  ;;  %v6461_v18 = vld [vmem:[#allocation19 + $0x158] ss:$28 sps:$4 sm:$0xff]  }
 0x6f1   : > { %6096 = vmatprep.mubr.bf16.mxu1 %v3006_v51 }
 0x6f2   : > { %6097 = vmatmul.mubr.bf16.gmra.mxu1 %v3007_v16  ;;  %v6467_v16 = vld [vmem:[#allocation19 + $0x120] ss:$28 sps:$4 sm:$0xff]  }
 0x6f4   : > { %v6070_v24 = vpop.f32.mrf.mxu0 }
 0x6f5   : > { %v2949_v61 = vadd.f32 %v6070_v24, %v5300_v5 }
 0x6f6   : > { %v2940_v31 = vpop.f32.mrf.mxu0 }
 0x6f7   : > { %v2941_v63 = vadd.f32 %v5300_v5, %v2940_v31  ;;  %v2981_v12 = vmax.f32 %v2949_v61, 0.0  ;;  %v6475_v31 = vld [vmem:[#allocation19 + $0xec] ss:$28 sps:$4 sm:$0xff]  }
 0x6f8   : > { %v6071_v60 = vpop.f32.mrf.mxu0 }
 0x6f9   : > { %v2952_v23 = vadd.f32 %v6071_v60, %v5300_v5  ;;  %v2979_v34 = vmax.f32 %v2941_v63, 0.0 }
 0x6fa   : > { %v2943_v28 = vpop.f32.mrf.mxu0 }
 0x6fb   : > { %v2944_v59 = vadd.f32 %v5300_v5, %v2943_v28  ;;  %v2982_v0 = vmax.f32 %v2952_v23, 0.0 }
 0x6fd   : > { %v2980_v7 = vmax.f32 %v2944_v59, 0.0  ;;  %v3009_v44 = vpack.c.bf16 %v2982_v0, %v2981_v12  ;;  %v6473_v59 = vld [vmem:[#allocation19 + $0xe8] ss:$28 sps:$4 sm:$0xff]  }
 0x6ff   : > { %v3008_v38 = vpack.c.bf16 %v2980_v7, %v2979_v34  ;;  %v6481_v34 = vld [vmem:[#allocation19 + $0xb4] ss:$28 sps:$4 sm:$0xff]  }
 0x701   : > { %6100 = vmatprep.mubr.bf16.mxu1 %v3008_v38 }
 0x702   : > { %6101 = vmatmul.mubr.bf16.gmra.mxu1 %v3009_v44 }
 0x704   : > { %v6074_v27 = vpop.f32.mrf.mxu0 }
 0x705   : > { %v2965_v29 = vadd.f32 %v6074_v27, %v5300_v5  ;;  %v6479_v27 = vld [vmem:[#allocation19 + $0xb0] ss:$28 sps:$4 sm:$0xff]  }
 0x706   : > { %v2956_v47 = vpop.f32.mrf.mxu0 }
 0x707   : > { %v2957_v52 = vadd.f32 %v5300_v5, %v2956_v47  ;;  %v2985_v30 = vmax.f32 %v2965_v29, 0.0 }
 0x708   : > { %v6075_v48 = vpop.f32.mrf.mxu0 }
 0x709   : > { %v2968_v56 = vadd.f32 %v6075_v48, %v5300_v5  ;;  %v2983_v57 = vmax.f32 %v2957_v52, 0.0 }
 0x70a   : > { %v2959_v13 = vpop.f32.mrf.mxu0 }
 0x70b   : > { %v2960_v20 = vadd.f32 %v5300_v5, %v2959_v13  ;;  %v2986_v32 = vmax.f32 %v2968_v56, 0.0  ;;  %v6464_v5 = vld [vmem:[#allocation19 + $0x118] ss:$28 sps:$4 sm:$0xff]  }
 0x70c   : > { %3773 = vmatpush1.bf16.msra.mxu1 %v6464_v5 }
 0x70d   : > { %v2984_v17 = vmax.f32 %v2960_v20, 0.0  ;;  %v3011_v4 = vpack.c.bf16 %v2986_v32, %v2985_v30  ;;  %3774 = vmatprep.subr.bf16.mxu1 %v6472_v41 }
 0x70f   : > { %v3010_v1 = vpack.c.bf16 %v2984_v17, %v2983_v57 }
 0x710   : > { %3775 = vmatpush1.bf16.msra.mxu1 %v6470_v8 }
 0x711   : > { %6104 = vmatprep.mubr.bf16.mxu1 %v3010_v1  ;;  %3776 = vmatprep.subr.bf16.mxu1 %v6478_v35 }
 0x712   : > { %6105 = vmatmul.mubr.bf16.gmra.mxu1 %v3011_v4 }
 0x714   : > { %3777 = vmatpush1.bf16.msra.mxu1 %v6476_v39 }
 0x7a2   : > { %v6094_v9 = vpop.f32.mrf.mxu1 }
 0x7a3   : > { %v3109_v3 = vadd.f32 %v6094_v9, %v8016_v14 }
 0x7a4   : > { %v3100_v37 = vpop.f32.mrf.mxu1 }
 0x7a5   : > { %v3101_v42 = vadd.f32 %v8016_v14, %v3100_v37  ;;  %v3165_v50 = vmax.f32 %v3109_v3, 0.0  ;;  %v6485_v3 = vld [vmem:[#allocation19 + $0x78] ss:$28 sps:$4 sm:$0xff]  }
 0x7a6   : > { %v6095_v10 = vpop.f32.mrf.mxu1 }
 0x7a7   : > { %v3112_v46 = vadd.f32 %v6095_v10, %v8016_v14  ;;  %v3163_v19 = vmax.f32 %v3101_v42, 0.0  ;;  %v6484_v10 = vld [vmem:[#allocation19 + $0x74] ss:$28 sps:$4 sm:$0xff]   ;;  %v6487_v42 = vld [vmem:[#allocation19 + $0x7c] ss:$28 sps:$4 sm:$0xff]  }
 0x7a8   : > { %v3103_v55 = vpop.f32.mrf.mxu1  ;;  %3778 = vmatprep.subr.bf16.mxu1 %v6484_v10  ;;  %v6530_v10 = vld [vmem:[#allocation19 + $0x50] ss:$28 sps:$4 sm:$0xff]  }
 0x7a9   : > { %v3104_v43 = vadd.f32 %v8016_v14, %v3103_v55  ;;  %v3166_v11 = vmax.f32 %v3112_v46, 0.0  ;;  %v6482_v46 = vld [vmem:[#allocation19 + $0x70] ss:$28 sps:$4 sm:$0xff]   ;;  %v6490_v55 = vld [vmem:[#allocation19 + $0x3c] ss:$28 sps:$4 sm:$0xff]  }
 0x7aa   : > { %3779 = vmatpush1.bf16.msra.mxu1 %v6482_v46  ;;  %v6529_v46 = vld [vmem:[#allocation19 + $0x14] ss:$28 sps:$4 sm:$0xff]  }
 0x7ab   : > { %v3164_v21 = vmax.f32 %v3104_v43, 0.0  ;;  %v3197_v53 = vpack.c.bf16 %v3166_v11, %v3165_v50  ;;  %v6493_v43 = vld [vmem:[#allocation19 + $0x44] ss:$28 sps:$4 sm:$0xff]   ;;  %v6488_v11 = vld [vmem:[#allocation19 + $0x38] ss:$28 sps:$4 sm:$0xff]   ;;  %3780 = vmatprep.subr.bf16.mxu1 %v6490_v55 }
 0x7ac   : > { %v6494_v50 = vld [vmem:[#allocation19] ss:$28 sps:$4 sm:$0xff]   ;;  %v6531_v55 = vld [vmem:[#allocation19 + $0x18] ss:$28 sps:$4 sm:$0xff]  }
 0x7ad   : > { %v3196_v54 = vpack.c.bf16 %v3164_v21, %v3163_v19  ;;  %v6496_v19 = vld [vmem:[#allocation19 + $0x4] ss:$28 sps:$4 sm:$0xff]   ;;  %v6499_v21 = vld [vmem:[#allocation19 + $0xc] ss:$28 sps:$4 sm:$0xff]  }
 0x7ae   : > { %3781 = vmatpush1.bf16.msra.mxu1 %v6488_v11 }
 0x7af   : > { %6124 = vmatprep.mubr.bf16.mxu0 %v3196_v54  ;;  %v6497_v54 = vld [vmem:[#allocation19 + $0x8] ss:$28 sps:$4 sm:$0xff]   ;;  %3782 = vmatprep.subr.bf16.mxu1 %v6496_v19 }
 0x7b0   : > { %6125 = vmatmul.mubr.bf16.vlgmr.msra.gmra.mxu0 %v3197_v53  ;;  %v6502_v53 = vld [vmem:[#allocation19 + $0x19c] ss:$28 sps:$4 sm:$0xff]  }
 0x7b1   : > { %3882 = vmatpush1.bf16.msra.mxu0 %v6455_v58  ;;  %v7372_v58 = vmov 0  }
 0x7b2   : > { %v6098_v6 = vpop.f32.mrf.mxu1  ;;  %3883 = vmatprep.subr.bf16.mxu0 %v6463_v15  ;;  %3783 = vmatpush1.bf16.msra.mxu1 %v6494_v50  ;;  %v6515_v15 = vld [vmem:[#allocation19 + $0x1a0] ss:$28 sps:$4 sm:$0xff]  }
 0x7b3   : > { %v3125_v23 = vadd.f32 %v6098_v6, %v8016_v14  ;;  %3800 = vmatprep.mubr.bf16.mxu1 %v7372_v58  ;;  %3994 = vmatprep.subr.bf16.mxu1 %v6502_v53 }
 0x7b4   : > { %v3116_v51 = vpop.f32.mrf.mxu1 }
 0x7b5   : > { %3884 = vmatpush1.bf16.msra.mxu0 %v6461_v18  ;;  %v3117_v60 = vadd.f32 %v8016_v14, %v3116_v51  ;;  %v3169_v38 = vmax.f32 %v3125_v23, 0.0  ;;  %v6500_v23 = vld [vmem:[#allocation19 + $0x198] ss:$28 sps:$4 sm:$0xff]  }
 0x7b6   : > { %v6099_v24 = vpop.f32.mrf.mxu1  ;;  %3885 = vmatprep.subr.bf16.mxu0 %v6469_v22  ;;  %v8039_v22 = vld [vmem:[%s8646_s18] ss:$0 sm:$0xff]  ;;  %s7373_s18 = smov [#allocation20]  }
 0x7b7   : > { %v3128_v63 = vadd.f32 %v6099_v24, %v8016_v14  ;;  %v3167_v7 = vmax.f32 %v3117_v60, 0.0  ;;  %s7273_s17 = sshll.u32 %s7373_s18, 4  ;;  %s7274_s17 = int_to_ptr.vmem [resolvable:$false] %s7273_s17 }
 0x7b8   : > { %v3119_v61 = vpop.f32.mrf.mxu1  ;;  %s7275_s15 = scalar_lea.vmem %s7274_s17, 28672  ;;  %p7276_p4 = scmp.lt.s32.totalorder %s8524_s13, %s7274_s17 }
 0x7b9   : > { %v3120_v28 = vadd.f32 %v8016_v14, %v3119_v61  ;;  %3886 = vmatpush1.bf16.msra.mxu0 %v6467_v16  ;;  %v3170_v0 = vmax.f32 %v3128_v63, 0.0  ;;  %p7277_p9 = scmp.lt.s32.totalorder %s7275_s15, %s7269_s23 }
 0x7ba   : > { %3887 = vmatprep.subr.bf16.mxu0 %v6475_v31 }
 0x7bb   : > { %v3168_v12 = vmax.f32 %v3120_v28, 0.0  ;;  %v3199_v47 = vpack.c.bf16 %v3170_v0, %v3169_v38  ;;  %v6508_v38 = vld [vmem:[#allocation19 + $0x12c] ss:$28 sps:$4 sm:$0xff]   ;;  %p7278_p0 = por %p7277_p9, %p7276_p4 }
 0x7bd   : > { %v3198_v44 = vpack.c.bf16 %v3168_v12, %v3167_v7  ;;  %3888 = vmatpush1.bf16.msra.mxu0 %v6473_v59  ;;  %v6505_v59 = vld [vmem:[#allocation19 + $0x164] ss:$28 sps:$4 sm:$0xff]   ;;  %p7279_p2 = pnand %p7278_p0, %p7272_p3 }
 0x7be   : > { %3889 = vmatprep.subr.bf16.mxu0 %v6481_v34  ;;  %v6516_v34 = vld [vmem:[#allocation19 + $0x168] ss:$28 sps:$4 sm:$0xff]   ;;  %v6503_v7 = vld [vmem:[#allocation19 + $0x160] ss:$28 sps:$4 sm:$0xff]  }
 0x7bf   : > { %6128 = vmatprep.mubr.bf16.mxu0 %v3198_v44 }
 0x7c0   : > { %6129 = vmatmul.mubr.bf16.gmra.mxu0 %v3199_v47 }
 0x7c1   : > { %3890 = vmatpush1.bf16.msra.mxu0 %v6479_v27 }
 0x7c2   : > { %v6102_v48 = vpop.f32.mrf.mxu1  ;;  %3891 = vmatprep.subr.bf16.mxu0 %v6487_v42 }
 0x7c3   : > { %v3141_v20 = vadd.f32 %v6102_v48, %v8016_v14 }
 0x7c4   : > { %v3132_v52 = vpop.f32.mrf.mxu1 }
 0x7c5   : > { %v3133_v29 = vadd.f32 %v8016_v14, %v3132_v52  ;;  %v3173_v4 = vmax.f32 %v3141_v20, 0.0  ;;  %3892 = vmatpush1.bf16.msra.mxu0 %v6485_v3  ;;  %v6506_v52 = vld [vmem:[#allocation19 + $0x128] ss:$28 sps:$4 sm:$0xff]  }
 0x7c6   : > { %v6103_v56 = vpop.f32.mrf.mxu1  ;;  %3893 = vmatprep.subr.bf16.mxu0 %v6493_v43 }
 0x7c7   : > { %v3144_v13 = vadd.f32 %v6103_v56, %v8016_v14  ;;  %v3171_v30 = vmax.f32 %v3133_v29, 0.0  ;;  %v6520_v56 = vld [vmem:[#allocation19 + $0x130] ss:$28 sps:$4 sm:$0xff]  }
 0x7c8   : > { %v3135_v32 = vpop.f32.mrf.mxu1 }
 0x7c9   : > { %v3136_v57 = vadd.f32 %v8016_v14, %v3135_v32  ;;  %v3174_v17 = vmax.f32 %v3144_v13, 0.0  ;;  %v6511_v13 = vld [vmem:[#allocation19 + $0xf4] ss:$28 sps:$4 sm:$0xff]  }
 0x7ca   : > { %v6521_v32 = vld [vmem:[#allocation19 + $0xf8] ss:$28 sps:$4 sm:$0xff]  }
 0x7cb   : > { %v3172_v1 = vmax.f32 %v3136_v57, 0.0  ;;  %v3201_v25 = vpack.c.bf16 %v3174_v17, %v3173_v4 }
 0x7cd   : > { %v3200_v62 = vpack.c.bf16 %v3172_v1, %v3171_v30  ;;  %v6509_v30 = vld [vmem:[#allocation19 + $0xf0] ss:$28 sps:$4 sm:$0xff]   ;;  %v6514_v1 = vld [vmem:[#allocation19 + $0xbc] ss:$28 sps:$4 sm:$0xff]  }
 0x7cf   : > { %6132 = vmatprep.mubr.bf16.mxu0 %v3200_v62 }
 0x7d0   : > { %6133 = vmatmul.mubr.bf16.gmra.mxu0 %v3201_v25 }
 0x7d2   : > { %v6106_v33 = vpop.f32.mrf.mxu1 }
 0x7d3   : > { %v3157_v49 = vadd.f32 %v6106_v33, %v8016_v14 }
 0x7d4   : > { %v3148_v2 = vpop.f32.mrf.mxu1 }
 0x7d5   : > { %v3149_v40 = vadd.f32 %v8016_v14, %v3148_v2  ;;  %v3177_v39 = vmax.f32 %v3157_v49, 0.0  ;;  %v6512_v2 = vld [vmem:[#allocation19 + $0xb8] ss:$28 sps:$4 sm:$0xff]   ;;  %v6526_v49 = vld [vmem:[#allocation19 + $0x88] ss:$28 sps:$4 sm:$0xff]  }
 0x7d6   : > { %v6107_v36 = vpop.f32.mrf.mxu1 }
 0x7d7   : > { %v3160_v45 = vadd.f32 %v6107_v36, %v8016_v14  ;;  %v3175_v8 = vmax.f32 %v3149_v40, 0.0  ;;  %v6525_v36 = vld [vmem:[#allocation19 + $0xc0] ss:$28 sps:$4 sm:$0xff]  }
 0x7d8   : > { %v3151_v26 = vpop.f32.mrf.mxu1  ;;  %v6519_v40 = vld [vmem:[#allocation19 + $0x84] ss:$28 sps:$4 sm:$0xff]  }
 0x7d9   : > { %v3152_v5 = vadd.f32 %v8016_v14, %v3151_v26  ;;  %v3178_v41 = vmax.f32 %v3160_v45, 0.0  ;;  %v6491_v14 = vld [vmem:[#allocation19 + $0x40] ss:$28 sps:$4 sm:$0xff]  }
 0x7da   : > { %3894 = vmatpush1.bf16.msra.mxu0 %v6491_v14  ;;  %v6527_v14 = vld [vmem:[#allocation19 + $0x10] ss:$28 sps:$4 sm:$0xff]  }
 0x7db   : > { %v3176_v35 = vmax.f32 %v3152_v5, 0.0  ;;  %v3203_v37 = vpack.c.bf16 %v3178_v41, %v3177_v39  ;;  %3895 = vmatprep.subr.bf16.mxu0 %v6499_v21  ;;  %v6517_v5 = vld [vmem:[#allocation19 + $0x80] ss:$28 sps:$4 sm:$0xff]  }
 0x7dd   : > { %v3202_v9 = vpack.c.bf16 %v3176_v35, %v3175_v8  ;;  %v6524_v8 = vld [vmem:[#allocation19 + $0x4c] ss:$28 sps:$4 sm:$0xff]  }
 0x7de   : > { %3896 = vmatpush1.bf16.msra.mxu0 %v6497_v54 }
 0x7df   : > { %6136 = vmatprep.mubr.bf16.mxu0 %v3202_v9  ;;  %6140 = vmatprep.subr.bf16.mxu0 %v6515_v15 }
 0x7e0   : > { %6137 = vmatmul.mubr.bf16.gmra.mxu0 %v3203_v37  ;;  %v6522_v37 = vld [vmem:[#allocation19 + $0x48] ss:$28 sps:$4 sm:$0xff]  }
 0x7e1   : > { %3913 = vmatprep.mubr.bf16.mxu0 %v7372_v58 }
 0x870   : > { %v6126_v18 = vpop.f32.mrf.mxu0 }
 0x871   : > { %v3301_v0 = vadd.f32 %v6126_v18, %v8039_v22 }
 0x872   : > { %v3292_v6 = vpop.f32.mrf.mxu0 }
 0x873   : > { %v3293_v16 = vadd.f32 %v8039_v22, %v3292_v6  ;;  %v3357_v27 = vmax.f32 %v3301_v0, 0.0 }
 0x874   : > { %v6127_v51 = vpop.f32.mrf.mxu0 }
 0x875   : > { %v3355_v60 = vmax.f32 %v3293_v16, 0.0  ;;  %v3304_v61 = vadd.f32 %v6127_v51, %v8039_v22 }
 0x876   : > { %v3295_v24 = vpop.f32.mrf.mxu0 }
 0x877   : > { %v3296_v31 = vadd.f32 %v8039_v22, %v3295_v24  ;;  %v3358_v12 = vmax.f32 %v3304_v61, 0.0 }
 0x879   : > { %v3356_v63 = vmax.f32 %v3296_v31, 0.0  ;;  %v8051_v48 = vpack.c.bf16 %v3358_v12, %v3357_v27 }
 0x87b   : > { %v8044_v28 = vpack.c.bf16 %v3356_v63, %v3355_v60 }
 0x87d   : > { %3801 = vmatmul.mubr.bf16.vlgmr.msra.gmra.mxu1 %v8044_v28  ;;  %3914 = vmatmul.mubr.bf16.vlgmr.msra.gmra.mxu0 %v8044_v28 }
 0x87e   : > { %3995 = vmatpush1.bf16.msra.mxu1 %v6500_v23  ;;  %3810 = vmatprep.mubr.bf16.mxu1 %v7372_v58 }
 0x87f   : > { %3923 = vmatprep.mubr.bf16.mxu0 %v7372_v58  ;;  %3996 = vmatprep.subr.bf16.mxu1 %v6505_v59 }
 0x880   : > { %v6130_v44 = vpop.f32.mrf.mxu0  ;;  %6141 = vmatpush3.bf16.msra.mxu0 %v6515_v15 }
 0x881   : > { %6142 = vmatprep.subr.bf16.mxu0 %v6516_v34  ;;  %v3317_v45 = vadd.f32 %v6130_v44, %v8039_v22 }
 0x882   : > { %v3308_v47 = vpop.f32.mrf.mxu0  ;;  %3997 = vmatpush1.bf16.msra.mxu1 %v6503_v7 }
 0x883   : > { %3998 = vmatprep.subr.bf16.mxu1 %v6508_v38  ;;  %v3309_v20 = vadd.f32 %v8039_v22, %v3308_v47  ;;  %v3361_v35 = vmax.f32 %v3317_v45, 0.0  ;;  %v3435_v47 = vld [vmem:[%s8647_s19] sm:$0xff] }
 0x884   : > { %v6131_v29 = vpop.f32.mrf.mxu0  ;;  %6143 = vmatpush3.bf16.msra.mxu0 %v6516_v34 }
 0x885   : > { %3811 = vmatmul.mubr.bf16.gmra.mxu1 %v8051_v48  ;;  %3924 = vmatmul.mubr.bf16.gmra.mxu0 %v8051_v48  ;;  %v3359_v4 = vmax.f32 %v3309_v20, 0.0  ;;  %v3320_v25 = vadd.f32 %v6131_v29, %v8039_v22 }
 0x886   : > { %v3311_v57 = vpop.f32.mrf.mxu0  ;;  %3820 = vmatprep.mubr.bf16.mxu1 %v7372_v58  ;;  %3933 = vmatprep.mubr.bf16.mxu0 %v7372_v58 }
 0x887   : > { %v3312_v17 = vadd.f32 %v8039_v22, %v3311_v57  ;;  %3999 = vmatpush1.bf16.msra.mxu1 %v6506_v52  ;;  %6144 = vmatprep.subr.bf16.mxu0 %v6520_v56  ;;  %v3362_v26 = vmax.f32 %v3320_v25, 0.0 }
 0x888   : > { %4000 = vmatprep.subr.bf16.mxu1 %v6511_v13  ;;  %6145 = vmatpush3.bf16.msra.mxu0 %v6520_v56 }
 0x889   : > { %v3360_v62 = vmax.f32 %v3312_v17, 0.0  ;;  %6146 = vmatprep.subr.bf16.mxu0 %v6521_v32  ;;  %v8067_v9 = vpack.c.bf16 %v3362_v26, %v3361_v35 }
 0x88b   : > { %v8060_v33 = vpack.c.bf16 %v3360_v62, %v3359_v4  ;;  %4001 = vmatpush1.bf16.msra.mxu1 %v6509_v30 }
 0x88c   : > { %4002 = vmatprep.subr.bf16.mxu1 %v6514_v1  ;;  %6147 = vmatpush3.bf16.msra.mxu0 %v6521_v32 }
 0x88d   : > { %3821 = vmatmul.mubr.bf16.gmra.mxu1 %v8060_v33  ;;  %3934 = vmatmul.mubr.bf16.gmra.mxu0 %v8060_v33 }
 0x88e   : > { %3830 = vmatprep.mubr.bf16.mxu1 %v7372_v58  ;;  %3943 = vmatprep.mubr.bf16.mxu0 %v7372_v58 }
 0x88f   : > { %4003 = vmatpush1.bf16.msra.mxu1 %v6512_v2  ;;  %6148 = vmatprep.subr.bf16.mxu0 %v6525_v36 }
 0x890   : > { %v6134_v41 = vpop.f32.mrf.mxu0  ;;  %4004 = vmatprep.subr.bf16.mxu1 %v6519_v40  ;;  %6149 = vmatpush3.bf16.msra.mxu0 %v6525_v36 }
 0x891   : > { %6150 = vmatprep.subr.bf16.mxu0 %v6526_v49  ;;  %v3333_v53 = vadd.f32 %v6134_v41, %v8039_v22 }
 0x892   : > { %v3324_v39 = vpop.f32.mrf.mxu0 }
 0x893   : > { %4005 = vmatpush1.bf16.msra.mxu1 %v6517_v5  ;;  %v3325_v3 = vadd.f32 %v8039_v22, %v3324_v39  ;;  %v3365_v6 = vmax.f32 %v3333_v53, 0.0 }
 0x894   : > { %v6135_v42 = vpop.f32.mrf.mxu0  ;;  %4006 = vmatprep.subr.bf16.mxu1 %v6524_v8  ;;  %6151 = vmatpush3.bf16.msra.mxu0 %v6526_v49 }
 0x895   : > { %3831 = vmatmul.mubr.bf16.gmra.mxu1 %v8067_v9  ;;  %3944 = vmatmul.mubr.bf16.gmra.mxu0 %v8067_v9  ;;  %v3363_v19 = vmax.f32 %v3325_v3, 0.0  ;;  %v3336_v50 = vadd.f32 %v6135_v42, %v8039_v22 }
 0x896   : > { %v3327_v43 = vpop.f32.mrf.mxu0  ;;  %3840 = vmatprep.mubr.bf16.mxu1 %v7372_v58  ;;  %3953 = vmatprep.mubr.bf16.mxu0 %v7372_v58 }
 0x897   : > { %v3328_v11 = vadd.f32 %v8039_v22, %v3327_v43  ;;  %4007 = vmatpush1.bf16.msra.mxu1 %v6522_v37  ;;  %6152 = vmatprep.subr.bf16.mxu0 %v6530_v10  ;;  %v3366_v15 = vmax.f32 %v3336_v50, 0.0 }
 0x898   : > { %4008 = vmatprep.subr.bf16.mxu1 %v6529_v46  ;;  %6153 = vmatpush3.bf16.msra.mxu0 %v6530_v10 }
 0x899   : > { %v3364_v21 = vmax.f32 %v3328_v11, 0.0  ;;  %6154 = vmatprep.subr.bf16.mxu0 %v6531_v55  ;;  %v3441_v16 = vpack.c.bf16 %v3366_v15, %v3365_v6 }
 0x89b   : > { %v3440_v54 = vpack.c.bf16 %v3364_v21, %v3363_v19  ;;  %4009 = vmatpush1.bf16.msra.mxu1 %v6527_v14 }
 0x89c   : > { %6155 = vmatpush3.bf16.msra.mxu0 %v6531_v55 }
 0x89d   : > { %3841 = vmatmul.mubr.bf16.gmra.mxu1 %v3440_v54  ;;  %3954 = vmatmul.mubr.bf16.gmra.mxu0 %v3440_v54 }
 0x89e   : > { %3850 = vmatprep.mubr.bf16.mxu1 %v7372_v58  ;;  %3963 = vmatprep.mubr.bf16.mxu0 %v7372_v58 }
 0x8a0   : > { %v6138_v18 = vpop.f32.mrf.mxu0 }
 0x8a1   : > { %v3349_v34 = vadd.f32 %v6138_v18, %v8039_v22 }
 0x8a2   : > { %v3340_v51 = vpop.f32.mrf.mxu0 }
 0x8a3   : > { %v3341_v31 = vadd.f32 %v8039_v22, %v3340_v51  ;;  %v3369_v12 = vmax.f32 %v3349_v34, 0.0 }
 0x8a4   : > { %v6139_v24 = vpop.f32.mrf.mxu0 }
 0x8a5   : > { %3851 = vmatmul.mubr.bf16.gmra.mxu1 %v3441_v16  ;;  %3964 = vmatmul.mubr.bf16.gmra.mxu0 %v3441_v16  ;;  %v3367_v23 = vmax.f32 %v3341_v31, 0.0  ;;  %v3352_v59 = vadd.f32 %v6139_v24, %v8039_v22 }
 0x8a6   : > { %v3343_v60 = vpop.f32.mrf.mxu0  ;;  %3860 = vmatprep.mubr.bf16.mxu1 %v7372_v58  ;;  %3973 = vmatprep.mubr.bf16.mxu0 %v7372_v58 }
 0x8a7   : > { %v3344_v63 = vadd.f32 %v8039_v22, %v3343_v60  ;;  %v3370_v7 = vmax.f32 %v3352_v59, 0.0  ;;  %v3445_v22 = vlaneseq }
 0x8a9   : > { %v3368_v61 = vmax.f32 %v3344_v63, 0.0  ;;  %v3443_v38 = vpack.c.bf16 %v3370_v7, %v3369_v12 }
 0x8ab   : > { %v3442_v0 = vpack.c.bf16 %v3368_v61, %v3367_v23 }
 0x8ad   : > { %3861 = vmatmul.mubr.bf16.gmra.mxu1 %v3442_v0  ;;  %3974 = vmatmul.mubr.bf16.gmra.mxu0 %v3442_v0 }
 0x8ae   : > { %3870 = vmatprep.mubr.bf16.mxu1 %v7372_v58  ;;  %3983 = vmatprep.mubr.bf16.mxu0 %v7372_v58 }
 0x8b5   : > { %3871 = vmatmul.mubr.bf16.gmra.mxu1 %v3443_v38  ;;  %3984 = vmatmul.mubr.bf16.gmra.mxu0 %v3443_v38 }
 0x8b6   : > { %6156 = vmatprep.mubr.bf16.mxu0 %v8044_v28  ;;  %4026 = vmatprep.mubr.bf16.mxu1 %v7372_v58 }
 0x8bd   : > { %4027 = vmatmul.mubr.bf16.vlgmr.msra.gmra.mxu1 %v8044_v28  ;;  %6157 = vmatmul.mubr.bf16.vlgmr.msra.gmra.mxu0 %v8051_v48  ;;  %v8103_v28 = vshrl.u32 %v3445_v22, 7 }
 0x8be   : > { %6160 = vmatprep.mubr.bf16.mxu0 %v8060_v33  ;;  %4036 = vmatprep.mubr.bf16.mxu1 %v7372_v58 }
 0x8bf   : > { %v3447_v44 = vsub.s32 0, %v8103_v28  ;;  %v3455_v27 = vsub.s32 2, %v8103_v28  ;;  %v3459_v52 = vsub.s32 3, %v8103_v28 }
 0x8c1   : > { %v8112_v56 = vrot.slane %v3435_v47, %v3447_v44  ;;  %v8114_v29 = vrot.slane %v3435_v47, %v3455_v27  ;;  %v8118_v13 = vrot.slane %v3435_v47, %v3459_v52 }
 0x8c5   : > { %4037 = vmatmul.mubr.bf16.gmra.mxu1 %v8051_v48  ;;  %6161 = vmatmul.mubr.bf16.gmra.mxu0 %v8067_v9  ;;  %v3451_v48 = vsub.s32 1, %v8103_v28 }
 0x8c6   : > { %6164 = vmatprep.mubr.bf16.mxu0 %v3440_v54  ;;  %4046 = vmatprep.mubr.bf16.mxu1 %v7372_v58 }
 0x8cd   : > { %4047 = vmatmul.mubr.bf16.gmra.mxu1 %v8060_v33  ;;  %6165 = vmatmul.mubr.bf16.gmra.mxu0 %v3441_v16 }
 0x8ce   : > { %6168 = vmatprep.mubr.bf16.mxu0 %v3442_v0  ;;  %4056 = vmatprep.mubr.bf16.mxu1 %v7372_v58 }
 0x8d5   : > { %4057 = vmatmul.mubr.bf16.gmra.mxu1 %v8067_v9  ;;  %6169 = vmatmul.mubr.bf16.gmra.mxu0 %v3443_v38 }
 0x8d6   : > { %4066 = vmatprep.mubr.bf16.mxu1 %v7372_v58 }
 0x8dd   : > { %4067 = vmatmul.mubr.bf16.gmra.mxu1 %v3440_v54 }
 0x8de   : > { %4076 = vmatprep.mubr.bf16.mxu1 %v7372_v58 }
 0x8e5   : > { %4077 = vmatmul.mubr.bf16.gmra.mxu1 %v3441_v16 }
 0x8e6   : > { %4086 = vmatprep.mubr.bf16.mxu1 %v7372_v58 }
 0x8ed   : > { %4087 = vmatmul.mubr.bf16.gmra.mxu1 %v3442_v0 }
 0x8ee   : > { %4096 = vmatprep.mubr.bf16.mxu1 %v7372_v58  ;;  %v8116_v58 = vrot.slane %v3435_v47, %v3451_v48 }
 0x8f5   : > { %4097 = vmatmul.mubr.bf16.gmra.mxu1 %v3443_v38 }
 0x93d   : > { %v3802_v20 = vpop.f32.mrf.mxu1  ;;  %v3915_v32 = vpop.f32.mrf.mxu0 }
 0x93e   : > { %v3803_v57 = vadd.f32 %v3802_v20, %v8112_v56  ;;  %v3916_v17 = vadd.f32 %v3915_v32, %v8114_v29 }
 0x93f   : > { %v3804_v30 = vpop.f32.mrf.mxu1  ;;  %v3917_v1 = vpop.f32.mrf.mxu0 }
 0x940   : > { %v5383_v4 = vmul.f32 -1.442695, %v3803_v57  ;;  %v5385_v62 = vmul.f32 -1.442695, %v3916_v17  ;;  %v3805_v25 = vadd.f32 %v3804_v30, %v8116_v58  ;;  %v3918_v33 = vadd.f32 %v3917_v1, %v8118_v13 }
 0x941   : > { %v3806_v2 = vpop.f32.mrf.mxu1  ;;  %v3919_v36 = vpop.f32.mrf.mxu0 }
 0x942   : > { %6532 = vpow2.f32 %v5383_v4  ;;  %v5384_v40 = vmul.f32 -1.442695, %v3805_v25  ;;  %v5386_v45 = vmul.f32 -1.442695, %v3918_v33  ;;  %v3807_v49 = vadd.f32 %v3806_v2, %v8112_v56 }
 0x943   : > { %6534 = vpow2.f32 %v5385_v62  ;;  %v3920_v26 = vadd.f32 %v3919_v36, %v8114_v29  ;;  %v3808_v5 = vpop.f32.mrf.mxu1  ;;  %v3921_v41 = vpop.f32.mrf.mxu0 }
 0x944   : > { %6536 = vpow2.f32 %v5384_v40  ;;  %v5390_v8 = vmul.f32 -1.442695, %v3807_v49  ;;  %v3809_v35 = vadd.f32 %v3808_v5, %v8116_v58  ;;  %v3922_v39 = vadd.f32 %v3921_v41, %v8118_v13 }
 0x945   : > { %6538 = vpow2.f32 %v5386_v45  ;;  %v5392_v9 = vmul.f32 -1.442695, %v3920_v26  ;;  %v3812_v37 = vpop.f32.mrf.mxu1  ;;  %v3925_v10 = vpop.f32.mrf.mxu0 }
 0x946   : > { %6540 = vpow2.f32 %v5390_v8  ;;  %v5391_v42 = vmul.f32 -1.442695, %v3809_v35  ;;  %v5393_v46 = vmul.f32 -1.442695, %v3922_v39  ;;  %v3813_v3 = vadd.f32 %v3812_v37, %v8112_v56 }
 0x947   : > { %6542 = vpow2.f32 %v5392_v9  ;;  %v3926_v55 = vadd.f32 %v3925_v10, %v8114_v29  ;;  %v3814_v43 = vpop.f32.mrf.mxu1  ;;  %v3927_v11 = vpop.f32.mrf.mxu0 }
 0x948   : > { %6544 = vpow2.f32 %v5391_v42  ;;  %v5397_v14 = vmul.f32 -1.442695, %v3813_v3  ;;  %v3815_v19 = vadd.f32 %v3814_v43, %v8116_v58  ;;  %v3928_v21 = vadd.f32 %v3927_v11, %v8118_v13 }
 0x949   : > { %6546 = vpow2.f32 %v5393_v46  ;;  %v5399_v50 = vmul.f32 -1.442695, %v3926_v55  ;;  %v3816_v54 = vpop.f32.mrf.mxu1  ;;  %v3929_v53 = vpop.f32.mrf.mxu0 }
 0x94a   : > { %6548 = vpow2.f32 %v5397_v14  ;;  %v5398_v15 = vmul.f32 -1.442695, %v3815_v19  ;;  %v5400_v18 = vmul.f32 -1.442695, %v3928_v21  ;;  %v3817_v6 = vadd.f32 %v3816_v54, %v8112_v56 }
 0x94b   : > { %6550 = vpow2.f32 %v5399_v50  ;;  %v3930_v51 = vadd.f32 %v3929_v53, %v8114_v29  ;;  %v3818_v16 = vpop.f32.mrf.mxu1  ;;  %v3931_v24 = vpop.f32.mrf.mxu0 }
 0x94c   : > { %6552 = vpow2.f32 %v5398_v15  ;;  %v5404_v31 = vmul.f32 -1.442695, %v3817_v6  ;;  %v3819_v60 = vadd.f32 %v3818_v16, %v8116_v58  ;;  %v3932_v63 = vadd.f32 %v3931_v24, %v8118_v13 }
 0x94d   : > { %6554 = vpow2.f32 %v5400_v18  ;;  %v5406_v23 = vmul.f32 -1.442695, %v3930_v51  ;;  %v3822_v61 = vpop.f32.mrf.mxu1  ;;  %v3935_v59 = vpop.f32.mrf.mxu0 }
 0x94e   : > { %6556 = vpow2.f32 %v5404_v31  ;;  %v5405_v0 = vmul.f32 -1.442695, %v3819_v60  ;;  %v5407_v34 = vmul.f32 -1.442695, %v3932_v63  ;;  %v3823_v10 = vadd.f32 %v3822_v61, %v8112_v56 }
 0x94f   : > { %v6533_v7 = vpop.eup %6532  ;;  %6558 = vpow2.f32 %v5406_v23  ;;  %v3824_v12 = vpop.f32.mrf.mxu1  ;;  %v3936_v55 = vadd.f32 %v3935_v59, %v8114_v29 }
 0x950   : > { %v3937_v38 = vpop.f32.mrf.mxu0  ;;  %v6535_v22 = vpop.eup %6534  ;;  %v4540_v44 = vadd.f32 1.0, %v6533_v7  ;;  %6560 = vpow2.f32 %v5405_v0  ;;  %v3825_v19 = vadd.f32 %v3824_v12, %v8116_v58  ;;  %v5411_v6 = vmul.f32 -1.442695, %v3823_v10 }
 0x951   : > { %v6537_v27 = vpop.eup %6536  ;;  %v4542_v47 = vadd.f32 1.0, %v6535_v22  ;;  %6562 = vpow2.f32 %v5407_v34  ;;  %v3826_v48 = vpop.f32.mrf.mxu1  ;;  %v3938_v54 = vadd.f32 %v3937_v38, %v8118_v13  ;;  %v5413_v60 = vmul.f32 -1.442695, %v3936_v55 }
 0x952   : > { %v6539_v52 = vpop.eup %6538  ;;  %6564 = vrcp.f32 %v4540_v44  ;;  %v4541_v20 = vadd.f32 1.0, %v6537_v27  ;;  %v3939_v32 = vpop.f32.mrf.mxu0  ;;  %v3827_v51 = vadd.f32 %v3826_v48, %v8112_v56  ;;  %v5412_v59 = vmul.f32 -1.442695, %v3825_v19 }
 0x953   : > { %v6541_v57 = vpop.eup %6540  ;;  %6566 = vrcp.f32 %v4542_v47  ;;  %v4543_v17 = vadd.f32 1.0, %v6539_v52  ;;  %v3828_v30 = vpop.f32.mrf.mxu1  ;;  %v3940_v63 = vadd.f32 %v3939_v32, %v8114_v29  ;;  %v5414_v7 = vmul.f32 -1.442695, %v3938_v54 }
 0x954   : > { %v6543_v1 = vpop.eup %6542  ;;  %6568 = vrcp.f32 %v4541_v20  ;;  %v4547_v4 = vadd.f32 1.0, %v6541_v57  ;;  %v3941_v40 = vpop.f32.mrf.mxu0  ;;  %v3829_v0 = vadd.f32 %v3828_v30, %v8116_v58  ;;  %v5418_v44 = vmul.f32 -1.442695, %v3827_v51 }
 0x955   : > { %v6545_v62 = vpop.eup %6544  ;;  %6570 = vrcp.f32 %v4543_v17  ;;  %v4549_v25 = vadd.f32 1.0, %v6543_v1  ;;  %v8136_v33 = vpop.f32.mrf.mxu1  ;;  %v3942_v12 = vadd.f32 %v3941_v40, %v8118_v13  ;;  %v5420_v52 = vmul.f32 -1.442695, %v3940_v63 }
 0x956   : > { %v6547_v2 = vpop.eup %6546  ;;  %6572 = vrcp.f32 %v4547_v4  ;;  %v4548_v36 = vadd.f32 1.0, %v6545_v62  ;;  %v3945_v42 = vpop.f32.mrf.mxu0  ;;  %v3833_v27 = vadd.f32 %v8136_v33, %v8112_v56  ;;  %v5419_v17 = vmul.f32 -1.442695, %v3829_v0 }
 0x957   : > { %v6549_v45 = vpop.eup %6548  ;;  %6574 = vrcp.f32 %v4549_v25  ;;  %v4550_v49 = vadd.f32 1.0, %v6547_v2  ;;  %v8138_v26 = vpop.f32.mrf.mxu1  ;;  %v3946_v20 = vadd.f32 %v3945_v42, %v8114_v29  ;;  %v5421_v4 = vmul.f32 -1.442695, %v3942_v12 }
 0x958   : > { %v6551_v5 = vpop.eup %6550  ;;  %6576 = vrcp.f32 %v4548_v36  ;;  %v4554_v41 = vadd.f32 1.0, %v6549_v45  ;;  %v3947_v16 = vpop.f32.mrf.mxu0  ;;  %v3835_v30 = vadd.f32 %v8138_v26, %v8116_v58  ;;  %v5425_v2 = vmul.f32 -1.442695, %v3833_v27 }
 0x959   : > { %v6553_v8 = vpop.eup %6552  ;;  %6578 = vrcp.f32 %v4550_v49  ;;  %v4556_v35 = vadd.f32 1.0, %v6551_v5  ;;  %v8140_v39 = vpop.f32.mrf.mxu1  ;;  %v3948_v62 = vadd.f32 %v3947_v16, %v8118_v13  ;;  %v5427_v49 = vmul.f32 -1.442695, %v3946_v20 }
 0x95a   : > { %v6555_v9 = vpop.eup %6554  ;;  %6580 = vrcp.f32 %v4554_v41  ;;  %v4555_v37 = vadd.f32 1.0, %v6553_v8  ;;  %v3949_v47 = vpop.f32.mrf.mxu0  ;;  %v3837_v36 = vadd.f32 %v8140_v39, %v8112_v56  ;;  %v5426_v8 = vmul.f32 -1.442695, %v3835_v30 }
 0x95b   : > { %v6557_v46 = vpop.eup %6556  ;;  %6582 = vrcp.f32 %v4556_v35  ;;  %v4557_v3 = vadd.f32 1.0, %v6555_v9  ;;  %v8144_v43 = vpop.f32.mrf.mxu1  ;;  %v3950_v26 = vadd.f32 %v3949_v47, %v8114_v29  ;;  %v5428_v39 = vmul.f32 -1.442695, %v3948_v62 }
 0x95c   : > { %v6559_v11 = vpop.eup %6558  ;;  %6584 = vrcp.f32 %v4555_v37  ;;  %v4561_v14 = vadd.f32 1.0, %v6557_v46  ;;  %v3951_v40 = vpop.f32.mrf.mxu0  ;;  %v3839_v35 = vadd.f32 %v8144_v43, %v8116_v58  ;;  %v5432_v46 = vmul.f32 -1.442695, %v3837_v36 }
 0x95d   : > { %v6561_v21 = vpop.eup %6560  ;;  %6586 = vrcp.f32 %v4557_v3  ;;  %v4563_v50 = vadd.f32 1.0, %v6559_v11  ;;  %v8148_v53 = vpop.f32.mrf.mxu1  ;;  %v3952_v37 = vadd.f32 %v3951_v40, %v8118_v13  ;;  %v5434_v43 = vmul.f32 -1.442695, %v3950_v26 }
 0x95e   : > { %v6563_v15 = vpop.eup %6562  ;;  %6588 = vrcp.f32 %v4561_v14  ;;  %v4562_v18 = vadd.f32 1.0, %v6561_v21  ;;  %v8193_v3 = vpop.f32.mrf.mxu0  ;;  %v5433_v19 = vmul.f32 -1.442695, %v3839_v35  ;;  %v3843_v36 = vadd.f32 %v8148_v53, %v8112_v56 }
 0x95f   : > { %v6565_v24 = vpop.eup %6564  ;;  %6590 = vrcp.f32 %v4563_v50  ;;  %v4564_v31 = vadd.f32 1.0, %v6563_v15  ;;  %v8152_v23 = vpop.f32.mrf.mxu1  ;;  %v5435_v50 = vmul.f32 -1.442695, %v3952_v37 }
 0x960   : > { %v6567_v61 = vpop.eup %6566  ;;  %4876 = vst [vmem:[%s8156_s9] sm:$0xff] %v6565_v24  ;;  %6592 = vrcp.f32 %v4562_v18  ;;  %v3957_v18 = vpop.f32.mrf.mxu0 }
 0x961   : > { %v6569_v34 = vpop.eup %6568  ;;  %4878 = vst [vmem:[%s8156_s9 + $0x10] sm:$0xff] %v6567_v61  ;;  %6594 = vrcp.f32 %v4564_v31  ;;  %v8162_v38 = vpop.f32.mrf.mxu1  ;;  %v3958_v53 = vadd.f32 %v3957_v18, %v8118_v13 }
 0x962   : > { %v6571_v22 = vpop.eup %6570  ;;  %4877 = vst [vmem:[%s8156_s9 + $0x8] sm:$0xff] %v6569_v34  ;;  %6596 = vpow2.f32 %v5411_v6 }
 0x963   : > { %v6573_v48 = vpop.eup %6572  ;;  %4879 = vst [vmem:[%s8156_s9 + $0x18] sm:$0xff] %v6571_v22  ;;  %6598 = vpow2.f32 %v5413_v60  ;;  %v8169_v32 = vpop.f32.mrf.mxu1 }
 0x964   : > { %v6575_v57 = vpop.eup %6574  ;;  %4883 = vst [vmem:[%s8156_s9 + $0x38] sm:$0xff] %v6573_v48  ;;  %6600 = vpow2.f32 %v5412_v59  ;;  %v3959_v59 = vpop.f32.mrf.mxu0 }
 0x965   : > { %v6577_v1 = vpop.eup %6576  ;;  %4885 = vst [vmem:[%s8156_s9 + $0x48] sm:$0xff] %v6575_v57  ;;  %6602 = vpow2.f32 %v5414_v7  ;;  %v8176_v25 = vpop.f32.mrf.mxu1 }
 0x966   : > { %v6579_v33 = vpop.eup %6578  ;;  %4884 = vst [vmem:[%s8156_s9 + $0x40] sm:$0xff] %v6577_v1  ;;  %6604 = vpow2.f32 %v5418_v44 }
 0x967   : > { %v6581_v45 = vpop.eup %6580  ;;  %4886 = vst [vmem:[%s8156_s9 + $0x50] sm:$0xff] %v6579_v33  ;;  %6606 = vpow2.f32 %v5420_v52  ;;  %v8183_v5 = vpop.f32.mrf.mxu1 }
 0x968   : > { %v6583_v41 = vpop.eup %6582  ;;  %4890 = vst [vmem:[%s8156_s9 + $0x70] sm:$0xff] %v6581_v45  ;;  %6608 = vpow2.f32 %v5419_v17  ;;  %v3961_v52 = vpop.f32.mrf.mxu0 }
 0x969   : > { %v6585_v9 = vpop.eup %6584  ;;  %4892 = vst [vmem:[%s8156_s9 + $0x80] sm:$0xff] %v6583_v41  ;;  %6610 = vpow2.f32 %v5421_v4  ;;  %v8190_v10 = vpop.f32.mrf.mxu1  ;;  %v3956_v41 = vadd.f32 %v8193_v3, %v8114_v29  ;;  %v3847_v3 = vadd.f32 %v8162_v38, %v8112_v56  ;;  %v5442_v38 = vmul.f32 -1.442695, %v3958_v53 }
 0x96a   : > { %v6587_v42 = vpop.eup %6586  ;;  %4891 = vst [vmem:[%s8156_s9 + $0x78] sm:$0xff] %v6585_v9  ;;  %6612 = vpow2.f32 %v5425_v2  ;;  %v3965_v40 = vpop.f32.mrf.mxu0  ;;  %v3845_v9 = vadd.f32 %v8152_v23, %v8116_v58 }
 0x96b   : > { %v6589_v55 = vpop.eup %6588  ;;  %4893 = vst [vmem:[%s8156_s9 + $0x88] sm:$0xff] %v6587_v42  ;;  %6614 = vpow2.f32 %v5427_v49  ;;  %v8196_v11 = vpop.f32.mrf.mxu1 }
 0x96c   : > { %v6591_v14 = vpop.eup %6590  ;;  %4897 = vst [vmem:[%s8156_s9 + $0xa8] sm:$0xff] %v6589_v55  ;;  %6616 = vpow2.f32 %v5426_v8  ;;  %v5439_v55 = vmul.f32 -1.442695, %v3843_v36  ;;  %v5440_v18 = vmul.f32 -1.442695, %v3845_v9 }
 0x96d   : > { %v6593_v21 = vpop.eup %6592  ;;  %4899 = vst [vmem:[%s8156_s9 + $0xb8] sm:$0xff] %v6591_v14  ;;  %6618 = vpow2.f32 %v5428_v39  ;;  %v8200_v54 = vpop.f32.mrf.mxu1 }
 0x96e   : > { %v6595_v15 = vpop.eup %6594  ;;  %4898 = vst [vmem:[%s8156_s9 + $0xb0] sm:$0xff] %v6593_v21  ;;  %6620 = vpow2.f32 %v5432_v46  ;;  %v5441_v21 = vmul.f32 -1.442695, %v3956_v41 }
 0x96f   : > { %v6597_v6 = vpop.eup %6596  ;;  %4900 = vst [vmem:[%s8156_s9 + $0xc0] sm:$0xff] %v6595_v15  ;;  %6622 = vpow2.f32 %v5434_v43  ;;  %v8204_v51 = vpop.f32.mrf.mxu1 }
 0x970   : > { %v6599_v16 = vpop.eup %6598  ;;  %v4568_v24 = vadd.f32 1.0, %v6597_v6  ;;  %6624 = vpow2.f32 %v5433_v19  ;;  %v3967_v43 = vpop.f32.mrf.mxu0  ;;  %v3849_v6 = vadd.f32 %v8169_v32, %v8116_v58 }
 0x971   : > { %v6601_v31 = vpop.eup %6600  ;;  %v4570_v60 = vadd.f32 1.0, %v6599_v16  ;;  %6626 = vpow2.f32 %v5435_v50  ;;  %v8206_v0 = vpop.f32.mrf.mxu1  ;;  %v3960_v50 = vadd.f32 %v3959_v59, %v8114_v29 }
 0x972   : > { %v6603_v63 = vpop.eup %6602  ;;  %6628 = vrcp.f32 %v4568_v24  ;;  %v4569_v61 = vadd.f32 1.0, %v6601_v31  ;;  %v3962_v24 = vadd.f32 %v3961_v52, %v8118_v13 }
 0x973   : > { %v6605_v34 = vpop.eup %6604  ;;  %6630 = vrcp.f32 %v4570_v60  ;;  %v4571_v7 = vadd.f32 1.0, %v6603_v63  ;;  %v8208_v20 = vpop.f32.mrf.mxu1  ;;  %v5446_v60 = vmul.f32 -1.442695, %v3847_v3  ;;  %v3853_v63 = vadd.f32 %v8176_v25, %v8112_v56 }
 0x974   : > { %v6607_v12 = vpop.eup %6606  ;;  %6632 = vrcp.f32 %v4569_v61  ;;  %v4575_v22 = vadd.f32 1.0, %v6605_v34  ;;  %v3969_v61 = vpop.f32.mrf.mxu0  ;;  %v5448_v32 = vmul.f32 -1.442695, %v3960_v50  ;;  %v5449_v25 = vmul.f32 -1.442695, %v3962_v24 }
 0x975   : > { %v6609_v44 = vpop.eup %6608  ;;  %6634 = vrcp.f32 %v4571_v7  ;;  %v4577_v27 = vadd.f32 1.0, %v6607_v12  ;;  %v8212_v45 = vpop.f32.mrf.mxu1  ;;  %v3966_v7 = vadd.f32 %v3965_v40, %v8114_v29  ;;  %v5453_v52 = vmul.f32 -1.442695, %v3853_v63 }
 0x976   : > { %v6611_v47 = vpop.eup %6610  ;;  %6636 = vrcp.f32 %v4575_v22  ;;  %v4576_v48 = vadd.f32 1.0, %v6609_v44  ;;  %v5447_v22 = vmul.f32 -1.442695, %v3849_v6  ;;  %v3855_v44 = vadd.f32 %v8183_v5, %v8116_v58 }
 0x977   : > { %v6613_v57 = vpop.eup %6612  ;;  %6638 = vrcp.f32 %v4577_v27  ;;  %v4578_v17 = vadd.f32 1.0, %v6611_v47  ;;  %v8221_v14 = vpop.f32.mrf.mxu1  ;;  %v3968_v47 = vadd.f32 %v3967_v43, %v8118_v13  ;;  %v5455_v5 = vmul.f32 -1.442695, %v3966_v7 }
 0x978   : > { %v6615_v30 = vpop.eup %6614  ;;  %6640 = vrcp.f32 %v4576_v48  ;;  %v4582_v1 = vadd.f32 1.0, %v6613_v57  ;;  %v3857_v57 = vadd.f32 %v8190_v10, %v8112_v56 }
 0x979   : > { %v6617_v4 = vpop.eup %6616  ;;  %6642 = vrcp.f32 %v4578_v17  ;;  %v4584_v62 = vadd.f32 1.0, %v6615_v30  ;;  %v8232_v59 = vpop.f32.mrf.mxu1  ;;  %v5456_v10 = vmul.f32 -1.442695, %v3968_v47 }
 0x97a   : > { %v6619_v33 = vpop.eup %6618  ;;  %6644 = vrcp.f32 %v4582_v1  ;;  %v4583_v2 = vadd.f32 1.0, %v6617_v4  ;;  %v3971_v17 = vpop.f32.mrf.mxu0  ;;  %v3970_v4 = vadd.f32 %v3969_v61, %v8114_v29 }
 0x97b   : > { %v6621_v49 = vpop.eup %6620  ;;  %6646 = vrcp.f32 %v4584_v62  ;;  %v4585_v26 = vadd.f32 1.0, %v6619_v33  ;;  %v8244_v30 = vpop.f32.mrf.mxu1  ;;  %v5454_v33 = vmul.f32 -1.442695, %v3855_v44  ;;  %v3972_v40 = vadd.f32 %v3971_v17, %v8118_v13 }
 0x97c   : > { %v6623_v8 = vpop.eup %6622  ;;  %6648 = vrcp.f32 %v4583_v2  ;;  %v4589_v35 = vadd.f32 1.0, %v6621_v49  ;;  %v3859_v2 = vadd.f32 %v8196_v11, %v8116_v58  ;;  %v8254_v41 = vpop.f32.mrf.mxu0  ;;  %v5462_v11 = vmul.f32 -1.442695, %v3970_v4 }
 0x97d   : > { %v6625_v39 = vpop.eup %6624  ;;  %6650 = vrcp.f32 %v4585_v26  ;;  %v4591_v37 = vadd.f32 1.0, %v6623_v8  ;;  %v5460_v26 = vmul.f32 -1.442695, %v3857_v57  ;;  %v8256_v8 = vpop.f32.mrf.mxu1  ;;  %v5463_v53 = vmul.f32 -1.442695, %v3972_v40 }
 0x97e   : > { %v6627_v42 = vpop.eup %6626  ;;  %6652 = vrcp.f32 %v4589_v35  ;;  %v4590_v46 = vadd.f32 1.0, %v6625_v39  ;;  %v5461_v39 = vmul.f32 -1.442695, %v3859_v2  ;;  %v3863_v57 = vadd.f32 %v8200_v54, %v8112_v56 }
 0x97f   : > { %v6629_v19 = vpop.eup %6628  ;;  %6654 = vrcp.f32 %v4591_v37  ;;  %v4592_v23 = vadd.f32 1.0, %v6627_v42 }
 0x980   : > { %v6631_v15 = vpop.eup %6630  ;;  %4904 = vst [vmem:[%s8156_s9 + $0xe0] sm:$0xff] %v6629_v19  ;;  %6656 = vrcp.f32 %v4590_v46  ;;  %v3977_v46 = vpop.f32.mrf.mxu0 }
 0x981   : > { %v6633_v16 = vpop.eup %6632  ;;  %4906 = vst [vmem:[%s8156_s9 + $0xf0] sm:$0xff] %v6631_v15  ;;  %6658 = vrcp.f32 %v4592_v23  ;;  %v3978_v54 = vadd.f32 %v3977_v46, %v8118_v13 }
 0x982   : > { %v6635_v31 = vpop.eup %6634  ;;  %4905 = vst [vmem:[%s8156_s9 + $0xe8] sm:$0xff] %v6633_v16  ;;  %6660 = vpow2.f32 %v5439_v55  ;;  %v8262_v55 = vpop.f32.mrf.mxu1 }
 0x983   : > { %v6637_v34 = vpop.eup %6636  ;;  %4907 = vst [vmem:[%s8156_s9 + $0xf8] sm:$0xff] %v6635_v31  ;;  %6662 = vpow2.f32 %v5441_v21 }
 0x984   : > { %v6639_v12 = vpop.eup %6638  ;;  %4911 = vst [vmem:[%s8156_s9 + $0x118] sm:$0xff] %v6637_v34  ;;  %6664 = vpow2.f32 %v5440_v18  ;;  %v3979_v18 = vpop.f32.mrf.mxu0 }
 0x985   : > { %v6641_v27 = vpop.eup %6640  ;;  %4913 = vst [vmem:[%s8156_s9 + $0x128] sm:$0xff] %v6639_v12  ;;  %6666 = vpow2.f32 %v5442_v38  ;;  %v8265_v6 = vpop.f32.mrf.mxu1 }
 0x986   : > { %v6643_v48 = vpop.eup %6642  ;;  %4912 = vst [vmem:[%s8156_s9 + $0x120] sm:$0xff] %v6641_v27  ;;  %6668 = vpow2.f32 %v5446_v60 }
 0x987   : > { %v6645_v1 = vpop.eup %6644  ;;  %4914 = vst [vmem:[%s8156_s9 + $0x130] sm:$0xff] %v6643_v48  ;;  %6670 = vpow2.f32 %v5448_v32  ;;  %v3981_v32 = vpop.f32.mrf.mxu0 }
 0x988   : > { %v6647_v62 = vpop.eup %6646  ;;  %4918 = vst [vmem:[%s8156_s9 + $0x150] sm:$0xff] %v6645_v1  ;;  %6672 = vpow2.f32 %v5447_v22  ;;  %v8267_v7 = vpop.f32.mrf.mxu1 }
 0x989   : > { %v6649_v36 = vpop.eup %6648  ;;  %4920 = vst [vmem:[%s8156_s9 + $0x160] sm:$0xff] %v6647_v62  ;;  %6674 = vpow2.f32 %v5449_v25  ;;  %v3985_v17 = vpop.f32.mrf.mxu0  ;;  %v3976_v62 = vadd.f32 %v8254_v41, %v8114_v29  ;;  %v3867_v41 = vadd.f32 %v8206_v0, %v8112_v56  ;;  %v5470_v0 = vmul.f32 -1.442695, %v3978_v54 }
 0x98a   : > { %v6651_v49 = vpop.eup %6650  ;;  %4919 = vst [vmem:[%s8156_s9 + $0x158] sm:$0xff] %v6649_v36  ;;  %6676 = vpow2.f32 %v5453_v52  ;;  %v8271_v1 = vpop.f32.mrf.mxu1  ;;  %v3865_v36 = vadd.f32 %v8204_v51, %v8116_v58 }
 0x98b   : > { %v6653_v35 = vpop.eup %6652  ;;  %4921 = vst [vmem:[%s8156_s9 + $0x168] sm:$0xff] %v6651_v49  ;;  %6678 = vpow2.f32 %v5455_v5 }
 0x98c   : > { %v6655_v9 = vpop.eup %6654  ;;  %4925 = vst [vmem:[%s8156_s9 + $0x188] sm:$0xff] %v6653_v35  ;;  %6680 = vpow2.f32 %v5454_v33  ;;  %v5467_v35 = vmul.f32 -1.442695, %v3863_v57  ;;  %v5468_v46 = vmul.f32 -1.442695, %v3865_v36 }
 0x98d   : > { %v6657_v37 = vpop.eup %6656  ;;  %4927 = vst [vmem:[%s8156_s9 + $0x198] sm:$0xff] %v6655_v9  ;;  %6682 = vpow2.f32 %v5456_v10  ;;  %v8280_v9 = vpop.f32.mrf.mxu1 }
 0x98e   : > { %v6659_v42 = vpop.eup %6658  ;;  %4926 = vst [vmem:[%s8156_s9 + $0x190] sm:$0xff] %v6657_v37  ;;  %6684 = vpow2.f32 %v5460_v26  ;;  %v5469_v37 = vmul.f32 -1.442695, %v3976_v62 }
 0x98f   : > { %v6661_v3 = vpop.eup %6660  ;;  %4928 = vst [vmem:[%s8156_s9 + $0x1a0] sm:$0xff] %v6659_v42  ;;  %6686 = vpow2.f32 %v5462_v11  ;;  %v3987_v11 = vpop.f32.mrf.mxu0 }
 0x990   : > { %v6663_v43 = vpop.eup %6662  ;;  %v4596_v19 = vadd.f32 1.0, %v6661_v3  ;;  %6688 = vpow2.f32 %v5461_v39  ;;  %v3869_v3 = vadd.f32 %v8208_v20, %v8116_v58 }
 0x991   : > { %v6665_v23 = vpop.eup %6664  ;;  %v4598_v21 = vadd.f32 1.0, %v6663_v43  ;;  %6690 = vpow2.f32 %v5463_v53  ;;  %v3980_v53 = vadd.f32 %v3979_v18, %v8114_v29  ;;  %v8291_v18 = vpop.f32.mrf.mxu1 }
 0x992   : > { %v6667_v50 = vpop.eup %6666  ;;  %6692 = vrcp.f32 %v4596_v19  ;;  %v4597_v15 = vadd.f32 1.0, %v6665_v23  ;;  %v3982_v19 = vadd.f32 %v3981_v32, %v8118_v13 }
 0x993   : > { %v6669_v16 = vpop.eup %6668  ;;  %6694 = vrcp.f32 %v4598_v21  ;;  %v4599_v38 = vadd.f32 1.0, %v6667_v50  ;;  %v5474_v21 = vmul.f32 -1.442695, %v3867_v41  ;;  %v3873_v50 = vadd.f32 %v8212_v45, %v8112_v56 }
 0x994   : > { %v6671_v24 = vpop.eup %6670  ;;  %6696 = vrcp.f32 %v4597_v15  ;;  %v4603_v31 = vadd.f32 1.0, %v6669_v16  ;;  %v3989_v15 = vpop.f32.mrf.mxu0  ;;  %v5476_v20 = vmul.f32 -1.442695, %v3980_v53  ;;  %v5477_v45 = vmul.f32 -1.442695, %v3982_v19 }
 0x995   : > { %v6673_v60 = vpop.eup %6672  ;;  %6698 = vrcp.f32 %v4599_v38  ;;  %v4605_v63 = vadd.f32 1.0, %v6671_v24  ;;  %v3986_v38 = vadd.f32 %v3985_v17, %v8114_v29  ;;  %v5481_v32 = vmul.f32 -1.442695, %v3873_v50 }
 0x996   : > { %v6675_v61 = vpop.eup %6674  ;;  %6700 = vrcp.f32 %v4603_v31  ;;  %v4604_v34 = vadd.f32 1.0, %v6673_v60  ;;  %v5475_v31 = vmul.f32 -1.442695, %v3869_v3  ;;  %v3875_v60 = vadd.f32 %v8221_v14, %v8116_v58 }
 0x997   : > { %v6677_v12 = vpop.eup %6676  ;;  %6702 = vrcp.f32 %v4605_v63  ;;  %v4606_v22 = vadd.f32 1.0, %v6675_v61  ;;  %v3988_v61 = vadd.f32 %v3987_v11, %v8118_v13  ;;  %v5483_v14 = vmul.f32 -1.442695, %v3986_v38 }
 0x998   : > { %v6679_v44 = vpop.eup %6678  ;;  %6704 = vrcp.f32 %v4604_v34  ;;  %v4610_v27 = vadd.f32 1.0, %v6677_v12  ;;  %v3877_v12 = vadd.f32 %v8232_v59, %v8112_v56  ;;  %v3471_v3 = vsub.s32 6, %v8103_v28 }
 0x999   : > { %v6681_v25 = vpop.eup %6680  ;;  %6706 = vrcp.f32 %v4606_v22  ;;  %v4612_v47 = vadd.f32 1.0, %v6679_v44  ;;  %v3991_v22 = vpop.f32.mrf.mxu0  ;;  %v5484_v56 = vmul.f32 -1.442695, %v3988_v61  ;;  %v3467_v19 = vsub.s32 5, %v8103_v28 }
 0x99a   : > { %v6683_v48 = vpop.eup %6682  ;;  %6708 = vrcp.f32 %v4610_v27  ;;  %v4611_v52 = vadd.f32 1.0, %v6681_v25  ;;  %v8303_v44 = vpop.f32.mrf.mxu1  ;;  %v3990_v25 = vadd.f32 %v3989_v15, %v8114_v29  ;;  %v3992_v59 = vadd.f32 %v3991_v22, %v8118_v13 }
 0x99b   : > { %v6685_v5 = vpop.eup %6684  ;;  %6710 = vrcp.f32 %v4612_v47  ;;  %v4613_v4 = vadd.f32 1.0, %v6683_v48  ;;  %v5482_v48 = vmul.f32 -1.442695, %v3875_v60  ;;  %v5488_v29 = vmul.f32 -1.442695, %v3877_v12 }
 0x99c   : > { %v6687_v33 = vpop.eup %6686  ;;  %6712 = vrcp.f32 %v4611_v52  ;;  %v4617_v2 = vadd.f32 1.0, %v6685_v5  ;;  %v3879_v52 = vadd.f32 %v8244_v30, %v8116_v58  ;;  %v8313_v5 = vpop.f32.mrf.mxu0  ;;  %v5490_v58 = vmul.f32 -1.442695, %v3990_v25 }
 0x99d   : > { %v6689_v10 = vpop.eup %6688  ;;  %6714 = vrcp.f32 %v4613_v4  ;;  %v4619_v40 = vadd.f32 1.0, %v6687_v33  ;;  %v8315_v4 = vpop.f32.mrf.mxu1 }
 0x99e   : > { %v6691_v49 = vpop.eup %6690  ;;  %6716 = vrcp.f32 %v4617_v2  ;;  %v4618_v26 = vadd.f32 1.0, %v6689_v10  ;;  %v5489_v33 = vmul.f32 -1.442695, %v3879_v52  ;;  %v5491_v2 = vmul.f32 -1.442695, %v3992_v59  ;;  %v8321_v10 = vpop.f32.mrf.mxu0 }
 0x99f   : > { %v6693_v39 = vpop.eup %6692  ;;  %6718 = vrcp.f32 %v4619_v40  ;;  %v4620_v51 = vadd.f32 1.0, %v6691_v49  ;;  %v8323_v40 = vpop.f32.mrf.mxu1 }
 0x9a0   : > { %v6695_v42 = vpop.eup %6694  ;;  %4932 = vst [vmem:[%s8156_s9 + $0x1c0] sm:$0xff] %v6693_v39  ;;  %6720 = vrcp.f32 %v4618_v26 }
 0x9a1   : > { %v6697_v43 = vpop.eup %6696  ;;  %4934 = vst [vmem:[%s8156_s9 + $0x1d0] sm:$0xff] %v6695_v42  ;;  %6722 = vrcp.f32 %v4620_v51  ;;  %v3463_v51 = vsub.s32 4, %v8103_v28  ;;  %v8327_v53 = vpop.f32.mrf.mxu1 }
 0x9a2   : > { %v6699_v23 = vpop.eup %6698  ;;  %4933 = vst [vmem:[%s8156_s9 + $0x1c8] sm:$0xff] %v6697_v43  ;;  %6724 = vpow2.f32 %v5467_v35 }
 0x9a3   : > { %v6701_v16 = vpop.eup %6700  ;;  %4935 = vst [vmem:[%s8156_s9 + $0x1d8] sm:$0xff] %v6699_v23  ;;  %6726 = vpow2.f32 %v5469_v37  ;;  %v6159_v37 = vpop.f32.mrf.mxu0 }
 0x9a4   : > { %v6703_v24 = vpop.eup %6702  ;;  %4939 = vst [vmem:[%s8156_s9 + $0x1f8] sm:$0xff] %v6701_v16  ;;  %6728 = vpow2.f32 %v5468_v46  ;;  %v6980_v16 = vld [vmem:[%s8647_s19] sm:$0xff] }
 0x9a5   : > { %v6705_v63 = vpop.eup %6704  ;;  %4941 = vst [vmem:[%s8156_s9 + $0x208] sm:$0xff] %v6703_v24  ;;  %6730 = vpow2.f32 %v5470_v0  ;;  %v4144_v38 = vpop.f32.mrf.mxu0  ;;  %v8340_v61 = vrot.slane %v6980_v16, %v3467_v19 }
 0x9a6   : > { %v6707_v34 = vpop.eup %6706  ;;  %4940 = vst [vmem:[%s8156_s9 + $0x200] sm:$0xff] %v6705_v63  ;;  %6732 = vpow2.f32 %v5474_v21  ;;  %v8336_v24 = vpop.f32.mrf.mxu1  ;;  %v8338_v63 = vrot.slane %v6980_v16, %v3471_v3 }
 0x9a7   : > { %v6709_v27 = vpop.eup %6708  ;;  %4942 = vst [vmem:[%s8156_s9 + $0x210] sm:$0xff] %v6707_v34  ;;  %6734 = vpow2.f32 %v5476_v20  ;;  %v8334_v20 = vrot.slane %v6980_v16, %v3463_v51  ;;  %v4031_v59 = vadd.f32 %v8262_v55, %v8340_v61  ;;  %v4041_v19 = vadd.f32 %v8280_v9, %v8340_v61 }
 0x9a8   : > { %v6711_v47 = vpop.eup %6710  ;;  %4946 = vst [vmem:[%s8156_s9 + $0x230] sm:$0xff] %v6709_v27  ;;  %6736 = vpow2.f32 %v5475_v31  ;;  %v8344_v25 = vpop.f32.mrf.mxu1  ;;  %v4150_v52 = vadd.f32 %v8313_v5, %v8338_v63 }
 0x9a9   : > { %v6713_v57 = vpop.eup %6712  ;;  %4948 = vst [vmem:[%s8156_s9 + $0x240] sm:$0xff] %v6711_v47  ;;  %6738 = vpow2.f32 %v5477_v45  ;;  %v4029_v27 = vadd.f32 %v8256_v8, %v8334_v20  ;;  %v4142_v8 = vadd.f32 %v8321_v10, %v8338_v63  ;;  %v4033_v5 = vadd.f32 %v8265_v6, %v8334_v20 }
 0x9aa   : > { %v6715_v17 = vpop.eup %6714  ;;  %4947 = vst [vmem:[%s8156_s9 + $0x238] sm:$0xff] %v6713_v57  ;;  %6740 = vpow2.f32 %v5481_v32  ;;  %v5388_v10 = vmul.f32 -1.442695, %v4031_v59  ;;  %v4039_v51 = vadd.f32 %v8271_v1, %v8334_v20  ;;  %v4043_v16 = vadd.f32 %v8291_v18, %v8334_v20 }
 0x9ab   : > { %v6717_v62 = vpop.eup %6716  ;;  %4949 = vst [vmem:[%s8156_s9 + $0x248] sm:$0xff] %v6715_v17  ;;  %6742 = vpow2.f32 %v5483_v14  ;;  %v6162_v14 = vpop.f32.mrf.mxu0  ;;  %v5389_v6 = vmul.f32 -1.442695, %v4142_v8 }
 0x9ac   : > { %v6719_v30 = vpop.eup %6718  ;;  %4953 = vst [vmem:[%s8156_s9 + $0x268] sm:$0xff] %v6717_v62  ;;  %6744 = vpow2.f32 %v5482_v48  ;;  %v4166_v3 = vadd.f32 %v6162_v14, %v8338_v63  ;;  %v5408_v14 = vmul.f32 -1.442695, %v4043_v16 }
 0x9ad   : > { %v6721_v13 = vpop.eup %6720  ;;  %4955 = vst [vmem:[%s8156_s9 + $0x278] sm:$0xff] %v6719_v30  ;;  %6746 = vpow2.f32 %v5484_v56  ;;  %v5387_v30 = vmul.f32 -1.442695, %v4029_v27 }
 0x9ae   : > { %v6723_v36 = vpop.eup %6722  ;;  %4954 = vst [vmem:[%s8156_s9 + $0x270] sm:$0xff] %v6721_v13  ;;  %6748 = vpow2.f32 %v5488_v29  ;;  %v8354_v13 = vpop.f32.mrf.mxu1  ;;  %v5431_v9 = vmul.f32 -1.442695, %v4166_v3 }
 0x9af   : > { %v6725_v54 = vpop.eup %6724  ;;  %4956 = vst [vmem:[%s8156_s9 + $0x280] sm:$0xff] %v6723_v36  ;;  %6750 = vpow2.f32 %v5490_v58  ;;  %v5403_v36 = vmul.f32 -1.442695, %v4150_v52 }
 0x9b0   : > { %v6727_v49 = vpop.eup %6726  ;;  %v4624_v26 = vadd.f32 1.0, %v6725_v54  ;;  %6752 = vpow2.f32 %v5489_v33  ;;  %v4157_v33 = vpop.f32.mrf.mxu0  ;;  %v4153_v54 = vadd.f32 %v6159_v37, %v8338_v63 }
 0x9b1   : > { %v6729_v35 = vpop.eup %6728  ;;  %v4626_v41 = vadd.f32 1.0, %v6727_v49  ;;  %6754 = vpow2.f32 %v5491_v2 }
 0x9b2   : > { %v6731_v11 = vpop.eup %6730  ;;  %6756 = vrcp.f32 %v4624_v26  ;;  %v4625_v39 = vadd.f32 1.0, %v6729_v35  ;;  %v4035_v26 = vadd.f32 %v8267_v7, %v8340_v61  ;;  %v6163_v37 = vpop.f32.mrf.mxu0  ;;  %v5410_v7 = vmul.f32 -1.442695, %v4153_v54 }
 0x9b3   : > { %v6733_v42 = vpop.eup %6732  ;;  %6758 = vrcp.f32 %v4626_v41  ;;  %v4627_v46 = vadd.f32 1.0, %v6731_v11  ;;  %v4145_v41 = vadd.f32 %v4144_v38, %v8338_v63 }
 0x9b4   : > { %v6735_v43 = vpop.eup %6734  ;;  %6760 = vrcp.f32 %v4625_v39  ;;  %v4631_v0 = vadd.f32 1.0, %v6733_v42  ;;  %v5394_v39 = vmul.f32 -1.442695, %v4033_v5  ;;  %v8365_v42 = vpop.f32.mrf.mxu1 }
 0x9b5   : > { %v6737_v23 = vpop.eup %6736  ;;  %6762 = vrcp.f32 %v4627_v46  ;;  %v4633_v21 = vadd.f32 1.0, %v6735_v43  ;;  %v5396_v1 = vmul.f32 -1.442695, %v4145_v41  ;;  %v4160_v38 = vpop.f32.mrf.mxu0 }
 0x9b6   : > { %v6739_v50 = vpop.eup %6738  ;;  %6764 = vrcp.f32 %v4631_v0  ;;  %v4632_v15 = vadd.f32 1.0, %v6737_v23  ;;  %v5395_v0 = vmul.f32 -1.442695, %v4035_v26 }
 0x9b7   : > { %v6741_v31 = vpop.eup %6740  ;;  %6766 = vrcp.f32 %v4633_v21  ;;  %v4634_v60 = vadd.f32 1.0, %v6739_v50  ;;  %v4158_v21 = vadd.f32 %v4157_v33, %v8338_v63 }
 0x9b8   : > { %v6743_v28 = vpop.eup %6742  ;;  %6768 = vrcp.f32 %v4632_v15  ;;  %v4638_v45 = vadd.f32 1.0, %v6741_v31  ;;  %v5401_v15 = vmul.f32 -1.442695, %v4039_v51  ;;  %v8377_v31 = vpop.f32.mrf.mxu1 }
 0x9b9   : > { %v6745_v34 = vpop.eup %6744  ;;  %6770 = vrcp.f32 %v4634_v60  ;;  %v4640_v32 = vadd.f32 1.0, %v6743_v28  ;;  %v4169_v28 = vadd.f32 %v6163_v37, %v8338_v63  ;;  %v5417_v18 = vmul.f32 -1.442695, %v4158_v21 }
 0x9ba   : > { %v6747_v12 = vpop.eup %6746  ;;  %6772 = vrcp.f32 %v4638_v45  ;;  %v4639_v22 = vadd.f32 1.0, %v6745_v34  ;;  %v5402_v34 = vmul.f32 -1.442695, %v4041_v19 }
 0x9bb   : > { %v6749_v47 = vpop.eup %6748  ;;  %6774 = vrcp.f32 %v4640_v32  ;;  %v4641_v48 = vadd.f32 1.0, %v6747_v12  ;;  %v4045_v32 = vadd.f32 %v8303_v44, %v8340_v61  ;;  %v5438_v44 = vmul.f32 -1.442695, %v4169_v28 }
 0x9bc   : > { %v6751_v57 = vpop.eup %6750  ;;  %6776 = vrcp.f32 %v4639_v22  ;;  %v4645_v56 = vadd.f32 1.0, %v6749_v47  ;;  %v4161_v22 = vadd.f32 %v4160_v38, %v8338_v63  ;;  %v8387_v47 = vpop.f32.mrf.mxu0 }
 0x9bd   : > { %v6753_v17 = vpop.eup %6752  ;;  %6778 = vrcp.f32 %v4641_v48  ;;  %v4647_v29 = vadd.f32 1.0, %v6751_v57  ;;  %v8389_v48 = vpop.f32.mrf.mxu1 }
 0x9be   : > { %v6755_v62 = vpop.eup %6754  ;;  %6780 = vrcp.f32 %v4645_v56  ;;  %v4646_v58 = vadd.f32 1.0, %v6753_v17  ;;  %v5409_v56 = vmul.f32 -1.442695, %v4045_v32  ;;  %v5424_v17 = vmul.f32 -1.442695, %v4161_v22  ;;  %v4173_v8 = vpop.f32.mrf.mxu0 }
 0x9bf   : > { %v6757_v2 = vpop.eup %6756  ;;  %6782 = vrcp.f32 %v4647_v29  ;;  %v4648_v55 = vadd.f32 1.0, %v6755_v62  ;;  %v8395_v62 = vpop.f32.mrf.mxu1 }
 0x9c0   : > { %v6759_v49 = vpop.eup %6758  ;;  %4960 = vst [vmem:[%s8156_s9 + $0x2a0] sm:$0xff] %v6757_v2  ;;  %6784 = vrcp.f32 %v4646_v58  ;;  %v6167_v54 = vpop.f32.mrf.mxu0 }
 0x9c1   : > { %v6761_v35 = vpop.eup %6760  ;;  %4962 = vst [vmem:[%s8156_s9 + $0x2b0] sm:$0xff] %v6759_v49  ;;  %6786 = vrcp.f32 %v4648_v55  ;;  %v8398_v49 = vpop.f32.mrf.mxu1 }
 0x9c2   : > { %v6763_v11 = vpop.eup %6762  ;;  %4961 = vst [vmem:[%s8156_s9 + $0x2a8] sm:$0xff] %v6761_v35  ;;  %6788 = vpow2.f32 %v5387_v30  ;;  %v4176_v37 = vpop.f32.mrf.mxu0 }
 0x9c3   : > { %v6765_v46 = vpop.eup %6764  ;;  %4963 = vst [vmem:[%s8156_s9 + $0x2b8] sm:$0xff] %v6763_v11  ;;  %6790 = vpow2.f32 %v5403_v36 }
 0x9c4   : > { %v6767_v43 = vpop.eup %6766  ;;  %4967 = vst [vmem:[%s8156_s9 + $0x2d8] sm:$0xff] %v6765_v46  ;;  %6792 = vpow2.f32 %v5388_v10  ;;  %v8400_v46 = vpop.f32.mrf.mxu1 }
 0x9c5   : > { %v6769_v23 = vpop.eup %6768  ;;  %4969 = vst [vmem:[%s8156_s9 + $0x2e8] sm:$0xff] %v6767_v43  ;;  %6794 = vpow2.f32 %v5389_v6 }
 0x9c6   : > { %v6771_v50 = vpop.eup %6770  ;;  %4968 = vst [vmem:[%s8156_s9 + $0x2e0] sm:$0xff] %v6769_v23  ;;  %6796 = vpow2.f32 %v5394_v39  ;;  %v8404_v16 = vpop.f32.mrf.mxu1 }
 0x9c7   : > { %v6773_v60 = vpop.eup %6772  ;;  %4970 = vst [vmem:[%s8156_s9 + $0x2f0] sm:$0xff] %v6771_v50  ;;  %6798 = vpow2.f32 %v5410_v7  ;;  %v4049_v50 = vadd.f32 %v8315_v4, %v8334_v20  ;;  %v4174_v4 = vadd.f32 %v4173_v8, %v8338_v63 }
 0x9c8   : > { %v6775_v45 = vpop.eup %6774  ;;  %4974 = vst [vmem:[%s8156_s9 + $0x310] sm:$0xff] %v6773_v60  ;;  %6800 = vpow2.f32 %v5395_v0 }
 0x9c9   : > { %v6777_v12 = vpop.eup %6776  ;;  %4976 = vst [vmem:[%s8156_s9 + $0x320] sm:$0xff] %v6775_v45  ;;  %6802 = vpow2.f32 %v5396_v1 }
 0x9ca   : > { %v6779_v27 = vpop.eup %6778  ;;  %4975 = vst [vmem:[%s8156_s9 + $0x318] sm:$0xff] %v6777_v12  ;;  %6804 = vpow2.f32 %v5401_v15  ;;  %v6170_v15 = vpop.f32.mrf.mxu0 }
 0x9cb   : > { %v6781_v52 = vpop.eup %6780  ;;  %4977 = vst [vmem:[%s8156_s9 + $0x328] sm:$0xff] %v6779_v27  ;;  %6806 = vpow2.f32 %v5431_v9  ;;  %v4182_v9 = vadd.f32 %v8387_v47, %v8338_v63  ;;  %v5415_v27 = vmul.f32 -1.442695, %v4049_v50 }
 0x9cc   : > { %v6783_v57 = vpop.eup %6782  ;;  %4981 = vst [vmem:[%s8156_s9 + $0x348] sm:$0xff] %v6781_v52  ;;  %6808 = vpow2.f32 %v5402_v34  ;;  %v4051_v34 = vadd.f32 %v8323_v40, %v8340_v61  ;;  %v4189_v47 = vpop.f32.mrf.mxu0 }
 0x9cd   : > { %v6785_v59 = vpop.eup %6784  ;;  %4983 = vst [vmem:[%s8156_s9 + $0x358] sm:$0xff] %v6783_v57  ;;  %6810 = vpow2.f32 %v5417_v18  ;;  %v8413_v52 = vpop.f32.mrf.mxu1  ;;  %v5459_v57 = vmul.f32 -1.442695, %v4182_v9 }
 0x9ce   : > { %v6787_v29 = vpop.eup %6786  ;;  %4982 = vst [vmem:[%s8156_s9 + $0x350] sm:$0xff] %v6785_v59  ;;  %6812 = vpow2.f32 %v5408_v14  ;;  %v4053_v14 = vadd.f32 %v8327_v53, %v8334_v20  ;;  %v5445_v53 = vmul.f32 -1.442695, %v4174_v4 }
 0x9cf   : > { %v6789_v58 = vpop.eup %6788  ;;  %4984 = vst [vmem:[%s8156_s9 + $0x360] sm:$0xff] %v6787_v29  ;;  %6814 = vpow2.f32 %v5438_v44  ;;  %v4055_v29 = vadd.f32 %v8336_v24, %v8340_v61 }
 0x9d0   : > { %v6791_v30 = vpop.eup %6790  ;;  %v4544_v5 = vadd.f32 1.0, %v6789_v58  ;;  %6816 = vpow2.f32 %v5409_v56  ;;  %v4185_v56 = vadd.f32 %v6167_v54, %v8338_v63  ;;  %v4177_v58 = vadd.f32 %v4176_v37, %v8338_v63 }
 0x9d1   : > { %v6793_v33 = vpop.eup %6792  ;;  %v4560_v2 = vadd.f32 1.0, %v6791_v30  ;;  %6818 = vpow2.f32 %v5424_v17  ;;  %v5416_v17 = vmul.f32 -1.442695, %v4051_v34  ;;  %v4198_v54 = vadd.f32 %v6170_v15, %v8338_v63 }
 0x9d2   : > { %v6795_v55 = vpop.eup %6794  ;;  %6820 = vrcp.f32 %v4544_v5  ;;  %v4545_v36 = vadd.f32 1.0, %v6793_v33  ;;  %v5422_v5 = vmul.f32 -1.442695, %v4053_v14  ;;  %v4059_v33 = vadd.f32 %v8344_v25, %v8334_v20 }
 0x9d3   : > { %v6797_v10 = vpop.eup %6796  ;;  %6822 = vrcp.f32 %v4560_v2  ;;  %v4546_v26 = vadd.f32 1.0, %v6795_v55  ;;  %v6171_v2 = vpop.f32.mrf.mxu0  ;;  %v5466_v24 = vmul.f32 -1.442695, %v4185_v56  ;;  %v5452_v25 = vmul.f32 -1.442695, %v4177_v58 }
 0x9d4   : > { %v6799_v35 = vpop.eup %6798  ;;  %6824 = vrcp.f32 %v4545_v36  ;;  %v4551_v6 = vadd.f32 1.0, %v6797_v10  ;;  %v8424_v55 = vpop.f32.mrf.mxu1 }
 0x9d5   : > { %v6801_v41 = vpop.eup %6800  ;;  %6826 = vrcp.f32 %v4546_v26  ;;  %v4567_v11 = vadd.f32 1.0, %v6799_v35  ;;  %v5423_v26 = vmul.f32 -1.442695, %v4055_v29  ;;  %v4061_v35 = vadd.f32 %v8354_v13, %v8340_v61  ;;  %v4192_v37 = vpop.f32.mrf.mxu0 }
 0x9d6   : > { %v6803_v39 = vpop.eup %6802  ;;  %6828 = vrcp.f32 %v4551_v6  ;;  %v4552_v51 = vadd.f32 1.0, %v6801_v41  ;;  %v4190_v41 = vadd.f32 %v4189_v47, %v8338_v63  ;;  %v5487_v13 = vmul.f32 -1.442695, %v4198_v54 }
 0x9d7   : > { %v6805_v7 = vpop.eup %6804  ;;  %6830 = vrcp.f32 %v4567_v11  ;;  %v4553_v3 = vadd.f32 1.0, %v6803_v39  ;;  %v5429_v39 = vmul.f32 -1.442695, %v4059_v33 }
 0x9d8   : > { %v6807_v43 = vpop.eup %6806  ;;  %6832 = vrcp.f32 %v4552_v51  ;;  %v4558_v0 = vadd.f32 1.0, %v6805_v7  ;;  %v4063_v51 = vadd.f32 %v8365_v42, %v8334_v20  ;;  %v8436_v7 = vpop.f32.mrf.mxu1 }
 0x9d9   : > { %v6809_v19 = vpop.eup %6808  ;;  %6834 = vrcp.f32 %v4553_v3  ;;  %v4588_v23 = vadd.f32 1.0, %v6807_v43  ;;  %v4201_v43 = vadd.f32 %v6171_v2, %v8338_v63 }
 0x9da   : > { %v6811_v1 = vpop.eup %6810  ;;  %6836 = vrcp.f32 %v4558_v0  ;;  %v4559_v21 = vadd.f32 1.0, %v6809_v19  ;;  %v5430_v19 = vmul.f32 -1.442695, %v4061_v35  ;;  %v5436_v15 = vmul.f32 -1.442695, %v4063_v51 }
 0x9db   : > { %v6813_v38 = vpop.eup %6812  ;;  %6838 = vrcp.f32 %v4588_v23  ;;  %v4574_v60 = vadd.f32 1.0, %v6811_v1  ;;  %v4065_v23 = vadd.f32 %v8377_v31, %v8340_v61  ;;  %v5473_v1 = vmul.f32 -1.442695, %v4190_v41 }
 0x9dc   : > { %v6815_v28 = vpop.eup %6814  ;;  %6840 = vrcp.f32 %v4559_v21  ;;  %v4565_v45 = vadd.f32 1.0, %v6813_v38  ;;  %v4193_v21 = vadd.f32 %v4192_v37, %v8338_v63  ;;  %v8446_v38 = vpop.f32.mrf.mxu1  ;;  %v5494_v31 = vmul.f32 -1.442695, %v4201_v43 }
 0x9dd   : > { %v6817_v32 = vpop.eup %6816  ;;  %6842 = vrcp.f32 %v4574_v60  ;;  %v4595_v12 = vadd.f32 1.0, %v6815_v28  ;;  %v5437_v28 = vmul.f32 -1.442695, %v4065_v23  ;;  %v4071_v41 = vadd.f32 %v8395_v62, %v8340_v61 }
 0x9de   : > { %v6819_v18 = vpop.eup %6818  ;;  %6844 = vrcp.f32 %v4565_v45  ;;  %v4566_v22 = vadd.f32 1.0, %v6817_v32  ;;  %v5480_v63 = vmul.f32 -1.442695, %v4193_v21  ;;  %v8452_v32 = vpop.f32.mrf.mxu1  ;;  %v4073_v51 = vadd.f32 %v8398_v49, %v8334_v20 }
 0x9df   : > { %v6821_v44 = vpop.eup %6820  ;;  %6846 = vrcp.f32 %v4595_v12  ;;  %v4581_v40 = vadd.f32 1.0, %v6819_v18  ;;  %v4079_v62 = vadd.f32 %v8404_v16, %v8334_v20 }
 0x9e0   : > { %v6823_v59 = vpop.eup %6822  ;;  %4880 = vst [vmem:[%s8156_s9 + $0x20] sm:$0xff] %v6821_v44  ;;  %6848 = vrcp.f32 %v4566_v22  ;;  %v8455_v44 = vpop.f32.mrf.mxu1 }
 0x9e1   : > { %v6825_v8 = vpop.eup %6824  ;;  %4896 = vst [vmem:[%s8156_s9 + $0xa0] sm:$0xff] %v6823_v59  ;;  %6850 = vrcp.f32 %v4581_v40 }
 0x9e2   : > { %v6827_v30 = vpop.eup %6826  ;;  %4881 = vst [vmem:[%s8156_s9 + $0x28] sm:$0xff] %v6825_v8  ;;  %6852 = vpow2.f32 %v5415_v27  ;;  %v8457_v58 = vpop.f32.mrf.mxu1 }
 0x9e3   : > { %v6829_v36 = vpop.eup %6828  ;;  %4882 = vst [vmem:[%s8156_s9 + $0x30] sm:$0xff] %v6827_v30  ;;  %6854 = vpow2.f32 %v5459_v57 }
 0x9e4   : > { %v6831_v10 = vpop.eup %6830  ;;  %4887 = vst [vmem:[%s8156_s9 + $0x58] sm:$0xff] %v6829_v36  ;;  %6856 = vpow2.f32 %v5416_v17  ;;  %v4098_v35 = vpop.f32.mrf.mxu1 }
 0x9e5   : > { %v6833_v6 = vpop.eup %6832  ;;  %4903 = vst [vmem:[%s8156_s9 + $0xd8] sm:$0xff] %v6831_v10  ;;  %6858 = vpow2.f32 %v5445_v53 }
 0x9e6   : > { %v6835_v11 = vpop.eup %6834  ;;  %4888 = vst [vmem:[%s8156_s9 + $0x60] sm:$0xff] %v6833_v6  ;;  %6860 = vpow2.f32 %v5422_v5 }
 0x9e7   : > { %v6837_v3 = vpop.eup %6836  ;;  %4889 = vst [vmem:[%s8156_s9 + $0x68] sm:$0xff] %v6835_v11  ;;  %6862 = vpow2.f32 %v5466_v24 }
 0x9e8   : > { %v6839_v0 = vpop.eup %6838  ;;  %4894 = vst [vmem:[%s8156_s9 + $0x90] sm:$0xff] %v6837_v3  ;;  %6864 = vpow2.f32 %v5423_v26  ;;  %v4069_v26 = vadd.f32 %v8389_v48, %v8334_v20  ;;  %v4075_v48 = vadd.f32 %v8400_v46, %v8340_v61  ;;  %v5450_v46 = vmul.f32 -1.442695, %v4073_v51 }
 0x9e9   : > { %v6841_v42 = vpop.eup %6840  ;;  %4924 = vst [vmem:[%s8156_s9 + $0x180] sm:$0xff] %v6839_v0  ;;  %6866 = vpow2.f32 %v5452_v25 }
 0x9ea   : > { %v6843_v50 = vpop.eup %6842  ;;  %4895 = vst [vmem:[%s8156_s9 + $0x98] sm:$0xff] %v6841_v42  ;;  %6868 = vpow2.f32 %v5429_v39  ;;  %v5443_v0 = vmul.f32 -1.442695, %v4069_v26  ;;  %v5444_v42 = vmul.f32 -1.442695, %v4071_v41 }
 0x9eb   : > { %v6845_v60 = vpop.eup %6844  ;;  %4910 = vst [vmem:[%s8156_s9 + $0x110] sm:$0xff] %v6843_v50  ;;  %6870 = vpow2.f32 %v5487_v13  ;;  %v4083_v50 = vadd.f32 %v8424_v55, %v8334_v20  ;;  %v5451_v16 = vmul.f32 -1.442695, %v4075_v48 }
 0x9ec   : > { %v6847_v9 = vpop.eup %6846  ;;  %4901 = vst [vmem:[%s8156_s9 + $0xc8] sm:$0xff] %v6845_v60  ;;  %6872 = vpow2.f32 %v5430_v19  ;;  %v4100_v19 = vpop.f32.mrf.mxu1  ;;  %v4085_v60 = vadd.f32 %v8436_v7, %v8340_v61 }
 0x9ed   : > { %v6849_v45 = vpop.eup %6848  ;;  %4931 = vst [vmem:[%s8156_s9 + $0x1b8] sm:$0xff] %v6847_v9  ;;  %6874 = vpow2.f32 %v5473_v1  ;;  %v4081_v1 = vadd.f32 %v8413_v52, %v8340_v61  ;;  %v5457_v52 = vmul.f32 -1.442695, %v4079_v62  ;;  %v4089_v9 = vadd.f32 %v8446_v38, %v8334_v20 }
 0x9ee   : > { %v6851_v34 = vpop.eup %6850  ;;  %4902 = vst [vmem:[%s8156_s9 + $0xd0] sm:$0xff] %v6849_v45  ;;  %6876 = vpow2.f32 %v5436_v15  ;;  %v5464_v7 = vmul.f32 -1.442695, %v4083_v50  ;;  %v5465_v38 = vmul.f32 -1.442695, %v4085_v60 }
 0x9ef   : > { %v6853_v12 = vpop.eup %6852  ;;  %4917 = vst [vmem:[%s8156_s9 + $0x148] sm:$0xff] %v6851_v34  ;;  %6878 = vpow2.f32 %v5494_v31  ;;  %v5458_v55 = vmul.f32 -1.442695, %v4081_v1 }
 0x9f0   : > { %v6855_v4 = vpop.eup %6854  ;;  %v4572_v18 = vadd.f32 1.0, %v6853_v12  ;;  %6880 = vpow2.f32 %v5437_v28  ;;  %v4102_v28 = vpop.f32.mrf.mxu1  ;;  %v4093_v12 = vadd.f32 %v8455_v44, %v8334_v20 }
 0x9f1   : > { %v6857_v22 = vpop.eup %6856  ;;  %v4616_v27 = vadd.f32 1.0, %v6855_v4  ;;  %6882 = vpow2.f32 %v5480_v63  ;;  %v4091_v63 = vadd.f32 %v8452_v32, %v8340_v61  ;;  %v5471_v32 = vmul.f32 -1.442695, %v4089_v9 }
 0x9f2   : > { %v6859_v14 = vpop.eup %6858  ;;  %6884 = vrcp.f32 %v4572_v18  ;;  %v4573_v47 = vadd.f32 1.0, %v6857_v22  ;;  %v4095_v18 = vadd.f32 %v8457_v58, %v8340_v61 }
 0x9f3   : > { %v6861_v40 = vpop.eup %6860  ;;  %6886 = vrcp.f32 %v4616_v27  ;;  %v4602_v57 = vadd.f32 1.0, %v6859_v14  ;;  %v4099_v27 = vadd.f32 %v4098_v35, %v8334_v20  ;;  %v4104_v14 = vpop.f32.mrf.mxu1  ;;  %v5472_v44 = vmul.f32 -1.442695, %v4091_v63 }
 0x9f4   : > { %v6863_v56 = vpop.eup %6862  ;;  %6888 = vrcp.f32 %v4573_v47  ;;  %v4579_v59 = vadd.f32 1.0, %v6861_v40  ;;  %v4101_v40 = vadd.f32 %v4100_v19, %v8340_v61 }
 0x9f5   : > { %v6865_v17 = vpop.eup %6864  ;;  %6890 = vrcp.f32 %v4602_v57  ;;  %v4623_v29 = vadd.f32 1.0, %v6863_v56  ;;  %v5478_v56 = vmul.f32 -1.442695, %v4093_v12  ;;  %v5485_v58 = vmul.f32 -1.442695, %v4099_v27 }
 0x9f6   : > { %v6867_v8 = vpop.eup %6866  ;;  %6892 = vrcp.f32 %v4579_v59  ;;  %v4580_v53 = vadd.f32 1.0, %v6865_v17  ;;  %v4103_v59 = vadd.f32 %v4102_v28, %v8334_v20 }
 0x9f7   : > { %v6869_v30 = vpop.eup %6868  ;;  %6894 = vrcp.f32 %v4623_v29  ;;  %v4609_v5 = vadd.f32 1.0, %v6867_v8  ;;  %v5479_v29 = vmul.f32 -1.442695, %v4095_v18  ;;  %v4105_v8 = vadd.f32 %v4104_v14, %v8340_v61 }
 0x9f8   : > { %v6871_v33 = vpop.eup %6870  ;;  %6896 = vrcp.f32 %v4580_v53  ;;  %v4586_v2 = vadd.f32 1.0, %v6869_v30  ;;  %v5492_v20 = vmul.f32 -1.442695, %v4103_v59 }
 0x9f9   : > { %v6873_v36 = vpop.eup %6872  ;;  %6898 = vrcp.f32 %v4609_v5  ;;  %v4644_v24 = vadd.f32 1.0, %v6871_v33  ;;  %v5486_v5 = vmul.f32 -1.442695, %v4101_v40 }
 0x9fa   : > { %v6875_v54 = vpop.eup %6874  ;;  %6900 = vrcp.f32 %v4586_v2  ;;  %v4587_v10 = vadd.f32 1.0, %v6873_v36  ;;  %v5493_v36 = vmul.f32 -1.442695, %v4105_v8 }
 0x9fb   : > { %v6877_v6 = vpop.eup %6876  ;;  %6902 = vrcp.f32 %v4644_v24  ;;  %v4630_v25 = vadd.f32 1.0, %v6875_v54 }
 0x9fc   : > { %v6879_v11 = vpop.eup %6878  ;;  %6904 = vrcp.f32 %v4587_v10  ;;  %v4593_v39 = vadd.f32 1.0, %v6877_v6 }
 0x9fd   : > { %v6881_v37 = vpop.eup %6880  ;;  %6906 = vrcp.f32 %v4630_v25  ;;  %v4651_v3 = vadd.f32 1.0, %v6879_v11 }
 0x9fe   : > { %v6883_v13 = vpop.eup %6882  ;;  %6908 = vrcp.f32 %v4593_v39  ;;  %v4594_v43 = vadd.f32 1.0, %v6881_v37 }
 0x9ff   : > { %v6885_v23 = vpop.eup %6884  ;;  %6910 = vrcp.f32 %v4651_v3  ;;  %v4637_v49 = vadd.f32 1.0, %v6883_v13 }
 0xa00   : > { %v6887_v21 = vpop.eup %6886  ;;  %4908 = vst [vmem:[%s8156_s9 + $0x100] sm:$0xff] %v6885_v23  ;;  %6912 = vrcp.f32 %v4594_v43 }
 0xa01   : > { %v6889_v15 = vpop.eup %6888  ;;  %4952 = vst [vmem:[%s8156_s9 + $0x260] sm:$0xff] %v6887_v21  ;;  %6914 = vrcp.f32 %v4637_v49 }
 0xa02   : > { %v6891_v31 = vpop.eup %6890  ;;  %4909 = vst [vmem:[%s8156_s9 + $0x108] sm:$0xff] %v6889_v15  ;;  %6916 = vpow2.f32 %v5443_v0 }
 0xa03   : > { %v6893_v45 = vpop.eup %6892  ;;  %4938 = vst [vmem:[%s8156_s9 + $0x1f0] sm:$0xff] %v6891_v31  ;;  %6918 = vpow2.f32 %v5444_v42 }
 0xa04   : > { %v6895_v34 = vpop.eup %6894  ;;  %4915 = vst [vmem:[%s8156_s9 + $0x138] sm:$0xff] %v6893_v45  ;;  %6920 = vpow2.f32 %v5450_v46 }
 0xa05   : > { %v6897_v4 = vpop.eup %6896  ;;  %4959 = vst [vmem:[%s8156_s9 + $0x298] sm:$0xff] %v6895_v34  ;;  %6922 = vpow2.f32 %v5451_v16 }
 0xa06   : > { %v6899_v22 = vpop.eup %6898  ;;  %4916 = vst [vmem:[%s8156_s9 + $0x140] sm:$0xff] %v6897_v4  ;;  %6924 = vpow2.f32 %v5457_v52 }
 0xa07   : > { %v6901_v47 = vpop.eup %6900  ;;  %4945 = vst [vmem:[%s8156_s9 + $0x228] sm:$0xff] %v6899_v22  ;;  %6926 = vpow2.f32 %v5458_v55 }
 0xa08   : > { %v6903_v57 = vpop.eup %6902  ;;  %4922 = vst [vmem:[%s8156_s9 + $0x170] sm:$0xff] %v6901_v47  ;;  %6928 = vpow2.f32 %v5464_v7 }
 0xa09   : > { %v6905_v17 = vpop.eup %6904  ;;  %4980 = vst [vmem:[%s8156_s9 + $0x340] sm:$0xff] %v6903_v57  ;;  %6930 = vpow2.f32 %v5465_v38 }
 0xa0a   : > { %v6907_v53 = vpop.eup %6906  ;;  %4923 = vst [vmem:[%s8156_s9 + $0x178] sm:$0xff] %v6905_v17  ;;  %6932 = vpow2.f32 %v5471_v32 }
 0xa0b   : > { %v6909_v30 = vpop.eup %6908  ;;  %4966 = vst [vmem:[%s8156_s9 + $0x2d0] sm:$0xff] %v6907_v53  ;;  %6934 = vpow2.f32 %v5472_v44 }
 0xa0c   : > { %v6911_v33 = vpop.eup %6910  ;;  %4929 = vst [vmem:[%s8156_s9 + $0x1a8] sm:$0xff] %v6909_v30  ;;  %6936 = vpow2.f32 %v5478_v56 }
 0xa0d   : > { %v6913_v2 = vpop.eup %6912  ;;  %4987 = vst [vmem:[%s8156_s9 + $0x378] sm:$0xff] %v6911_v33  ;;  %6938 = vpow2.f32 %v5479_v29 }
 0xa0e   : > { %v6915_v24 = vpop.eup %6914  ;;  %4930 = vst [vmem:[%s8156_s9 + $0x1b0] sm:$0xff] %v6913_v2  ;;  %6940 = vpow2.f32 %v5485_v58 }
 0xa0f   : > { %v6917_v61 = vpop.eup %6916  ;;  %4973 = vst [vmem:[%s8156_s9 + $0x308] sm:$0xff] %v6915_v24  ;;  %6942 = vpow2.f32 %v5486_v5 }
 0xa10   : > { %v6919_v54 = vpop.eup %6918  ;;  %v4600_v10 = vadd.f32 1.0, %v6917_v61  ;;  %6944 = vpow2.f32 %v5492_v20 }
 0xa11   : > { %v6921_v26 = vpop.eup %6920  ;;  %v4601_v35 = vadd.f32 1.0, %v6919_v54  ;;  %6946 = vpow2.f32 %v5493_v36 }
 0xa12   : > { %v6923_v6 = vpop.eup %6922  ;;  %6948 = vrcp.f32 %v4600_v10  ;;  %v4607_v25 = vadd.f32 1.0, %v6921_v26 }
 0xa13   : > { %v6925_v41 = vpop.eup %6924  ;;  %6950 = vrcp.f32 %v4601_v35  ;;  %v4608_v11 = vadd.f32 1.0, %v6923_v6 }
 0xa14   : > { %v6927_v39 = vpop.eup %6926  ;;  %6952 = vrcp.f32 %v4607_v25  ;;  %v4614_v51 = vadd.f32 1.0, %v6925_v41 }
 0xa15   : > { %v6929_v37 = vpop.eup %6928  ;;  %6954 = vrcp.f32 %v4608_v11  ;;  %v4615_v3 = vadd.f32 1.0, %v6927_v39 }
 0xa16   : > { %v6931_v48 = vpop.eup %6930  ;;  %6956 = vrcp.f32 %v4614_v51  ;;  %v4621_v13 = vadd.f32 1.0, %v6929_v37 }
 0xa17   : > { %v6933_v43 = vpop.eup %6932  ;;  %6958 = vrcp.f32 %v4615_v3  ;;  %v4622_v0 = vadd.f32 1.0, %v6931_v48 }
 0xa18   : > { %v6935_v62 = vpop.eup %6934  ;;  %6960 = vrcp.f32 %v4621_v13  ;;  %v4628_v19 = vadd.f32 1.0, %v6933_v43 }
 0xa19   : > { %v6937_v23 = vpop.eup %6936  ;;  %6962 = vrcp.f32 %v4622_v0  ;;  %v4629_v49 = vadd.f32 1.0, %v6935_v62 }
 0xa1a   : > { %v6939_v42 = vpop.eup %6938  ;;  %6964 = vrcp.f32 %v4628_v19  ;;  %v4635_v1 = vadd.f32 1.0, %v6937_v23 }
 0xa1b   : > { %v6941_v21 = vpop.eup %6940  ;;  %6966 = vrcp.f32 %v4629_v49  ;;  %v4636_v46 = vadd.f32 1.0, %v6939_v42 }
 0xa1c   : > { %v6943_v50 = vpop.eup %6942  ;;  %6968 = vrcp.f32 %v4635_v1  ;;  %v4642_v15 = vadd.f32 1.0, %v6941_v21 }
 0xa1d   : > { %v6945_v16 = vpop.eup %6944  ;;  %6970 = vrcp.f32 %v4636_v46  ;;  %v4643_v60 = vadd.f32 1.0, %v6943_v50 }
 0xa1e   : > { %v6947_v31 = vpop.eup %6946  ;;  %6972 = vrcp.f32 %v4642_v15  ;;  %v4649_v52 = vadd.f32 1.0, %v6945_v16 }
 0xa1f   : > { %v6949_v9 = vpop.eup %6948  ;;  %6974 = vrcp.f32 %v4643_v60  ;;  %v4650_v28 = vadd.f32 1.0, %v6947_v31 }
 0xa20   : > { %v6951_v45 = vpop.eup %6950  ;;  %4936 = vst [vmem:[%s8156_s9 + $0x1e0] sm:$0xff] %v6949_v9  ;;  %6976 = vrcp.f32 %v4649_v52 }
 0xa21   : > { %v6953_v55 = vpop.eup %6952  ;;  %4937 = vst [vmem:[%s8156_s9 + $0x1e8] sm:$0xff] %v6951_v45  ;;  %6978 = vrcp.f32 %v4650_v28 }
 0xa22   : > { %v6955_v63 = vpop.eup %6954  ;;  %4943 = vst [vmem:[%s8156_s9 + $0x218] sm:$0xff] %v6953_v55 }
 0xa23   : > { %v6957_v34 = vpop.eup %6956  ;;  %4944 = vst [vmem:[%s8156_s9 + $0x220] sm:$0xff] %v6955_v63 }
 0xa24   : > { %v6959_v7 = vpop.eup %6958  ;;  %4950 = vst [vmem:[%s8156_s9 + $0x250] sm:$0xff] %v6957_v34 }
 0xa25   : > { %v6961_v12 = vpop.eup %6960  ;;  %4951 = vst [vmem:[%s8156_s9 + $0x258] sm:$0xff] %v6959_v7 }
 0xa26   : > { %v6963_v4 = vpop.eup %6962  ;;  %4957 = vst [vmem:[%s8156_s9 + $0x288] sm:$0xff] %v6961_v12 }
 0xa27   : > { %v6965_v38 = vpop.eup %6964  ;;  %4958 = vst [vmem:[%s8156_s9 + $0x290] sm:$0xff] %v6963_v4 }
 0xa28   : > { %v6967_v18 = vpop.eup %6966  ;;  %4964 = vst [vmem:[%s8156_s9 + $0x2c0] sm:$0xff] %v6965_v38 }
 0xa29   : > { %v6969_v22 = vpop.eup %6968  ;;  %4965 = vst [vmem:[%s8156_s9 + $0x2c8] sm:$0xff] %v6967_v18 }
 0xa2a   : > { %v6971_v32 = vpop.eup %6970  ;;  %4971 = vst [vmem:[%s8156_s9 + $0x2f8] sm:$0xff] %v6969_v22 }
 0xa2b   : > { %v6973_v27 = vpop.eup %6972  ;;  %4972 = vst [vmem:[%s8156_s9 + $0x300] sm:$0xff] %v6971_v32 }
 0xa2c   : > { %v6975_v14 = vpop.eup %6974  ;;  %4978 = vst [vmem:[%s8156_s9 + $0x330] sm:$0xff] %v6973_v27 }
 0xa2d   : > { %v6977_v47 = vpop.eup %6976  ;;  %4979 = vst [vmem:[%s8156_s9 + $0x338] sm:$0xff] %v6975_v14 }
 0xa2e   : > { %v6979_v44 = vpop.eup %6978  ;;  %4985 = vst [vmem:[%s8156_s9 + $0x368] sm:$0xff] %v6977_v47 }
 0xa2f   : > { %4986 = vst [vmem:[%s8156_s9 + $0x370] sm:$0xff] %v6979_v44 }
 0xa30   : > { %7282 = shalt.err (!%p7279_p2)
}
 0xa31   : > { %s7283_s9 = scalar_lea.hbm %s8521_s22, 14336  ;;  %s7287_s11 = scalar_lea.hbm %s8648_s3, 28672 }
 0xa32   : > { %p7284_p7 = scmp.ne.s32.totalorder %s8521_s22, %s7283_s9  ;;  %p7288_p6 = scmp.lt.s32.totalorder %s8521_s22, %s8648_s3 }
 0xa33   : > { %p7289_p11 = scmp.lt.s32.totalorder %s7287_s11, %s7283_s9 }
 0xa34   : > { %p7285_p5 = pnand %p7284_p7, %p8649_p8 }
 0xa35   : > { %p7290_p12 = por %p7289_p11, %p7288_p6 }
 0xa36   : > { %p7286_p10 = pneg %p7285_p5 }
 0xa38   : > { %p7291_p13 = pnand %p7290_p12, %p7286_p10 }
 0xa3a   : > { %7294 = shalt.err (!%p7291_p13)
}
 0xa3b   : > { %s7374_s23 = smov 896   ;;  %s7375_s18 = smov 56  }
 0xa3c   : > { %6218 = dma.vmem_to_hbm [thread:$0]  (%p8649_p8), %s8524_s13, 14336, %s8521_s22, %s4989_s29, %s7374_s23, %s7374_s23, %s7375_s18  }
 0xa3d PF: > { %s5018_s17 = sand.u32 1, %s7341_s2   ;;  %p8650_p1 = scmp.ne.s32.totalorder %s8629_s30, 0 }
 0xa3e   : > { %p8651_p3 = scmp.ge.s32.totalorder %s7353_s27, 2  ;;  %s5019_s15 = scalar_lea.sflag [#allocation4], %s5018_s17 }
 0xa40   : > { %p6256_p4 = pnand %p8651_p3, %p8650_p1 }
 0xa42   : > { %p6257_p9 = pneg %p6256_p4 }
 0xa44   : > { %7336 = dma.done.wait (%p6257_p9), %s5019_s15, 14336  }
 0xa45   : > { %7338 = vsyncadd (%p6257_p9), %s5019_s15, 4294952960  ;;  %p39_p0 = scmp.ge.s32.totalorder %s7644_s21, 4   ;;  %s8652_s2 = smov %s7345_s25 }
 0xa46   : > { %s8653_s25 = smov %s7349_s26  ;;  %s8654_s26 = smov %s7655_s28 }
 0xa47   : > { %s8655_s27 = smov %s7644_s21  ;;  %41 = sbr.rel (!%p39_p0) target bundleno = 27 (0x1b), region = 189 }
 0xa4c   :  { %5024 = vsyncpa [#allocation3], 1 }
 0xa4d   :  { %5026 = vsyncpa [#allocation3 + $0x1], 1 }
 0xa4e   :  { %5027 = vsyncpa [#allocation6], 1 }
 0xa4f   :  { %5028 = vsyncpa [#allocation9], 1 }
 0xa50   :  { %5029 = vsyncpa [#allocation12], 1 }
 0xa51   :  { %5030 = vsyncpa [#allocation15], 1 }
 0xa52   :  { %5031 = vsyncpa [#allocation18], 1 }
 0xa53   :  { %5032 = vsyncpa [#allocation4], 1 }
 0xa54   :  { %5034 = vsyncpa [#allocation4 + $0x1], 1 }

</bundles_post_ra>
